<compile_context>
chip_gen: v5e
topology: v5e:2x2
jax: 0.10.0
libtpu: 0.0.40
codegen_flags: <defaults>
</compile_context>

<pallas_src>
import math
import functools

import numpy as np
import jax
import jax.numpy as jnp
from jax import lax
from jax.experimental import pallas as pl
from jax.experimental.pallas import tpu as pltpu

_NEG_INF = -1e30
_LAYER_KEYS = ("g1", "b1", "wq", "wk", "wv", "wo", "bo",
               "g2", "b2", "w1", "c1", "w2", "c2")
_BF16_KEYS = frozenset({"wq", "wk", "wv", "wo", "w1", "w2"})


# ---------------------------------------------------------------------------
# In-kernel building blocks (operate on traced (T, C) tiles; the Python
# recursion below statically unrolls the whole Hourglass into one kernel).
# ---------------------------------------------------------------------------

def _layer_norm(x, gamma, beta, eps=1e-5):
    mu = jnp.mean(x, axis=-1, keepdims=True)
    xc = x - mu
    var = jnp.mean(xc * xc, axis=-1, keepdims=True)
    return xc * lax.rsqrt(var + eps) * gamma + beta


def _transformer_layer(x, refs, idx, mask_bias, H):
    """Pre-norm multi-head causal attention + FFN on a (T, C) tile."""
    T, C = x.shape

    # ---- LayerNorm 1 + multi-head causal self-attention ----
    xn = _layer_norm(x, refs[idx["g1"]][...], refs[idx["b1"]][...])
    xn_b = xn.astype(jnp.bfloat16)                       # MXU operand

    wq, wk, wv, wo = (refs[idx[n]] for n in ("wq", "wk", "wv", "wo"))
    proj = jnp.zeros((T, C), jnp.float32)
    for h in range(H):                                   # static unroll
        # wq already carries the 1/sqrt(head_size) scale (folded on the host)
        qh = jnp.dot(xn_b, wq[h], preferred_element_type=jnp.float32)  # (T, hs)
        kh = jnp.dot(xn_b, wk[h], preferred_element_type=jnp.float32)
        vh = jnp.dot(xn_b, wv[h], preferred_element_type=jnp.float32)
        # q @ k^T via dot_general (no explicit transpose on the XLU)
        s = lax.dot_general(qh.astype(jnp.bfloat16), kh.astype(jnp.bfloat16),
                            (((1,), (1,)), ((), ())),
                            preferred_element_type=jnp.float32)
        s = s + mask_bias                                # additive causal mask
        s = s - jnp.max(s, axis=-1, keepdims=True)
        p = jnp.exp(s)
        p = p * pl.reciprocal(jnp.sum(p, axis=-1, keepdims=True), approx=True)
        oh = jnp.dot(p.astype(jnp.bfloat16), vh.astype(jnp.bfloat16),
                     preferred_element_type=jnp.float32)          # (T, hs)
        # concat + output projection folded into per-head partial matmuls
        proj = proj + jnp.dot(oh.astype(jnp.bfloat16), wo[h],
                              preferred_element_type=jnp.float32)
    x = x + proj + refs[idx["bo"]][...]

    # ---- LayerNorm 2 + feed-forward ----
    xn2 = _layer_norm(x, refs[idx["g2"]][...], refs[idx["b2"]][...])
    h1 = jnp.dot(xn2.astype(jnp.bfloat16), refs[idx["w1"]][...],
                 preferred_element_type=jnp.float32) + refs[idx["c1"]][...]
    h1 = jnp.maximum(h1, 0.0)
    y = jnp.dot(h1.astype(jnp.bfloat16), refs[idx["w2"]][...],
                preferred_element_type=jnp.float32) + refs[idx["c2"]][...]
    return x + y


def _hourglass(x, refs, plan, H):
    """Recursively apply one Hourglass level to a (T, C) tile."""
    T, C = x.shape
    mask_bias = refs[plan["mask"]][...]

    for idx in plan["pre"]:
        x = _transformer_layer(x, refs, idx, mask_bias, H)

    if "inner" in plan:
        k = plan["k"]
        sel = refs[plan["sel"]]          # (k, Tp, T) bf16 0/1 gather matrices
        proj_w = refs[plan["proj_w"]]    # (k, C, C)  bf16
        Tp = sel.shape[1]

        # shiftRight + pad + fold-k + Linear(k*C -> C), expressed as
        #   pooled = sum_j (S_j @ x) @ W_j + b       (all MXU work)
        x_b = x.astype(jnp.bfloat16)
        pooled = jnp.zeros((Tp, C), jnp.float32)
        for j in range(k):
            gathered = jnp.dot(sel[j], x_b, preferred_element_type=jnp.float32)
            pooled = pooled + jnp.dot(gathered.astype(jnp.bfloat16), proj_w[j],
                                      preferred_element_type=jnp.float32)
        pooled = pooled + refs[plan["proj_b"]][...]

        inner = _hourglass(pooled, refs, plan["inner"], H)

        # repeat_interleave(k) + truncate-to-T as a 0/1 matmul (kept f32 so
        # the selection is an exact copy of the inner activations)
        up = jnp.dot(refs[plan["up"]][...], inner,
                     preferred_element_type=jnp.float32)
        x = x + up

        for idx in plan["post"]:
            x = _transformer_layer(x, refs, idx, mask_bias, H)
    return x


def _hourglass_kernel(*refs, plan, H):
    x_ref, o_ref = refs[0], refs[-1]
    w_refs = refs[1:-1]
    y = _hourglass(x_ref[0], w_refs, plan, H)
    o_ref[0] = y.astype(o_ref.dtype)


# ---------------------------------------------------------------------------
# Host-side plan building: flatten the recursive parameter tree into a flat
# list of kernel inputs and precompute all constant matrices (causal mask
# bias, pooling selection, upsampling) so the kernel never builds them.
# ---------------------------------------------------------------------------

def _add(arrays, a):
    arrays.append(a)
    return len(arrays) - 1


def _add_layer(arrays, lp):
    hs = lp["wq"].shape[-1]
    idx = {}
    for name in _LAYER_KEYS:
        a = lp[name]
        if name == "wq":                       # fold 1/sqrt(head_size) into Wq
            a = a * (1.0 / math.sqrt(hs))
        a = a.astype(jnp.bfloat16 if name in _BF16_KEYS else jnp.float32)
        idx[name] = _add(arrays, a)
    return idx


def _build_plan(params, T, arrays):
    plan = {}
    mask = np.where(np.arange(T)[:, None] >= np.arange(T)[None, :],
                    0.0, _NEG_INF).astype(np.float32)
    plan["mask"] = _add(arrays, jnp.asarray(mask))
    plan["pre"] = [_add_layer(arrays, lp) for lp in params["pre"]]

    if "inner" in params:
        k = params["k"]
        plan["k"] = k
        Ts = T + 1                       # length after shiftRight
        Tpad = Ts + ((-Ts) % k)          # padded to a multiple of k
        Tp = Tpad // k                   # pooled sequence length

        # sel[j, t', t] = 1  iff  shifted_padded[k*t'+j] == x[t]
        # where shifted = (k zeros) ++ x[:T-k+1] ++ (zero padding)
        sel = np.zeros((k, Tp, T), np.float32)
        for j in range(k):
            for tp in range(Tp):
                src = k * tp + j - k
                if 0 <= src <= T - k:
                    sel[j, tp, src] = 1.0
        plan["sel"] = _add(arrays, jnp.asarray(sel, jnp.bfloat16))

        # up[t, t'] = 1 iff t' == t // k   (repeat_interleave + truncate)
        up = np.zeros((T, Tp), np.float32)
        for t in range(T):
            up[t, t // k] = 1.0
        plan["up"] = _add(arrays, jnp.asarray(up))

        plan["proj_w"] = _add(arrays, params["proj_w"].astype(jnp.bfloat16))
        plan["proj_b"] = _add(arrays, params["proj_b"].astype(jnp.float32))
        plan["inner"] = _build_plan(params["inner"], Tp, arrays)
        plan["post"] = [_add_layer(arrays, lp) for lp in params["post"]]
    return plan


def _const_index_map(ndim):
    return lambda b: (0,) * ndim


def hourglass_forward(params, x, n_heads):
    """Single fused pallas_call for the whole recursive Hourglass forward."""
    B, T, C = x.shape
    arrays = []
    plan = _build_plan(params, T, arrays)
    kernel = functools.partial(_hourglass_kernel, plan=plan, H=n_heads)

    in_specs = [pl.BlockSpec((1, T, C), lambda b: (b, 0, 0))]
    in_specs += [pl.BlockSpec(a.shape, _const_index_map(a.ndim)) for a in arrays]

    return pl.pallas_call(
        kernel,
        out_shape=jax.ShapeDtypeStruct((B, T, C), jnp.float32),
        grid=(B,),
        in_specs=in_specs,
        out_specs=pl.BlockSpec((1, T, C), lambda b: (b, 0, 0)),
        compiler_params=pltpu.CompilerParams(
            dimension_semantics=("parallel",),     # shard batch across TCs
            vmem_limit_bytes=32 * 1024 * 1024,     # safe on v7x's 64 MiB VMEM
        ),
    )(x, *arrays)


# ---------------------------------------------------------------------------
# Pure-JAX reference mirroring the PyTorch module op-for-op (for the check in
# __main__).  Uses the same bf16 matmul operands / f32 accumulation as the
# kernel so comparison tolerances stay tight.
# ---------------------------------------------------------------------------

def _ref_layer_norm(x, g, b, eps=1e-5):
    mu = jnp.mean(x, axis=-1, keepdims=True)
    xc = x - mu
    var = jnp.mean(xc * xc, axis=-1, keepdims=True)
    return xc * lax.rsqrt(var + eps) * g + b


def _ref_transformer_layer(x, lp, H):
    B, T, C = x.shape
    hs = C // H
    b16 = jnp.bfloat16
    xn = _ref_layer_norm(x, lp["g1"], lp["b1"])
    xb = xn.astype(b16)
    mask = jnp.tril(jnp.ones((T, T), bool))
    heads = []
    for h in range(H):
        q = jnp.einsum("btc,cs->bts", xb, lp["wq"][h].astype(b16),
                       preferred_element_type=jnp.float32)
        k = jnp.einsum("btc,cs->bts", xb, lp["wk"][h].astype(b16),
                       preferred_element_type=jnp.float32)
        v = jnp.einsum("btc,cs->bts", xb, lp["wv"][h].astype(b16),
                       preferred_element_type=jnp.float32)
        s = jnp.einsum("bts,bks->btk", q.astype(b16), k.astype(b16),
                       preferred_element_type=jnp.float32) / math.sqrt(hs)
        s = jnp.where(mask, s, _NEG_INF)
        p = jax.nn.softmax(s, axis=-1)
        heads.append(jnp.einsum("btk,bks->bts", p.astype(b16), v.astype(b16),
                                preferred_element_type=jnp.float32))
    cat = jnp.concatenate(heads, axis=-1)
    wo_full = jnp.concatenate([lp["wo"][h] for h in range(H)], axis=0)
    proj = jnp.einsum("btd,dc->btc", cat.astype(b16), wo_full.astype(b16),
                      preferred_element_type=jnp.float32) + lp["bo"]
    x = x + proj
    xn2 = _ref_layer_norm(x, lp["g2"], lp["b2"])
    h1 = jnp.einsum("btc,cf->btf", xn2.astype(b16), lp["w1"].astype(b16),
                    preferred_element_type=jnp.float32) + lp["c1"]
    h1 = jnp.maximum(h1, 0.0)
    y = jnp.einsum("btf,fc->btc", h1.astype(b16), lp["w2"].astype(b16),
                   preferred_element_type=jnp.float32) + lp["c2"]
    return x + y


def hourglass_reference(params, x, H):
    B, T, C = x.shape
    for lp in params["pre"]:
        x = _ref_transformer_layer(x, lp, H)
    if "inner" in params:
        k = params["k"]
        shifted = jnp.concatenate(
            [jnp.zeros((B, k, C), x.dtype), x[:, :T - k + 1]], axis=1)
        pad = (-shifted.shape[1]) % k
        if pad:
            shifted = jnp.concatenate(
                [shifted, jnp.zeros((B, pad, C), x.dtype)], axis=1)
        folded = shifted.reshape(B, shifted.shape[1] // k, k * C)
        w_eff = params["proj_w"].reshape(k * C, C)
        pooled = jnp.einsum("btd,dc->btc", folded.astype(jnp.bfloat16),
                            w_eff.astype(jnp.bfloat16),
                            preferred_element_type=jnp.float32) + params["proj_b"]
        inner = hourglass_reference(params["inner"], pooled, H)
        up = jnp.repeat(inner, k, axis=1)[:, :T]
        x = x + up
        for lp in params["post"]:
            x = _ref_transformer_layer(x, lp, H)
    return x


# ---------------------------------------------------------------------------
# Parameter construction (deterministic, synthetic; kernel-friendly layouts:
# per-head q/k/v/wo weights pre-split on a leading head axis)
# ---------------------------------------------------------------------------

def _make_layer_params(key, C, H):
    hs = C // H
    ks = jax.random.split(key, 6)
    s, f32 = 0.02, jnp.float32
    return {
        "g1": jnp.ones((1, C), f32),
        "b1": jnp.zeros((1, C), f32),
        "wq": jax.random.normal(ks[0], (H, C, hs), f32) * s,
        "wk": jax.random.normal(ks[1], (H, C, hs), f32) * s,
        "wv": jax.random.normal(ks[2], (H, C, hs), f32) * s,
        "wo": jax.random.normal(ks[3], (H, hs, C), f32) * s,
        "bo": jnp.zeros((1, C), f32),
        "g2": jnp.ones((1, C), f32),
        "b2": jnp.zeros((1, C), f32),
        "w1": jax.random.normal(ks[4], (C, 4 * C), f32) * s,
        "c1": jnp.zeros((1, 4 * C), f32),
        "w2": jax.random.normal(ks[5], (4 * C, C), f32) * s,
        "c2": jnp.zeros((1, C), f32),
    }


def make_hourglass_params(key, factors, C, H):
    n_layers = factors[0]
    keys = jax.random.split(key, 2 * n_layers + 2)
    params = {"pre": [_make_layer_params(keys[i], C, H) for i in range(n_layers)]}
    if len(factors) > 2:
        k = factors[3]
        params["k"] = k
        params["proj_w"] = jax.random.normal(keys[n_layers], (k, C, C),
                                             jnp.float32) * 0.02
        params["proj_b"] = jnp.zeros((1, C), jnp.float32)
        params["inner"] = make_hourglass_params(keys[n_layers + 1], factors[2:], C, H)
        params["post"] = [_make_layer_params(keys[n_layers + 2 + i], C, H)
                          for i in range(n_layers)]
    return params


# ---------------------------------------------------------------------------
# Main
# ---------------------------------------------------------------------------

if __name__ == "__main__":
    # factors=[1,1,1,2]: one pre layer, pooling factor k=2, an inner hourglass
    # with one layer (no further recursion), one post layer.  dropout=0.0.
    B, block_size, n_embedding, n_heads = 2, 8, 32, 4
    factors = [1, 1, 1, 2]

    key = jax.random.PRNGKey(0)
    kx, kp = jax.random.split(key)
    x = jax.random.normal(kx, (B, block_size, n_embedding), jnp.float32)
    params = make_hourglass_params(kp, factors, n_embedding, n_heads)

    out = jax.block_until_ready(hourglass_forward(params, x, n_heads))
    assert out.shape == (B, block_size, n_embedding)
    assert bool(jnp.all(jnp.isfinite(out)))

    ref = jax.block_until_ready(hourglass_reference(params, x, n_heads))
    max_err = float(jnp.max(jnp.abs(out - ref)))
    assert max_err < 3e-2, f"kernel/reference mismatch: max abs err {max_err}"
    print("KERNEL_OK")
</pallas_src>

<mosaic_0001>
module attributes {stable_mosaic.version = 11 : i64} {
  func.func @_hourglass_kernel(%arg0: i32, %arg1: memref<1x8x32xf32, #tpu.memory_space<vmem>>, %arg2: memref<8x8xf32, #tpu.memory_space<vmem>>, %arg3: memref<1x32xf32, #tpu.memory_space<vmem>>, %arg4: memref<1x32xf32, #tpu.memory_space<vmem>>, %arg5: memref<4x32x8xbf16, #tpu.memory_space<vmem>>, %arg6: memref<4x32x8xbf16, #tpu.memory_space<vmem>>, %arg7: memref<4x32x8xbf16, #tpu.memory_space<vmem>>, %arg8: memref<4x8x32xbf16, #tpu.memory_space<vmem>>, %arg9: memref<1x32xf32, #tpu.memory_space<vmem>>, %arg10: memref<1x32xf32, #tpu.memory_space<vmem>>, %arg11: memref<1x32xf32, #tpu.memory_space<vmem>>, %arg12: memref<32x128xbf16, #tpu.memory_space<vmem>>, %arg13: memref<1x128xf32, #tpu.memory_space<vmem>>, %arg14: memref<128x32xbf16, #tpu.memory_space<vmem>>, %arg15: memref<1x32xf32, #tpu.memory_space<vmem>>, %arg16: memref<2x5x8xbf16, #tpu.memory_space<vmem>>, %arg17: memref<8x5xf32, #tpu.memory_space<vmem>>, %arg18: memref<2x32x32xbf16, #tpu.memory_space<vmem>>, %arg19: memref<1x32xf32, #tpu.memory_space<vmem>>, %arg20: memref<5x5xf32, #tpu.memory_space<vmem>>, %arg21: memref<1x32xf32, #tpu.memory_space<vmem>>, %arg22: memref<1x32xf32, #tpu.memory_space<vmem>>, %arg23: memref<4x32x8xbf16, #tpu.memory_space<vmem>>, %arg24: memref<4x32x8xbf16, #tpu.memory_space<vmem>>, %arg25: memref<4x32x8xbf16, #tpu.memory_space<vmem>>, %arg26: memref<4x8x32xbf16, #tpu.memory_space<vmem>>, %arg27: memref<1x32xf32, #tpu.memory_space<vmem>>, %arg28: memref<1x32xf32, #tpu.memory_space<vmem>>, %arg29: memref<1x32xf32, #tpu.memory_space<vmem>>, %arg30: memref<32x128xbf16, #tpu.memory_space<vmem>>, %arg31: memref<1x128xf32, #tpu.memory_space<vmem>>, %arg32: memref<128x32xbf16, #tpu.memory_space<vmem>>, %arg33: memref<1x32xf32, #tpu.memory_space<vmem>>, %arg34: memref<1x32xf32, #tpu.memory_space<vmem>>, %arg35: memref<1x32xf32, #tpu.memory_space<vmem>>, %arg36: memref<4x32x8xbf16, #tpu.memory_space<vmem>>, %arg37: memref<4x32x8xbf16, #tpu.memory_space<vmem>>, %arg38: memref<4x32x8xbf16, #tpu.memory_space<vmem>>, %arg39: memref<4x8x32xbf16, #tpu.memory_space<vmem>>, %arg40: memref<1x32xf32, #tpu.memory_space<vmem>>, %arg41: memref<1x32xf32, #tpu.memory_space<vmem>>, %arg42: memref<1x32xf32, #tpu.memory_space<vmem>>, %arg43: memref<32x128xbf16, #tpu.memory_space<vmem>>, %arg44: memref<1x128xf32, #tpu.memory_space<vmem>>, %arg45: memref<128x32xbf16, #tpu.memory_space<vmem>>, %arg46: memref<1x32xf32, #tpu.memory_space<vmem>>, %arg47: memref<1x8x32xf32, #tpu.memory_space<vmem>>) attributes {dimension_semantics = [#tpu.dimension_semantics<parallel>], iteration_bounds = array<i64: 2>, scalar_prefetch = 0 : i64, scratch_operands = 0 : i64, tpu.core_type = #tpu.core_type<tc>, window_params = [{transform_indices = @transform_0, window_bounds = array<i64: 1, 8, 32>}, {pipeline_mode = #tpu.pipeline_mode<synchronous>, transform_indices = @transform_1, window_bounds = array<i64: 8, 8>}, {pipeline_mode = #tpu.pipeline_mode<synchronous>, transform_indices = @transform_2, window_bounds = array<i64: 1, 32>}, {pipeline_mode = #tpu.pipeline_mode<synchronous>, transform_indices = @transform_3, window_bounds = array<i64: 1, 32>}, {pipeline_mode = #tpu.pipeline_mode<synchronous>, transform_indices = @transform_4, window_bounds = array<i64: 4, 32, 8>}, {pipeline_mode = #tpu.pipeline_mode<synchronous>, transform_indices = @transform_5, window_bounds = array<i64: 4, 32, 8>}, {pipeline_mode = #tpu.pipeline_mode<synchronous>, transform_indices = @transform_6, window_bounds = array<i64: 4, 32, 8>}, {pipeline_mode = #tpu.pipeline_mode<synchronous>, transform_indices = @transform_7, window_bounds = array<i64: 4, 8, 32>}, {pipeline_mode = #tpu.pipeline_mode<synchronous>, transform_indices = @transform_8, window_bounds = array<i64: 1, 32>}, {pipeline_mode = #tpu.pipeline_mode<synchronous>, transform_indices = @transform_9, window_bounds = array<i64: 1, 32>}, {pipeline_mode = #tpu.pipeline_mode<synchronous>, transform_indices = @transform_10, window_bounds = array<i64: 1, 32>}, {pipeline_mode = #tpu.pipeline_mode<synchronous>, transform_indices = @transform_11, window_bounds = array<i64: 32, 128>}, {pipeline_mode = #tpu.pipeline_mode<synchronous>, transform_indices = @transform_12, window_bounds = array<i64: 1, 128>}, {pipeline_mode = #tpu.pipeline_mode<synchronous>, transform_indices = @transform_13, window_bounds = array<i64: 128, 32>}, {pipeline_mode = #tpu.pipeline_mode<synchronous>, transform_indices = @transform_14, window_bounds = array<i64: 1, 32>}, {pipeline_mode = #tpu.pipeline_mode<synchronous>, transform_indices = @transform_15, window_bounds = array<i64: 2, 5, 8>}, {pipeline_mode = #tpu.pipeline_mode<synchronous>, transform_indices = @transform_16, window_bounds = array<i64: 8, 5>}, {pipeline_mode = #tpu.pipeline_mode<synchronous>, transform_indices = @transform_17, window_bounds = array<i64: 2, 32, 32>}, {pipeline_mode = #tpu.pipeline_mode<synchronous>, transform_indices = @transform_18, window_bounds = array<i64: 1, 32>}, {pipeline_mode = #tpu.pipeline_mode<synchronous>, transform_indices = @transform_19, window_bounds = array<i64: 5, 5>}, {pipeline_mode = #tpu.pipeline_mode<synchronous>, transform_indices = @transform_20, window_bounds = array<i64: 1, 32>}, {pipeline_mode = #tpu.pipeline_mode<synchronous>, transform_indices = @transform_21, window_bounds = array<i64: 1, 32>}, {pipeline_mode = #tpu.pipeline_mode<synchronous>, transform_indices = @transform_22, window_bounds = array<i64: 4, 32, 8>}, {pipeline_mode = #tpu.pipeline_mode<synchronous>, transform_indices = @transform_23, window_bounds = array<i64: 4, 32, 8>}, {pipeline_mode = #tpu.pipeline_mode<synchronous>, transform_indices = @transform_24, window_bounds = array<i64: 4, 32, 8>}, {pipeline_mode = #tpu.pipeline_mode<synchronous>, transform_indices = @transform_25, window_bounds = array<i64: 4, 8, 32>}, {pipeline_mode = #tpu.pipeline_mode<synchronous>, transform_indices = @transform_26, window_bounds = array<i64: 1, 32>}, {pipeline_mode = #tpu.pipeline_mode<synchronous>, transform_indices = @transform_27, window_bounds = array<i64: 1, 32>}, {pipeline_mode = #tpu.pipeline_mode<synchronous>, transform_indices = @transform_28, window_bounds = array<i64: 1, 32>}, {pipeline_mode = #tpu.pipeline_mode<synchronous>, transform_indices = @transform_29, window_bounds = array<i64: 32, 128>}, {pipeline_mode = #tpu.pipeline_mode<synchronous>, transform_indices = @transform_30, window_bounds = array<i64: 1, 128>}, {pipeline_mode = #tpu.pipeline_mode<synchronous>, transform_indices = @transform_31, window_bounds = array<i64: 128, 32>}, {pipeline_mode = #tpu.pipeline_mode<synchronous>, transform_indices = @transform_32, window_bounds = array<i64: 1, 32>}, {pipeline_mode = #tpu.pipeline_mode<synchronous>, transform_indices = @transform_33, window_bounds = array<i64: 1, 32>}, {pipeline_mode = #tpu.pipeline_mode<synchronous>, transform_indices = @transform_34, window_bounds = array<i64: 1, 32>}, {pipeline_mode = #tpu.pipeline_mode<synchronous>, transform_indices = @transform_35, window_bounds = array<i64: 4, 32, 8>}, {pipeline_mode = #tpu.pipeline_mode<synchronous>, transform_indices = @transform_36, window_bounds = array<i64: 4, 32, 8>}, {pipeline_mode = #tpu.pipeline_mode<synchronous>, transform_indices = @transform_37, window_bounds = array<i64: 4, 32, 8>}, {pipeline_mode = #tpu.pipeline_mode<synchronous>, transform_indices = @transform_38, window_bounds = array<i64: 4, 8, 32>}, {pipeline_mode = #tpu.pipeline_mode<synchronous>, transform_indices = @transform_39, window_bounds = array<i64: 1, 32>}, {pipeline_mode = #tpu.pipeline_mode<synchronous>, transform_indices = @transform_40, window_bounds = array<i64: 1, 32>}, {pipeline_mode = #tpu.pipeline_mode<synchronous>, transform_indices = @transform_41, window_bounds = array<i64: 1, 32>}, {pipeline_mode = #tpu.pipeline_mode<synchronous>, transform_indices = @transform_42, window_bounds = array<i64: 32, 128>}, {pipeline_mode = #tpu.pipeline_mode<synchronous>, transform_indices = @transform_43, window_bounds = array<i64: 1, 128>}, {pipeline_mode = #tpu.pipeline_mode<synchronous>, transform_indices = @transform_44, window_bounds = array<i64: 128, 32>}, {pipeline_mode = #tpu.pipeline_mode<synchronous>, transform_indices = @transform_45, window_bounds = array<i64: 1, 32>}, {transform_indices = @transform_46, window_bounds = array<i64: 1, 8, 32>}]} {
    %c0 = arith.constant 0 : index
    %c0_0 = arith.constant 0 : index
    %c0_1 = arith.constant 0 : index
    %0 = vector.load %arg1[%c0, %c0_0, %c0_1] : memref<1x8x32xf32, #tpu.memory_space<vmem>>, vector<1x8x32xf32>
    %1 = vector.shape_cast %0 : vector<1x8x32xf32> to vector<8x32xf32>
    %c0_2 = arith.constant 0 : index
    %c0_3 = arith.constant 0 : index
    %2 = vector.load %arg2[%c0_2, %c0_3] : memref<8x8xf32, #tpu.memory_space<vmem>>, vector<8x8xf32>
    %c0_4 = arith.constant 0 : index
    %c0_5 = arith.constant 0 : index
    %3 = vector.load %arg3[%c0_4, %c0_5] : memref<1x32xf32, #tpu.memory_space<vmem>>, vector<1x32xf32>
    %c0_6 = arith.constant 0 : index
    %c0_7 = arith.constant 0 : index
    %4 = vector.load %arg4[%c0_6, %c0_7] : memref<1x32xf32, #tpu.memory_space<vmem>>, vector<1x32xf32>
    %cst = arith.constant dense<0.000000e+00> : vector<8xf32>
    %5 = vector.multi_reduction <add>, %1, %cst [1] : vector<8x32xf32> to vector<8xf32>
    %6 = vector.shape_cast %5 : vector<8xf32> to vector<8x1xf32>
    %cst_8 = arith.constant 3.200000e+01 : f32
    %7 = vector.broadcast %cst_8 : f32 to vector<8x1xf32>
    %8 = arith.divf %6, %7 : vector<8x1xf32>
    %9 = vector.broadcast %8 : vector<8x1xf32> to vector<8x32xf32>
    %10 = arith.subf %1, %9 : vector<8x32xf32>
    %11 = arith.mulf %10, %10 : vector<8x32xf32>
    %cst_9 = arith.constant dense<0.000000e+00> : vector<8xf32>
    %12 = vector.multi_reduction <add>, %11, %cst_9 [1] : vector<8x32xf32> to vector<8xf32>
    %13 = vector.shape_cast %12 : vector<8xf32> to vector<8x1xf32>
    %cst_10 = arith.constant 3.200000e+01 : f32
    %14 = vector.broadcast %cst_10 : f32 to vector<8x1xf32>
    %15 = arith.divf %13, %14 : vector<8x1xf32>
    %cst_11 = arith.constant 9.99999974E-6 : f32
    %16 = vector.broadcast %cst_11 : f32 to vector<8x1xf32>
    %17 = arith.addf %15, %16 : vector<8x1xf32>
    %18 = math.rsqrt %17 : vector<8x1xf32>
    %19 = vector.broadcast %18 : vector<8x1xf32> to vector<8x32xf32>
    %20 = arith.mulf %10, %19 : vector<8x32xf32>
    %21 = vector.broadcast %3 : vector<1x32xf32> to vector<8x32xf32>
    %22 = arith.mulf %20, %21 : vector<8x32xf32>
    %23 = vector.broadcast %4 : vector<1x32xf32> to vector<8x32xf32>
    %24 = arith.addf %22, %23 : vector<8x32xf32>
    %25 = arith.truncf %24 : vector<8x32xf32> to vector<8x32xbf16>
    %cst_12 = arith.constant 0.000000e+00 : f32
    %26 = vector.broadcast %cst_12 : f32 to vector<8x32xf32>
    %c0_13 = arith.constant 0 : index
    %c0_14 = arith.constant 0 : index
    %c0_15 = arith.constant 0 : index
    %27 = vector.load %arg5[%c0_13, %c0_14, %c0_15] : memref<4x32x8xbf16, #tpu.memory_space<vmem>>, vector<1x32x8xbf16>
    %28 = vector.shape_cast %27 : vector<1x32x8xbf16> to vector<32x8xbf16>
    %cst_16 = arith.constant dense<0.000000e+00> : vector<8x8xf32>
    %29 = tpu.matmul %25, %28, %cst_16 {dimension_numbers = #tpu.dot_dimension_numbers<[1], [0], [0], [1], [0, 0, 1, 1], [], []>} : vector<8x32xbf16>, vector<32x8xbf16>, vector<8x8xf32> -> vector<8x8xf32>
    %c0_17 = arith.constant 0 : index
    %c0_18 = arith.constant 0 : index
    %c0_19 = arith.constant 0 : index
    %30 = vector.load %arg6[%c0_17, %c0_18, %c0_19] : memref<4x32x8xbf16, #tpu.memory_space<vmem>>, vector<1x32x8xbf16>
    %31 = vector.shape_cast %30 : vector<1x32x8xbf16> to vector<32x8xbf16>
    %cst_20 = arith.constant dense<0.000000e+00> : vector<8x8xf32>
    %32 = tpu.matmul %25, %31, %cst_20 {dimension_numbers = #tpu.dot_dimension_numbers<[1], [0], [0], [1], [0, 0, 1, 1], [], []>} : vector<8x32xbf16>, vector<32x8xbf16>, vector<8x8xf32> -> vector<8x8xf32>
    %c0_21 = arith.constant 0 : index
    %c0_22 = arith.constant 0 : index
    %c0_23 = arith.constant 0 : index
    %33 = vector.load %arg7[%c0_21, %c0_22, %c0_23] : memref<4x32x8xbf16, #tpu.memory_space<vmem>>, vector<1x32x8xbf16>
    %34 = vector.shape_cast %33 : vector<1x32x8xbf16> to vector<32x8xbf16>
    %cst_24 = arith.constant dense<0.000000e+00> : vector<8x8xf32>
    %35 = tpu.matmul %25, %34, %cst_24 {dimension_numbers = #tpu.dot_dimension_numbers<[1], [0], [0], [1], [0, 0, 1, 1], [], []>} : vector<8x32xbf16>, vector<32x8xbf16>, vector<8x8xf32> -> vector<8x8xf32>
    %36 = arith.truncf %29 : vector<8x8xf32> to vector<8x8xbf16>
    %37 = arith.truncf %32 : vector<8x8xf32> to vector<8x8xbf16>
    %cst_25 = arith.constant dense<0.000000e+00> : vector<8x8xf32>
    %38 = tpu.matmul %36, %37, %cst_25 {dimension_numbers = #tpu.dot_dimension_numbers<[1], [1], [0], [0], [0, 0, 1, 0], [], []>} : vector<8x8xbf16>, vector<8x8xbf16>, vector<8x8xf32> -> vector<8x8xf32>
    %39 = arith.addf %38, %2 : vector<8x8xf32>
    %cst_26 = arith.constant dense<0xFF800000> : vector<8xf32>
    %40 = vector.multi_reduction <maximumf>, %39, %cst_26 [1] : vector<8x8xf32> to vector<8xf32>
    %41 = vector.shape_cast %40 : vector<8xf32> to vector<8x1xf32>
    %42 = vector.broadcast %41 : vector<8x1xf32> to vector<8x8xf32>
    %43 = arith.subf %39, %42 : vector<8x8xf32>
    %44 = math.exp %43 : vector<8x8xf32>
    %cst_27 = arith.constant dense<0.000000e+00> : vector<8xf32>
    %45 = vector.multi_reduction <add>, %44, %cst_27 [1] : vector<8x8xf32> to vector<8xf32>
    %46 = vector.shape_cast %45 : vector<8xf32> to vector<8x1xf32>
    %47 = tpu.reciprocal %46 {approx = true} : vector<8x1xf32> -> vector<8x1xf32>
    %48 = vector.broadcast %47 : vector<8x1xf32> to vector<8x8xf32>
    %49 = arith.mulf %44, %48 : vector<8x8xf32>
    %50 = arith.truncf %49 : vector<8x8xf32> to vector<8x8xbf16>
    %51 = arith.truncf %35 : vector<8x8xf32> to vector<8x8xbf16>
    %cst_28 = arith.constant dense<0.000000e+00> : vector<8x8xf32>
    %52 = tpu.matmul %50, %51, %cst_28 {dimension_numbers = #tpu.dot_dimension_numbers<[1], [0], [0], [1], [0, 0, 1, 1], [], []>} : vector<8x8xbf16>, vector<8x8xbf16>, vector<8x8xf32> -> vector<8x8xf32>
    %53 = arith.truncf %52 : vector<8x8xf32> to vector<8x8xbf16>
    %c0_29 = arith.constant 0 : index
    %c0_30 = arith.constant 0 : index
    %c0_31 = arith.constant 0 : index
    %54 = vector.load %arg8[%c0_29, %c0_30, %c0_31] : memref<4x8x32xbf16, #tpu.memory_space<vmem>>, vector<1x8x32xbf16>
    %55 = vector.shape_cast %54 : vector<1x8x32xbf16> to vector<8x32xbf16>
    %cst_32 = arith.constant dense<0.000000e+00> : vector<8x32xf32>
    %56 = tpu.matmul %53, %55, %cst_32 {dimension_numbers = #tpu.dot_dimension_numbers<[1], [0], [0], [1], [0, 0, 1, 1], [], []>} : vector<8x8xbf16>, vector<8x32xbf16>, vector<8x32xf32> -> vector<8x32xf32>
    %57 = arith.addf %26, %56 : vector<8x32xf32>
    %c1 = arith.constant 1 : index
    %c0_33 = arith.constant 0 : index
    %c0_34 = arith.constant 0 : index
    %58 = vector.load %arg5[%c1, %c0_33, %c0_34] : memref<4x32x8xbf16, #tpu.memory_space<vmem>>, vector<1x32x8xbf16>
    %59 = vector.shape_cast %58 : vector<1x32x8xbf16> to vector<32x8xbf16>
    %cst_35 = arith.constant dense<0.000000e+00> : vector<8x8xf32>
    %60 = tpu.matmul %25, %59, %cst_35 {dimension_numbers = #tpu.dot_dimension_numbers<[1], [0], [0], [1], [0, 0, 1, 1], [], []>} : vector<8x32xbf16>, vector<32x8xbf16>, vector<8x8xf32> -> vector<8x8xf32>
    %c1_36 = arith.constant 1 : index
    %c0_37 = arith.constant 0 : index
    %c0_38 = arith.constant 0 : index
    %61 = vector.load %arg6[%c1_36, %c0_37, %c0_38] : memref<4x32x8xbf16, #tpu.memory_space<vmem>>, vector<1x32x8xbf16>
    %62 = vector.shape_cast %61 : vector<1x32x8xbf16> to vector<32x8xbf16>
    %cst_39 = arith.constant dense<0.000000e+00> : vector<8x8xf32>
    %63 = tpu.matmul %25, %62, %cst_39 {dimension_numbers = #tpu.dot_dimension_numbers<[1], [0], [0], [1], [0, 0, 1, 1], [], []>} : vector<8x32xbf16>, vector<32x8xbf16>, vector<8x8xf32> -> vector<8x8xf32>
    %c1_40 = arith.constant 1 : index
    %c0_41 = arith.constant 0 : index
    %c0_42 = arith.constant 0 : index
    %64 = vector.load %arg7[%c1_40, %c0_41, %c0_42] : memref<4x32x8xbf16, #tpu.memory_space<vmem>>, vector<1x32x8xbf16>
    %65 = vector.shape_cast %64 : vector<1x32x8xbf16> to vector<32x8xbf16>
    %cst_43 = arith.constant dense<0.000000e+00> : vector<8x8xf32>
    %66 = tpu.matmul %25, %65, %cst_43 {dimension_numbers = #tpu.dot_dimension_numbers<[1], [0], [0], [1], [0, 0, 1, 1], [], []>} : vector<8x32xbf16>, vector<32x8xbf16>, vector<8x8xf32> -> vector<8x8xf32>
    %67 = arith.truncf %60 : vector<8x8xf32> to vector<8x8xbf16>
    %68 = arith.truncf %63 : vector<8x8xf32> to vector<8x8xbf16>
    %cst_44 = arith.constant dense<0.000000e+00> : vector<8x8xf32>
    %69 = tpu.matmul %67, %68, %cst_44 {dimension_numbers = #tpu.dot_dimension_numbers<[1], [1], [0], [0], [0, 0, 1, 0], [], []>} : vector<8x8xbf16>, vector<8x8xbf16>, vector<8x8xf32> -> vector<8x8xf32>
    %70 = arith.addf %69, %2 : vector<8x8xf32>
    %cst_45 = arith.constant dense<0xFF800000> : vector<8xf32>
    %71 = vector.multi_reduction <maximumf>, %70, %cst_45 [1] : vector<8x8xf32> to vector<8xf32>
    %72 = vector.shape_cast %71 : vector<8xf32> to vector<8x1xf32>
    %73 = vector.broadcast %72 : vector<8x1xf32> to vector<8x8xf32>
    %74 = arith.subf %70, %73 : vector<8x8xf32>
    %75 = math.exp %74 : vector<8x8xf32>
    %cst_46 = arith.constant dense<0.000000e+00> : vector<8xf32>
    %76 = vector.multi_reduction <add>, %75, %cst_46 [1] : vector<8x8xf32> to vector<8xf32>
    %77 = vector.shape_cast %76 : vector<8xf32> to vector<8x1xf32>
    %78 = tpu.reciprocal %77 {approx = true} : vector<8x1xf32> -> vector<8x1xf32>
    %79 = vector.broadcast %78 : vector<8x1xf32> to vector<8x8xf32>
    %80 = arith.mulf %75, %79 : vector<8x8xf32>
    %81 = arith.truncf %80 : vector<8x8xf32> to vector<8x8xbf16>
    %82 = arith.truncf %66 : vector<8x8xf32> to vector<8x8xbf16>
    %cst_47 = arith.constant dense<0.000000e+00> : vector<8x8xf32>
    %83 = tpu.matmul %81, %82, %cst_47 {dimension_numbers = #tpu.dot_dimension_numbers<[1], [0], [0], [1], [0, 0, 1, 1], [], []>} : vector<8x8xbf16>, vector<8x8xbf16>, vector<8x8xf32> -> vector<8x8xf32>
    %84 = arith.truncf %83 : vector<8x8xf32> to vector<8x8xbf16>
    %c1_48 = arith.constant 1 : index
    %c0_49 = arith.constant 0 : index
    %c0_50 = arith.constant 0 : index
    %85 = vector.load %arg8[%c1_48, %c0_49, %c0_50] : memref<4x8x32xbf16, #tpu.memory_space<vmem>>, vector<1x8x32xbf16>
    %86 = vector.shape_cast %85 : vector<1x8x32xbf16> to vector<8x32xbf16>
    %cst_51 = arith.constant dense<0.000000e+00> : vector<8x32xf32>
    %87 = tpu.matmul %84, %86, %cst_51 {dimension_numbers = #tpu.dot_dimension_numbers<[1], [0], [0], [1], [0, 0, 1, 1], [], []>} : vector<8x8xbf16>, vector<8x32xbf16>, vector<8x32xf32> -> vector<8x32xf32>
    %88 = arith.addf %57, %87 : vector<8x32xf32>
    %c2 = arith.constant 2 : index
    %c0_52 = arith.constant 0 : index
    %c0_53 = arith.constant 0 : index
    %89 = vector.load %arg5[%c2, %c0_52, %c0_53] : memref<4x32x8xbf16, #tpu.memory_space<vmem>>, vector<1x32x8xbf16>
    %90 = vector.shape_cast %89 : vector<1x32x8xbf16> to vector<32x8xbf16>
    %cst_54 = arith.constant dense<0.000000e+00> : vector<8x8xf32>
    %91 = tpu.matmul %25, %90, %cst_54 {dimension_numbers = #tpu.dot_dimension_numbers<[1], [0], [0], [1], [0, 0, 1, 1], [], []>} : vector<8x32xbf16>, vector<32x8xbf16>, vector<8x8xf32> -> vector<8x8xf32>
    %c2_55 = arith.constant 2 : index
    %c0_56 = arith.constant 0 : index
    %c0_57 = arith.constant 0 : index
    %92 = vector.load %arg6[%c2_55, %c0_56, %c0_57] : memref<4x32x8xbf16, #tpu.memory_space<vmem>>, vector<1x32x8xbf16>
    %93 = vector.shape_cast %92 : vector<1x32x8xbf16> to vector<32x8xbf16>
    %cst_58 = arith.constant dense<0.000000e+00> : vector<8x8xf32>
    %94 = tpu.matmul %25, %93, %cst_58 {dimension_numbers = #tpu.dot_dimension_numbers<[1], [0], [0], [1], [0, 0, 1, 1], [], []>} : vector<8x32xbf16>, vector<32x8xbf16>, vector<8x8xf32> -> vector<8x8xf32>
    %c2_59 = arith.constant 2 : index
    %c0_60 = arith.constant 0 : index
    %c0_61 = arith.constant 0 : index
    %95 = vector.load %arg7[%c2_59, %c0_60, %c0_61] : memref<4x32x8xbf16, #tpu.memory_space<vmem>>, vector<1x32x8xbf16>
    %96 = vector.shape_cast %95 : vector<1x32x8xbf16> to vector<32x8xbf16>
    %cst_62 = arith.constant dense<0.000000e+00> : vector<8x8xf32>
    %97 = tpu.matmul %25, %96, %cst_62 {dimension_numbers = #tpu.dot_dimension_numbers<[1], [0], [0], [1], [0, 0, 1, 1], [], []>} : vector<8x32xbf16>, vector<32x8xbf16>, vector<8x8xf32> -> vector<8x8xf32>
    %98 = arith.truncf %91 : vector<8x8xf32> to vector<8x8xbf16>
    %99 = arith.truncf %94 : vector<8x8xf32> to vector<8x8xbf16>
    %cst_63 = arith.constant dense<0.000000e+00> : vector<8x8xf32>
    %100 = tpu.matmul %98, %99, %cst_63 {dimension_numbers = #tpu.dot_dimension_numbers<[1], [1], [0], [0], [0, 0, 1, 0], [], []>} : vector<8x8xbf16>, vector<8x8xbf16>, vector<8x8xf32> -> vector<8x8xf32>
    %101 = arith.addf %100, %2 : vector<8x8xf32>
    %cst_64 = arith.constant dense<0xFF800000> : vector<8xf32>
    %102 = vector.multi_reduction <maximumf>, %101, %cst_64 [1] : vector<8x8xf32> to vector<8xf32>
    %103 = vector.shape_cast %102 : vector<8xf32> to vector<8x1xf32>
    %104 = vector.broadcast %103 : vector<8x1xf32> to vector<8x8xf32>
    %105 = arith.subf %101, %104 : vector<8x8xf32>
    %106 = math.exp %105 : vector<8x8xf32>
    %cst_65 = arith.constant dense<0.000000e+00> : vector<8xf32>
    %107 = vector.multi_reduction <add>, %106, %cst_65 [1] : vector<8x8xf32> to vector<8xf32>
    %108 = vector.shape_cast %107 : vector<8xf32> to vector<8x1xf32>
    %109 = tpu.reciprocal %108 {approx = true} : vector<8x1xf32> -> vector<8x1xf32>
    %110 = vector.broadcast %109 : vector<8x1xf32> to vector<8x8xf32>
    %111 = arith.mulf %106, %110 : vector<8x8xf32>
    %112 = arith.truncf %111 : vector<8x8xf32> to vector<8x8xbf16>
    %113 = arith.truncf %97 : vector<8x8xf32> to vector<8x8xbf16>
    %cst_66 = arith.constant dense<0.000000e+00> : vector<8x8xf32>
    %114 = tpu.matmul %112, %113, %cst_66 {dimension_numbers = #tpu.dot_dimension_numbers<[1], [0], [0], [1], [0, 0, 1, 1], [], []>} : vector<8x8xbf16>, vector<8x8xbf16>, vector<8x8xf32> -> vector<8x8xf32>
    %115 = arith.truncf %114 : vector<8x8xf32> to vector<8x8xbf16>
    %c2_67 = arith.constant 2 : index
    %c0_68 = arith.constant 0 : index
    %c0_69 = arith.constant 0 : index
    %116 = vector.load %arg8[%c2_67, %c0_68, %c0_69] : memref<4x8x32xbf16, #tpu.memory_space<vmem>>, vector<1x8x32xbf16>
    %117 = vector.shape_cast %116 : vector<1x8x32xbf16> to vector<8x32xbf16>
    %cst_70 = arith.constant dense<0.000000e+00> : vector<8x32xf32>
    %118 = tpu.matmul %115, %117, %cst_70 {dimension_numbers = #tpu.dot_dimension_numbers<[1], [0], [0], [1], [0, 0, 1, 1], [], []>} : vector<8x8xbf16>, vector<8x32xbf16>, vector<8x32xf32> -> vector<8x32xf32>
    %119 = arith.addf %88, %118 : vector<8x32xf32>
    %c3 = arith.constant 3 : index
    %c0_71 = arith.constant 0 : index
    %c0_72 = arith.constant 0 : index
    %120 = vector.load %arg5[%c3, %c0_71, %c0_72] : memref<4x32x8xbf16, #tpu.memory_space<vmem>>, vector<1x32x8xbf16>
    %121 = vector.shape_cast %120 : vector<1x32x8xbf16> to vector<32x8xbf16>
    %cst_73 = arith.constant dense<0.000000e+00> : vector<8x8xf32>
    %122 = tpu.matmul %25, %121, %cst_73 {dimension_numbers = #tpu.dot_dimension_numbers<[1], [0], [0], [1], [0, 0, 1, 1], [], []>} : vector<8x32xbf16>, vector<32x8xbf16>, vector<8x8xf32> -> vector<8x8xf32>
    %c3_74 = arith.constant 3 : index
    %c0_75 = arith.constant 0 : index
    %c0_76 = arith.constant 0 : index
    %123 = vector.load %arg6[%c3_74, %c0_75, %c0_76] : memref<4x32x8xbf16, #tpu.memory_space<vmem>>, vector<1x32x8xbf16>
    %124 = vector.shape_cast %123 : vector<1x32x8xbf16> to vector<32x8xbf16>
    %cst_77 = arith.constant dense<0.000000e+00> : vector<8x8xf32>
    %125 = tpu.matmul %25, %124, %cst_77 {dimension_numbers = #tpu.dot_dimension_numbers<[1], [0], [0], [1], [0, 0, 1, 1], [], []>} : vector<8x32xbf16>, vector<32x8xbf16>, vector<8x8xf32> -> vector<8x8xf32>
    %c3_78 = arith.constant 3 : index
    %c0_79 = arith.constant 0 : index
    %c0_80 = arith.constant 0 : index
    %126 = vector.load %arg7[%c3_78, %c0_79, %c0_80] : memref<4x32x8xbf16, #tpu.memory_space<vmem>>, vector<1x32x8xbf16>
    %127 = vector.shape_cast %126 : vector<1x32x8xbf16> to vector<32x8xbf16>
    %cst_81 = arith.constant dense<0.000000e+00> : vector<8x8xf32>
    %128 = tpu.matmul %25, %127, %cst_81 {dimension_numbers = #tpu.dot_dimension_numbers<[1], [0], [0], [1], [0, 0, 1, 1], [], []>} : vector<8x32xbf16>, vector<32x8xbf16>, vector<8x8xf32> -> vector<8x8xf32>
    %129 = arith.truncf %122 : vector<8x8xf32> to vector<8x8xbf16>
    %130 = arith.truncf %125 : vector<8x8xf32> to vector<8x8xbf16>
    %cst_82 = arith.constant dense<0.000000e+00> : vector<8x8xf32>
    %131 = tpu.matmul %129, %130, %cst_82 {dimension_numbers = #tpu.dot_dimension_numbers<[1], [1], [0], [0], [0, 0, 1, 0], [], []>} : vector<8x8xbf16>, vector<8x8xbf16>, vector<8x8xf32> -> vector<8x8xf32>
    %132 = arith.addf %131, %2 : vector<8x8xf32>
    %cst_83 = arith.constant dense<0xFF800000> : vector<8xf32>
    %133 = vector.multi_reduction <maximumf>, %132, %cst_83 [1] : vector<8x8xf32> to vector<8xf32>
    %134 = vector.shape_cast %133 : vector<8xf32> to vector<8x1xf32>
    %135 = vector.broadcast %134 : vector<8x1xf32> to vector<8x8xf32>
    %136 = arith.subf %132, %135 : vector<8x8xf32>
    %137 = math.exp %136 : vector<8x8xf32>
    %cst_84 = arith.constant dense<0.000000e+00> : vector<8xf32>
    %138 = vector.multi_reduction <add>, %137, %cst_84 [1] : vector<8x8xf32> to vector<8xf32>
    %139 = vector.shape_cast %138 : vector<8xf32> to vector<8x1xf32>
    %140 = tpu.reciprocal %139 {approx = true} : vector<8x1xf32> -> vector<8x1xf32>
    %141 = vector.broadcast %140 : vector<8x1xf32> to vector<8x8xf32>
    %142 = arith.mulf %137, %141 : vector<8x8xf32>
    %143 = arith.truncf %142 : vector<8x8xf32> to vector<8x8xbf16>
    %144 = arith.truncf %128 : vector<8x8xf32> to vector<8x8xbf16>
    %cst_85 = arith.constant dense<0.000000e+00> : vector<8x8xf32>
    %145 = tpu.matmul %143, %144, %cst_85 {dimension_numbers = #tpu.dot_dimension_numbers<[1], [0], [0], [1], [0, 0, 1, 1], [], []>} : vector<8x8xbf16>, vector<8x8xbf16>, vector<8x8xf32> -> vector<8x8xf32>
    %146 = arith.truncf %145 : vector<8x8xf32> to vector<8x8xbf16>
    %c3_86 = arith.constant 3 : index
    %c0_87 = arith.constant 0 : index
    %c0_88 = arith.constant 0 : index
    %147 = vector.load %arg8[%c3_86, %c0_87, %c0_88] : memref<4x8x32xbf16, #tpu.memory_space<vmem>>, vector<1x8x32xbf16>
    %148 = vector.shape_cast %147 : vector<1x8x32xbf16> to vector<8x32xbf16>
    %cst_89 = arith.constant dense<0.000000e+00> : vector<8x32xf32>
    %149 = tpu.matmul %146, %148, %cst_89 {dimension_numbers = #tpu.dot_dimension_numbers<[1], [0], [0], [1], [0, 0, 1, 1], [], []>} : vector<8x8xbf16>, vector<8x32xbf16>, vector<8x32xf32> -> vector<8x32xf32>
    %150 = arith.addf %119, %149 : vector<8x32xf32>
    %151 = arith.addf %1, %150 : vector<8x32xf32>
    %c0_90 = arith.constant 0 : index
    %c0_91 = arith.constant 0 : index
    %152 = vector.load %arg9[%c0_90, %c0_91] : memref<1x32xf32, #tpu.memory_space<vmem>>, vector<1x32xf32>
    %153 = vector.broadcast %152 : vector<1x32xf32> to vector<8x32xf32>
    %154 = arith.addf %151, %153 : vector<8x32xf32>
    %c0_92 = arith.constant 0 : index
    %c0_93 = arith.constant 0 : index
    %155 = vector.load %arg10[%c0_92, %c0_93] : memref<1x32xf32, #tpu.memory_space<vmem>>, vector<1x32xf32>
    %c0_94 = arith.constant 0 : index
    %c0_95 = arith.constant 0 : index
    %156 = vector.load %arg11[%c0_94, %c0_95] : memref<1x32xf32, #tpu.memory_space<vmem>>, vector<1x32xf32>
    %cst_96 = arith.constant dense<0.000000e+00> : vector<8xf32>
    %157 = vector.multi_reduction <add>, %154, %cst_96 [1] : vector<8x32xf32> to vector<8xf32>
    %158 = vector.shape_cast %157 : vector<8xf32> to vector<8x1xf32>
    %cst_97 = arith.constant 3.200000e+01 : f32
    %159 = vector.broadcast %cst_97 : f32 to vector<8x1xf32>
    %160 = arith.divf %158, %159 : vector<8x1xf32>
    %161 = vector.broadcast %160 : vector<8x1xf32> to vector<8x32xf32>
    %162 = arith.subf %154, %161 : vector<8x32xf32>
    %163 = arith.mulf %162, %162 : vector<8x32xf32>
    %cst_98 = arith.constant dense<0.000000e+00> : vector<8xf32>
    %164 = vector.multi_reduction <add>, %163, %cst_98 [1] : vector<8x32xf32> to vector<8xf32>
    %165 = vector.shape_cast %164 : vector<8xf32> to vector<8x1xf32>
    %cst_99 = arith.constant 3.200000e+01 : f32
    %166 = vector.broadcast %cst_99 : f32 to vector<8x1xf32>
    %167 = arith.divf %165, %166 : vector<8x1xf32>
    %cst_100 = arith.constant 9.99999974E-6 : f32
    %168 = vector.broadcast %cst_100 : f32 to vector<8x1xf32>
    %169 = arith.addf %167, %168 : vector<8x1xf32>
    %170 = math.rsqrt %169 : vector<8x1xf32>
    %171 = vector.broadcast %170 : vector<8x1xf32> to vector<8x32xf32>
    %172 = arith.mulf %162, %171 : vector<8x32xf32>
    %173 = vector.broadcast %155 : vector<1x32xf32> to vector<8x32xf32>
    %174 = arith.mulf %172, %173 : vector<8x32xf32>
    %175 = vector.broadcast %156 : vector<1x32xf32> to vector<8x32xf32>
    %176 = arith.addf %174, %175 : vector<8x32xf32>
    %177 = arith.truncf %176 : vector<8x32xf32> to vector<8x32xbf16>
    %c0_101 = arith.constant 0 : index
    %c0_102 = arith.constant 0 : index
    %178 = vector.load %arg12[%c0_101, %c0_102] : memref<32x128xbf16, #tpu.memory_space<vmem>>, vector<32x128xbf16>
    %cst_103 = arith.constant dense<0.000000e+00> : vector<8x128xf32>
    %179 = tpu.matmul %177, %178, %cst_103 {dimension_numbers = #tpu.dot_dimension_numbers<[1], [0], [0], [1], [0, 0, 1, 1], [], []>} : vector<8x32xbf16>, vector<32x128xbf16>, vector<8x128xf32> -> vector<8x128xf32>
    %c0_104 = arith.constant 0 : index
    %c0_105 = arith.constant 0 : index
    %180 = vector.load %arg13[%c0_104, %c0_105] : memref<1x128xf32, #tpu.memory_space<vmem>>, vector<1x128xf32>
    %181 = vector.broadcast %180 : vector<1x128xf32> to vector<8x128xf32>
    %182 = arith.addf %179, %181 : vector<8x128xf32>
    %cst_106 = arith.constant 0.000000e+00 : f32
    %183 = vector.broadcast %cst_106 : f32 to vector<8x128xf32>
    %184 = arith.maximumf %182, %183 : vector<8x128xf32>
    %185 = arith.truncf %184 : vector<8x128xf32> to vector<8x128xbf16>
    %c0_107 = arith.constant 0 : index
    %c0_108 = arith.constant 0 : index
    %186 = vector.load %arg14[%c0_107, %c0_108] : memref<128x32xbf16, #tpu.memory_space<vmem>>, vector<128x32xbf16>
    %cst_109 = arith.constant dense<0.000000e+00> : vector<8x32xf32>
    %187 = tpu.matmul %185, %186, %cst_109 {dimension_numbers = #tpu.dot_dimension_numbers<[1], [0], [0], [1], [0, 0, 1, 1], [], []>} : vector<8x128xbf16>, vector<128x32xbf16>, vector<8x32xf32> -> vector<8x32xf32>
    %c0_110 = arith.constant 0 : index
    %c0_111 = arith.constant 0 : index
    %188 = vector.load %arg15[%c0_110, %c0_111] : memref<1x32xf32, #tpu.memory_space<vmem>>, vector<1x32xf32>
    %189 = vector.broadcast %188 : vector<1x32xf32> to vector<8x32xf32>
    %190 = arith.addf %187, %189 : vector<8x32xf32>
    %191 = arith.addf %154, %190 : vector<8x32xf32>
    %192 = arith.truncf %191 : vector<8x32xf32> to vector<8x32xbf16>
    %cst_112 = arith.constant 0.000000e+00 : f32
    %193 = vector.broadcast %cst_112 : f32 to vector<5x32xf32>
    %c0_113 = arith.constant 0 : index
    %c0_114 = arith.constant 0 : index
    %c0_115 = arith.constant 0 : index
    %194 = vector.load %arg16[%c0_113, %c0_114, %c0_115] : memref<2x5x8xbf16, #tpu.memory_space<vmem>>, vector<1x5x8xbf16>
    %195 = vector.shape_cast %194 : vector<1x5x8xbf16> to vector<5x8xbf16>
    %cst_116 = arith.constant dense<0.000000e+00> : vector<5x32xf32>
    %196 = tpu.matmul %195, %192, %cst_116 {dimension_numbers = #tpu.dot_dimension_numbers<[1], [0], [0], [1], [0, 0, 1, 1], [], []>} : vector<5x8xbf16>, vector<8x32xbf16>, vector<5x32xf32> -> vector<5x32xf32>
    %197 = arith.truncf %196 : vector<5x32xf32> to vector<5x32xbf16>
    %c0_117 = arith.constant 0 : index
    %c0_118 = arith.constant 0 : index
    %c0_119 = arith.constant 0 : index
    %198 = vector.load %arg18[%c0_117, %c0_118, %c0_119] : memref<2x32x32xbf16, #tpu.memory_space<vmem>>, vector<1x32x32xbf16>
    %199 = vector.shape_cast %198 : vector<1x32x32xbf16> to vector<32x32xbf16>
    %cst_120 = arith.constant dense<0.000000e+00> : vector<5x32xf32>
    %200 = tpu.matmul %197, %199, %cst_120 {dimension_numbers = #tpu.dot_dimension_numbers<[1], [0], [0], [1], [0, 0, 1, 1], [], []>} : vector<5x32xbf16>, vector<32x32xbf16>, vector<5x32xf32> -> vector<5x32xf32>
    %201 = arith.addf %193, %200 : vector<5x32xf32>
    %c1_121 = arith.constant 1 : index
    %c0_122 = arith.constant 0 : index
    %c0_123 = arith.constant 0 : index
    %202 = vector.load %arg16[%c1_121, %c0_122, %c0_123] : memref<2x5x8xbf16, #tpu.memory_space<vmem>>, vector<1x5x8xbf16>
    %203 = vector.shape_cast %202 : vector<1x5x8xbf16> to vector<5x8xbf16>
    %cst_124 = arith.constant dense<0.000000e+00> : vector<5x32xf32>
    %204 = tpu.matmul %203, %192, %cst_124 {dimension_numbers = #tpu.dot_dimension_numbers<[1], [0], [0], [1], [0, 0, 1, 1], [], []>} : vector<5x8xbf16>, vector<8x32xbf16>, vector<5x32xf32> -> vector<5x32xf32>
    %205 = arith.truncf %204 : vector<5x32xf32> to vector<5x32xbf16>
    %c1_125 = arith.constant 1 : index
    %c0_126 = arith.constant 0 : index
    %c0_127 = arith.constant 0 : index
    %206 = vector.load %arg18[%c1_125, %c0_126, %c0_127] : memref<2x32x32xbf16, #tpu.memory_space<vmem>>, vector<1x32x32xbf16>
    %207 = vector.shape_cast %206 : vector<1x32x32xbf16> to vector<32x32xbf16>
    %cst_128 = arith.constant dense<0.000000e+00> : vector<5x32xf32>
    %208 = tpu.matmul %205, %207, %cst_128 {dimension_numbers = #tpu.dot_dimension_numbers<[1], [0], [0], [1], [0, 0, 1, 1], [], []>} : vector<5x32xbf16>, vector<32x32xbf16>, vector<5x32xf32> -> vector<5x32xf32>
    %209 = arith.addf %201, %208 : vector<5x32xf32>
    %c0_129 = arith.constant 0 : index
    %c0_130 = arith.constant 0 : index
    %210 = vector.load %arg19[%c0_129, %c0_130] : memref<1x32xf32, #tpu.memory_space<vmem>>, vector<1x32xf32>
    %211 = vector.broadcast %210 : vector<1x32xf32> to vector<5x32xf32>
    %212 = arith.addf %209, %211 : vector<5x32xf32>
    %c0_131 = arith.constant 0 : index
    %c0_132 = arith.constant 0 : index
    %213 = vector.load %arg20[%c0_131, %c0_132] : memref<5x5xf32, #tpu.memory_space<vmem>>, vector<5x5xf32>
    %c0_133 = arith.constant 0 : index
    %c0_134 = arith.constant 0 : index
    %214 = vector.load %arg21[%c0_133, %c0_134] : memref<1x32xf32, #tpu.memory_space<vmem>>, vector<1x32xf32>
    %c0_135 = arith.constant 0 : index
    %c0_136 = arith.constant 0 : index
    %215 = vector.load %arg22[%c0_135, %c0_136] : memref<1x32xf32, #tpu.memory_space<vmem>>, vector<1x32xf32>
    %cst_137 = arith.constant dense<0.000000e+00> : vector<5xf32>
    %216 = vector.multi_reduction <add>, %212, %cst_137 [1] : vector<5x32xf32> to vector<5xf32>
    %217 = vector.shape_cast %216 : vector<5xf32> to vector<5x1xf32>
    %cst_138 = arith.constant 3.200000e+01 : f32
    %218 = vector.broadcast %cst_138 : f32 to vector<5x1xf32>
    %219 = arith.divf %217, %218 : vector<5x1xf32>
    %220 = vector.broadcast %219 : vector<5x1xf32> to vector<5x32xf32>
    %221 = arith.subf %212, %220 : vector<5x32xf32>
    %222 = arith.mulf %221, %221 : vector<5x32xf32>
    %cst_139 = arith.constant dense<0.000000e+00> : vector<5xf32>
    %223 = vector.multi_reduction <add>, %222, %cst_139 [1] : vector<5x32xf32> to vector<5xf32>
    %224 = vector.shape_cast %223 : vector<5xf32> to vector<5x1xf32>
    %cst_140 = arith.constant 3.200000e+01 : f32
    %225 = vector.broadcast %cst_140 : f32 to vector<5x1xf32>
    %226 = arith.divf %224, %225 : vector<5x1xf32>
    %cst_141 = arith.constant 9.99999974E-6 : f32
    %227 = vector.broadcast %cst_141 : f32 to vector<5x1xf32>
    %228 = arith.addf %226, %227 : vector<5x1xf32>
    %229 = math.rsqrt %228 : vector<5x1xf32>
    %230 = vector.broadcast %229 : vector<5x1xf32> to vector<5x32xf32>
    %231 = arith.mulf %221, %230 : vector<5x32xf32>
    %232 = vector.broadcast %214 : vector<1x32xf32> to vector<5x32xf32>
    %233 = arith.mulf %231, %232 : vector<5x32xf32>
    %234 = vector.broadcast %215 : vector<1x32xf32> to vector<5x32xf32>
    %235 = arith.addf %233, %234 : vector<5x32xf32>
    %236 = arith.truncf %235 : vector<5x32xf32> to vector<5x32xbf16>
    %cst_142 = arith.constant 0.000000e+00 : f32
    %237 = vector.broadcast %cst_142 : f32 to vector<5x32xf32>
    %c0_143 = arith.constant 0 : index
    %c0_144 = arith.constant 0 : index
    %c0_145 = arith.constant 0 : index
    %238 = vector.load %arg23[%c0_143, %c0_144, %c0_145] : memref<4x32x8xbf16, #tpu.memory_space<vmem>>, vector<1x32x8xbf16>
    %239 = vector.shape_cast %238 : vector<1x32x8xbf16> to vector<32x8xbf16>
    %cst_146 = arith.constant dense<0.000000e+00> : vector<5x8xf32>
    %240 = tpu.matmul %236, %239, %cst_146 {dimension_numbers = #tpu.dot_dimension_numbers<[1], [0], [0], [1], [0, 0, 1, 1], [], []>} : vector<5x32xbf16>, vector<32x8xbf16>, vector<5x8xf32> -> vector<5x8xf32>
    %c0_147 = arith.constant 0 : index
    %c0_148 = arith.constant 0 : index
    %c0_149 = arith.constant 0 : index
    %241 = vector.load %arg24[%c0_147, %c0_148, %c0_149] : memref<4x32x8xbf16, #tpu.memory_space<vmem>>, vector<1x32x8xbf16>
    %242 = vector.shape_cast %241 : vector<1x32x8xbf16> to vector<32x8xbf16>
    %cst_150 = arith.constant dense<0.000000e+00> : vector<5x8xf32>
    %243 = tpu.matmul %236, %242, %cst_150 {dimension_numbers = #tpu.dot_dimension_numbers<[1], [0], [0], [1], [0, 0, 1, 1], [], []>} : vector<5x32xbf16>, vector<32x8xbf16>, vector<5x8xf32> -> vector<5x8xf32>
    %c0_151 = arith.constant 0 : index
    %c0_152 = arith.constant 0 : index
    %c0_153 = arith.constant 0 : index
    %244 = vector.load %arg25[%c0_151, %c0_152, %c0_153] : memref<4x32x8xbf16, #tpu.memory_space<vmem>>, vector<1x32x8xbf16>
    %245 = vector.shape_cast %244 : vector<1x32x8xbf16> to vector<32x8xbf16>
    %cst_154 = arith.constant dense<0.000000e+00> : vector<5x8xf32>
    %246 = tpu.matmul %236, %245, %cst_154 {dimension_numbers = #tpu.dot_dimension_numbers<[1], [0], [0], [1], [0, 0, 1, 1], [], []>} : vector<5x32xbf16>, vector<32x8xbf16>, vector<5x8xf32> -> vector<5x8xf32>
    %247 = arith.truncf %240 : vector<5x8xf32> to vector<5x8xbf16>
    %248 = arith.truncf %243 : vector<5x8xf32> to vector<5x8xbf16>
    %cst_155 = arith.constant dense<0.000000e+00> : vector<5x5xf32>
    %249 = tpu.matmul %247, %248, %cst_155 {dimension_numbers = #tpu.dot_dimension_numbers<[1], [1], [0], [0], [0, 0, 1, 0], [], []>} : vector<5x8xbf16>, vector<5x8xbf16>, vector<5x5xf32> -> vector<5x5xf32>
    %250 = arith.addf %249, %213 : vector<5x5xf32>
    %cst_156 = arith.constant dense<0xFF800000> : vector<5xf32>
    %251 = vector.multi_reduction <maximumf>, %250, %cst_156 [1] : vector<5x5xf32> to vector<5xf32>
    %252 = vector.shape_cast %251 : vector<5xf32> to vector<5x1xf32>
    %253 = vector.broadcast %252 : vector<5x1xf32> to vector<5x5xf32>
    %254 = arith.subf %250, %253 : vector<5x5xf32>
    %255 = math.exp %254 : vector<5x5xf32>
    %cst_157 = arith.constant dense<0.000000e+00> : vector<5xf32>
    %256 = vector.multi_reduction <add>, %255, %cst_157 [1] : vector<5x5xf32> to vector<5xf32>
    %257 = vector.shape_cast %256 : vector<5xf32> to vector<5x1xf32>
    %258 = tpu.reciprocal %257 {approx = true} : vector<5x1xf32> -> vector<5x1xf32>
    %259 = vector.broadcast %258 : vector<5x1xf32> to vector<5x5xf32>
    %260 = arith.mulf %255, %259 : vector<5x5xf32>
    %261 = arith.truncf %260 : vector<5x5xf32> to vector<5x5xbf16>
    %262 = arith.truncf %246 : vector<5x8xf32> to vector<5x8xbf16>
    %cst_158 = arith.constant dense<0.000000e+00> : vector<5x8xf32>
    %263 = tpu.matmul %261, %262, %cst_158 {dimension_numbers = #tpu.dot_dimension_numbers<[1], [0], [0], [1], [0, 0, 1, 1], [], []>} : vector<5x5xbf16>, vector<5x8xbf16>, vector<5x8xf32> -> vector<5x8xf32>
    %264 = arith.truncf %263 : vector<5x8xf32> to vector<5x8xbf16>
    %c0_159 = arith.constant 0 : index
    %c0_160 = arith.constant 0 : index
    %c0_161 = arith.constant 0 : index
    %265 = vector.load %arg26[%c0_159, %c0_160, %c0_161] : memref<4x8x32xbf16, #tpu.memory_space<vmem>>, vector<1x8x32xbf16>
    %266 = vector.shape_cast %265 : vector<1x8x32xbf16> to vector<8x32xbf16>
    %cst_162 = arith.constant dense<0.000000e+00> : vector<5x32xf32>
    %267 = tpu.matmul %264, %266, %cst_162 {dimension_numbers = #tpu.dot_dimension_numbers<[1], [0], [0], [1], [0, 0, 1, 1], [], []>} : vector<5x8xbf16>, vector<8x32xbf16>, vector<5x32xf32> -> vector<5x32xf32>
    %268 = arith.addf %237, %267 : vector<5x32xf32>
    %c1_163 = arith.constant 1 : index
    %c0_164 = arith.constant 0 : index
    %c0_165 = arith.constant 0 : index
    %269 = vector.load %arg23[%c1_163, %c0_164, %c0_165] : memref<4x32x8xbf16, #tpu.memory_space<vmem>>, vector<1x32x8xbf16>
    %270 = vector.shape_cast %269 : vector<1x32x8xbf16> to vector<32x8xbf16>
    %cst_166 = arith.constant dense<0.000000e+00> : vector<5x8xf32>
    %271 = tpu.matmul %236, %270, %cst_166 {dimension_numbers = #tpu.dot_dimension_numbers<[1], [0], [0], [1], [0, 0, 1, 1], [], []>} : vector<5x32xbf16>, vector<32x8xbf16>, vector<5x8xf32> -> vector<5x8xf32>
    %c1_167 = arith.constant 1 : index
    %c0_168 = arith.constant 0 : index
    %c0_169 = arith.constant 0 : index
    %272 = vector.load %arg24[%c1_167, %c0_168, %c0_169] : memref<4x32x8xbf16, #tpu.memory_space<vmem>>, vector<1x32x8xbf16>
    %273 = vector.shape_cast %272 : vector<1x32x8xbf16> to vector<32x8xbf16>
    %cst_170 = arith.constant dense<0.000000e+00> : vector<5x8xf32>
    %274 = tpu.matmul %236, %273, %cst_170 {dimension_numbers = #tpu.dot_dimension_numbers<[1], [0], [0], [1], [0, 0, 1, 1], [], []>} : vector<5x32xbf16>, vector<32x8xbf16>, vector<5x8xf32> -> vector<5x8xf32>
    %c1_171 = arith.constant 1 : index
    %c0_172 = arith.constant 0 : index
    %c0_173 = arith.constant 0 : index
    %275 = vector.load %arg25[%c1_171, %c0_172, %c0_173] : memref<4x32x8xbf16, #tpu.memory_space<vmem>>, vector<1x32x8xbf16>
    %276 = vector.shape_cast %275 : vector<1x32x8xbf16> to vector<32x8xbf16>
    %cst_174 = arith.constant dense<0.000000e+00> : vector<5x8xf32>
    %277 = tpu.matmul %236, %276, %cst_174 {dimension_numbers = #tpu.dot_dimension_numbers<[1], [0], [0], [1], [0, 0, 1, 1], [], []>} : vector<5x32xbf16>, vector<32x8xbf16>, vector<5x8xf32> -> vector<5x8xf32>
    %278 = arith.truncf %271 : vector<5x8xf32> to vector<5x8xbf16>
    %279 = arith.truncf %274 : vector<5x8xf32> to vector<5x8xbf16>
    %cst_175 = arith.constant dense<0.000000e+00> : vector<5x5xf32>
    %280 = tpu.matmul %278, %279, %cst_175 {dimension_numbers = #tpu.dot_dimension_numbers<[1], [1], [0], [0], [0, 0, 1, 0], [], []>} : vector<5x8xbf16>, vector<5x8xbf16>, vector<5x5xf32> -> vector<5x5xf32>
    %281 = arith.addf %280, %213 : vector<5x5xf32>
    %cst_176 = arith.constant dense<0xFF800000> : vector<5xf32>
    %282 = vector.multi_reduction <maximumf>, %281, %cst_176 [1] : vector<5x5xf32> to vector<5xf32>
    %283 = vector.shape_cast %282 : vector<5xf32> to vector<5x1xf32>
    %284 = vector.broadcast %283 : vector<5x1xf32> to vector<5x5xf32>
    %285 = arith.subf %281, %284 : vector<5x5xf32>
    %286 = math.exp %285 : vector<5x5xf32>
    %cst_177 = arith.constant dense<0.000000e+00> : vector<5xf32>
    %287 = vector.multi_reduction <add>, %286, %cst_177 [1] : vector<5x5xf32> to vector<5xf32>
    %288 = vector.shape_cast %287 : vector<5xf32> to vector<5x1xf32>
    %289 = tpu.reciprocal %288 {approx = true} : vector<5x1xf32> -> vector<5x1xf32>
    %290 = vector.broadcast %289 : vector<5x1xf32> to vector<5x5xf32>
    %291 = arith.mulf %286, %290 : vector<5x5xf32>
    %292 = arith.truncf %291 : vector<5x5xf32> to vector<5x5xbf16>
    %293 = arith.truncf %277 : vector<5x8xf32> to vector<5x8xbf16>
    %cst_178 = arith.constant dense<0.000000e+00> : vector<5x8xf32>
    %294 = tpu.matmul %292, %293, %cst_178 {dimension_numbers = #tpu.dot_dimension_numbers<[1], [0], [0], [1], [0, 0, 1, 1], [], []>} : vector<5x5xbf16>, vector<5x8xbf16>, vector<5x8xf32> -> vector<5x8xf32>
    %295 = arith.truncf %294 : vector<5x8xf32> to vector<5x8xbf16>
    %c1_179 = arith.constant 1 : index
    %c0_180 = arith.constant 0 : index
    %c0_181 = arith.constant 0 : index
    %296 = vector.load %arg26[%c1_179, %c0_180, %c0_181] : memref<4x8x32xbf16, #tpu.memory_space<vmem>>, vector<1x8x32xbf16>
    %297 = vector.shape_cast %296 : vector<1x8x32xbf16> to vector<8x32xbf16>
    %cst_182 = arith.constant dense<0.000000e+00> : vector<5x32xf32>
    %298 = tpu.matmul %295, %297, %cst_182 {dimension_numbers = #tpu.dot_dimension_numbers<[1], [0], [0], [1], [0, 0, 1, 1], [], []>} : vector<5x8xbf16>, vector<8x32xbf16>, vector<5x32xf32> -> vector<5x32xf32>
    %299 = arith.addf %268, %298 : vector<5x32xf32>
    %c2_183 = arith.constant 2 : index
    %c0_184 = arith.constant 0 : index
    %c0_185 = arith.constant 0 : index
    %300 = vector.load %arg23[%c2_183, %c0_184, %c0_185] : memref<4x32x8xbf16, #tpu.memory_space<vmem>>, vector<1x32x8xbf16>
    %301 = vector.shape_cast %300 : vector<1x32x8xbf16> to vector<32x8xbf16>
    %cst_186 = arith.constant dense<0.000000e+00> : vector<5x8xf32>
    %302 = tpu.matmul %236, %301, %cst_186 {dimension_numbers = #tpu.dot_dimension_numbers<[1], [0], [0], [1], [0, 0, 1, 1], [], []>} : vector<5x32xbf16>, vector<32x8xbf16>, vector<5x8xf32> -> vector<5x8xf32>
    %c2_187 = arith.constant 2 : index
    %c0_188 = arith.constant 0 : index
    %c0_189 = arith.constant 0 : index
    %303 = vector.load %arg24[%c2_187, %c0_188, %c0_189] : memref<4x32x8xbf16, #tpu.memory_space<vmem>>, vector<1x32x8xbf16>
    %304 = vector.shape_cast %303 : vector<1x32x8xbf16> to vector<32x8xbf16>
    %cst_190 = arith.constant dense<0.000000e+00> : vector<5x8xf32>
    %305 = tpu.matmul %236, %304, %cst_190 {dimension_numbers = #tpu.dot_dimension_numbers<[1], [0], [0], [1], [0, 0, 1, 1], [], []>} : vector<5x32xbf16>, vector<32x8xbf16>, vector<5x8xf32> -> vector<5x8xf32>
    %c2_191 = arith.constant 2 : index
    %c0_192 = arith.constant 0 : index
    %c0_193 = arith.constant 0 : index
    %306 = vector.load %arg25[%c2_191, %c0_192, %c0_193] : memref<4x32x8xbf16, #tpu.memory_space<vmem>>, vector<1x32x8xbf16>
    %307 = vector.shape_cast %306 : vector<1x32x8xbf16> to vector<32x8xbf16>
    %cst_194 = arith.constant dense<0.000000e+00> : vector<5x8xf32>
    %308 = tpu.matmul %236, %307, %cst_194 {dimension_numbers = #tpu.dot_dimension_numbers<[1], [0], [0], [1], [0, 0, 1, 1], [], []>} : vector<5x32xbf16>, vector<32x8xbf16>, vector<5x8xf32> -> vector<5x8xf32>
    %309 = arith.truncf %302 : vector<5x8xf32> to vector<5x8xbf16>
    %310 = arith.truncf %305 : vector<5x8xf32> to vector<5x8xbf16>
    %cst_195 = arith.constant dense<0.000000e+00> : vector<5x5xf32>
    %311 = tpu.matmul %309, %310, %cst_195 {dimension_numbers = #tpu.dot_dimension_numbers<[1], [1], [0], [0], [0, 0, 1, 0], [], []>} : vector<5x8xbf16>, vector<5x8xbf16>, vector<5x5xf32> -> vector<5x5xf32>
    %312 = arith.addf %311, %213 : vector<5x5xf32>
    %cst_196 = arith.constant dense<0xFF800000> : vector<5xf32>
    %313 = vector.multi_reduction <maximumf>, %312, %cst_196 [1] : vector<5x5xf32> to vector<5xf32>
    %314 = vector.shape_cast %313 : vector<5xf32> to vector<5x1xf32>
    %315 = vector.broadcast %314 : vector<5x1xf32> to vector<5x5xf32>
    %316 = arith.subf %312, %315 : vector<5x5xf32>
    %317 = math.exp %316 : vector<5x5xf32>
    %cst_197 = arith.constant dense<0.000000e+00> : vector<5xf32>
    %318 = vector.multi_reduction <add>, %317, %cst_197 [1] : vector<5x5xf32> to vector<5xf32>
    %319 = vector.shape_cast %318 : vector<5xf32> to vector<5x1xf32>
    %320 = tpu.reciprocal %319 {approx = true} : vector<5x1xf32> -> vector<5x1xf32>
    %321 = vector.broadcast %320 : vector<5x1xf32> to vector<5x5xf32>
    %322 = arith.mulf %317, %321 : vector<5x5xf32>
    %323 = arith.truncf %322 : vector<5x5xf32> to vector<5x5xbf16>
    %324 = arith.truncf %308 : vector<5x8xf32> to vector<5x8xbf16>
    %cst_198 = arith.constant dense<0.000000e+00> : vector<5x8xf32>
    %325 = tpu.matmul %323, %324, %cst_198 {dimension_numbers = #tpu.dot_dimension_numbers<[1], [0], [0], [1], [0, 0, 1, 1], [], []>} : vector<5x5xbf16>, vector<5x8xbf16>, vector<5x8xf32> -> vector<5x8xf32>
    %326 = arith.truncf %325 : vector<5x8xf32> to vector<5x8xbf16>
    %c2_199 = arith.constant 2 : index
    %c0_200 = arith.constant 0 : index
    %c0_201 = arith.constant 0 : index
    %327 = vector.load %arg26[%c2_199, %c0_200, %c0_201] : memref<4x8x32xbf16, #tpu.memory_space<vmem>>, vector<1x8x32xbf16>
    %328 = vector.shape_cast %327 : vector<1x8x32xbf16> to vector<8x32xbf16>
    %cst_202 = arith.constant dense<0.000000e+00> : vector<5x32xf32>
    %329 = tpu.matmul %326, %328, %cst_202 {dimension_numbers = #tpu.dot_dimension_numbers<[1], [0], [0], [1], [0, 0, 1, 1], [], []>} : vector<5x8xbf16>, vector<8x32xbf16>, vector<5x32xf32> -> vector<5x32xf32>
    %330 = arith.addf %299, %329 : vector<5x32xf32>
    %c3_203 = arith.constant 3 : index
    %c0_204 = arith.constant 0 : index
    %c0_205 = arith.constant 0 : index
    %331 = vector.load %arg23[%c3_203, %c0_204, %c0_205] : memref<4x32x8xbf16, #tpu.memory_space<vmem>>, vector<1x32x8xbf16>
    %332 = vector.shape_cast %331 : vector<1x32x8xbf16> to vector<32x8xbf16>
    %cst_206 = arith.constant dense<0.000000e+00> : vector<5x8xf32>
    %333 = tpu.matmul %236, %332, %cst_206 {dimension_numbers = #tpu.dot_dimension_numbers<[1], [0], [0], [1], [0, 0, 1, 1], [], []>} : vector<5x32xbf16>, vector<32x8xbf16>, vector<5x8xf32> -> vector<5x8xf32>
    %c3_207 = arith.constant 3 : index
    %c0_208 = arith.constant 0 : index
    %c0_209 = arith.constant 0 : index
    %334 = vector.load %arg24[%c3_207, %c0_208, %c0_209] : memref<4x32x8xbf16, #tpu.memory_space<vmem>>, vector<1x32x8xbf16>
    %335 = vector.shape_cast %334 : vector<1x32x8xbf16> to vector<32x8xbf16>
    %cst_210 = arith.constant dense<0.000000e+00> : vector<5x8xf32>
    %336 = tpu.matmul %236, %335, %cst_210 {dimension_numbers = #tpu.dot_dimension_numbers<[1], [0], [0], [1], [0, 0, 1, 1], [], []>} : vector<5x32xbf16>, vector<32x8xbf16>, vector<5x8xf32> -> vector<5x8xf32>
    %c3_211 = arith.constant 3 : index
    %c0_212 = arith.constant 0 : index
    %c0_213 = arith.constant 0 : index
    %337 = vector.load %arg25[%c3_211, %c0_212, %c0_213] : memref<4x32x8xbf16, #tpu.memory_space<vmem>>, vector<1x32x8xbf16>
    %338 = vector.shape_cast %337 : vector<1x32x8xbf16> to vector<32x8xbf16>
    %cst_214 = arith.constant dense<0.000000e+00> : vector<5x8xf32>
    %339 = tpu.matmul %236, %338, %cst_214 {dimension_numbers = #tpu.dot_dimension_numbers<[1], [0], [0], [1], [0, 0, 1, 1], [], []>} : vector<5x32xbf16>, vector<32x8xbf16>, vector<5x8xf32> -> vector<5x8xf32>
    %340 = arith.truncf %333 : vector<5x8xf32> to vector<5x8xbf16>
    %341 = arith.truncf %336 : vector<5x8xf32> to vector<5x8xbf16>
    %cst_215 = arith.constant dense<0.000000e+00> : vector<5x5xf32>
    %342 = tpu.matmul %340, %341, %cst_215 {dimension_numbers = #tpu.dot_dimension_numbers<[1], [1], [0], [0], [0, 0, 1, 0], [], []>} : vector<5x8xbf16>, vector<5x8xbf16>, vector<5x5xf32> -> vector<5x5xf32>
    %343 = arith.addf %342, %213 : vector<5x5xf32>
    %cst_216 = arith.constant dense<0xFF800000> : vector<5xf32>
    %344 = vector.multi_reduction <maximumf>, %343, %cst_216 [1] : vector<5x5xf32> to vector<5xf32>
    %345 = vector.shape_cast %344 : vector<5xf32> to vector<5x1xf32>
    %346 = vector.broadcast %345 : vector<5x1xf32> to vector<5x5xf32>
    %347 = arith.subf %343, %346 : vector<5x5xf32>
    %348 = math.exp %347 : vector<5x5xf32>
    %cst_217 = arith.constant dense<0.000000e+00> : vector<5xf32>
    %349 = vector.multi_reduction <add>, %348, %cst_217 [1] : vector<5x5xf32> to vector<5xf32>
    %350 = vector.shape_cast %349 : vector<5xf32> to vector<5x1xf32>
    %351 = tpu.reciprocal %350 {approx = true} : vector<5x1xf32> -> vector<5x1xf32>
    %352 = vector.broadcast %351 : vector<5x1xf32> to vector<5x5xf32>
    %353 = arith.mulf %348, %352 : vector<5x5xf32>
    %354 = arith.truncf %353 : vector<5x5xf32> to vector<5x5xbf16>
    %355 = arith.truncf %339 : vector<5x8xf32> to vector<5x8xbf16>
    %cst_218 = arith.constant dense<0.000000e+00> : vector<5x8xf32>
    %356 = tpu.matmul %354, %355, %cst_218 {dimension_numbers = #tpu.dot_dimension_numbers<[1], [0], [0], [1], [0, 0, 1, 1], [], []>} : vector<5x5xbf16>, vector<5x8xbf16>, vector<5x8xf32> -> vector<5x8xf32>
    %357 = arith.truncf %356 : vector<5x8xf32> to vector<5x8xbf16>
    %c3_219 = arith.constant 3 : index
    %c0_220 = arith.constant 0 : index
    %c0_221 = arith.constant 0 : index
    %358 = vector.load %arg26[%c3_219, %c0_220, %c0_221] : memref<4x8x32xbf16, #tpu.memory_space<vmem>>, vector<1x8x32xbf16>
    %359 = vector.shape_cast %358 : vector<1x8x32xbf16> to vector<8x32xbf16>
    %cst_222 = arith.constant dense<0.000000e+00> : vector<5x32xf32>
    %360 = tpu.matmul %357, %359, %cst_222 {dimension_numbers = #tpu.dot_dimension_numbers<[1], [0], [0], [1], [0, 0, 1, 1], [], []>} : vector<5x8xbf16>, vector<8x32xbf16>, vector<5x32xf32> -> vector<5x32xf32>
    %361 = arith.addf %330, %360 : vector<5x32xf32>
    %362 = arith.addf %212, %361 : vector<5x32xf32>
    %c0_223 = arith.constant 0 : index
    %c0_224 = arith.constant 0 : index
    %363 = vector.load %arg27[%c0_223, %c0_224] : memref<1x32xf32, #tpu.memory_space<vmem>>, vector<1x32xf32>
    %364 = vector.broadcast %363 : vector<1x32xf32> to vector<5x32xf32>
    %365 = arith.addf %362, %364 : vector<5x32xf32>
    %c0_225 = arith.constant 0 : index
    %c0_226 = arith.constant 0 : index
    %366 = vector.load %arg28[%c0_225, %c0_226] : memref<1x32xf32, #tpu.memory_space<vmem>>, vector<1x32xf32>
    %c0_227 = arith.constant 0 : index
    %c0_228 = arith.constant 0 : index
    %367 = vector.load %arg29[%c0_227, %c0_228] : memref<1x32xf32, #tpu.memory_space<vmem>>, vector<1x32xf32>
    %cst_229 = arith.constant dense<0.000000e+00> : vector<5xf32>
    %368 = vector.multi_reduction <add>, %365, %cst_229 [1] : vector<5x32xf32> to vector<5xf32>
    %369 = vector.shape_cast %368 : vector<5xf32> to vector<5x1xf32>
    %cst_230 = arith.constant 3.200000e+01 : f32
    %370 = vector.broadcast %cst_230 : f32 to vector<5x1xf32>
    %371 = arith.divf %369, %370 : vector<5x1xf32>
    %372 = vector.broadcast %371 : vector<5x1xf32> to vector<5x32xf32>
    %373 = arith.subf %365, %372 : vector<5x32xf32>
    %374 = arith.mulf %373, %373 : vector<5x32xf32>
    %cst_231 = arith.constant dense<0.000000e+00> : vector<5xf32>
    %375 = vector.multi_reduction <add>, %374, %cst_231 [1] : vector<5x32xf32> to vector<5xf32>
    %376 = vector.shape_cast %375 : vector<5xf32> to vector<5x1xf32>
    %cst_232 = arith.constant 3.200000e+01 : f32
    %377 = vector.broadcast %cst_232 : f32 to vector<5x1xf32>
    %378 = arith.divf %376, %377 : vector<5x1xf32>
    %cst_233 = arith.constant 9.99999974E-6 : f32
    %379 = vector.broadcast %cst_233 : f32 to vector<5x1xf32>
    %380 = arith.addf %378, %379 : vector<5x1xf32>
    %381 = math.rsqrt %380 : vector<5x1xf32>
    %382 = vector.broadcast %381 : vector<5x1xf32> to vector<5x32xf32>
    %383 = arith.mulf %373, %382 : vector<5x32xf32>
    %384 = vector.broadcast %366 : vector<1x32xf32> to vector<5x32xf32>
    %385 = arith.mulf %383, %384 : vector<5x32xf32>
    %386 = vector.broadcast %367 : vector<1x32xf32> to vector<5x32xf32>
    %387 = arith.addf %385, %386 : vector<5x32xf32>
    %388 = arith.truncf %387 : vector<5x32xf32> to vector<5x32xbf16>
    %c0_234 = arith.constant 0 : index
    %c0_235 = arith.constant 0 : index
    %389 = vector.load %arg30[%c0_234, %c0_235] : memref<32x128xbf16, #tpu.memory_space<vmem>>, vector<32x128xbf16>
    %cst_236 = arith.constant dense<0.000000e+00> : vector<5x128xf32>
    %390 = tpu.matmul %388, %389, %cst_236 {dimension_numbers = #tpu.dot_dimension_numbers<[1], [0], [0], [1], [0, 0, 1, 1], [], []>} : vector<5x32xbf16>, vector<32x128xbf16>, vector<5x128xf32> -> vector<5x128xf32>
    %c0_237 = arith.constant 0 : index
    %c0_238 = arith.constant 0 : index
    %391 = vector.load %arg31[%c0_237, %c0_238] : memref<1x128xf32, #tpu.memory_space<vmem>>, vector<1x128xf32>
    %392 = vector.broadcast %391 : vector<1x128xf32> to vector<5x128xf32>
    %393 = arith.addf %390, %392 : vector<5x128xf32>
    %cst_239 = arith.constant 0.000000e+00 : f32
    %394 = vector.broadcast %cst_239 : f32 to vector<5x128xf32>
    %395 = arith.maximumf %393, %394 : vector<5x128xf32>
    %396 = arith.truncf %395 : vector<5x128xf32> to vector<5x128xbf16>
    %c0_240 = arith.constant 0 : index
    %c0_241 = arith.constant 0 : index
    %397 = vector.load %arg32[%c0_240, %c0_241] : memref<128x32xbf16, #tpu.memory_space<vmem>>, vector<128x32xbf16>
    %cst_242 = arith.constant dense<0.000000e+00> : vector<5x32xf32>
    %398 = tpu.matmul %396, %397, %cst_242 {dimension_numbers = #tpu.dot_dimension_numbers<[1], [0], [0], [1], [0, 0, 1, 1], [], []>} : vector<5x128xbf16>, vector<128x32xbf16>, vector<5x32xf32> -> vector<5x32xf32>
    %c0_243 = arith.constant 0 : index
    %c0_244 = arith.constant 0 : index
    %399 = vector.load %arg33[%c0_243, %c0_244] : memref<1x32xf32, #tpu.memory_space<vmem>>, vector<1x32xf32>
    %400 = vector.broadcast %399 : vector<1x32xf32> to vector<5x32xf32>
    %401 = arith.addf %398, %400 : vector<5x32xf32>
    %402 = arith.addf %365, %401 : vector<5x32xf32>
    %c0_245 = arith.constant 0 : index
    %c0_246 = arith.constant 0 : index
    %403 = vector.load %arg17[%c0_245, %c0_246] : memref<8x5xf32, #tpu.memory_space<vmem>>, vector<8x5xf32>
    %cst_247 = arith.constant dense<0.000000e+00> : vector<8x32xf32>
    %404 = tpu.matmul %403, %402, %cst_247 {dimension_numbers = #tpu.dot_dimension_numbers<[1], [0], [0], [1], [0, 0, 1, 1], [], []>} : vector<8x5xf32>, vector<5x32xf32>, vector<8x32xf32> -> vector<8x32xf32>
    %405 = arith.addf %191, %404 : vector<8x32xf32>
    %c0_248 = arith.constant 0 : index
    %c0_249 = arith.constant 0 : index
    %406 = vector.load %arg34[%c0_248, %c0_249] : memref<1x32xf32, #tpu.memory_space<vmem>>, vector<1x32xf32>
    %c0_250 = arith.constant 0 : index
    %c0_251 = arith.constant 0 : index
    %407 = vector.load %arg35[%c0_250, %c0_251] : memref<1x32xf32, #tpu.memory_space<vmem>>, vector<1x32xf32>
    %cst_252 = arith.constant dense<0.000000e+00> : vector<8xf32>
    %408 = vector.multi_reduction <add>, %405, %cst_252 [1] : vector<8x32xf32> to vector<8xf32>
    %409 = vector.shape_cast %408 : vector<8xf32> to vector<8x1xf32>
    %cst_253 = arith.constant 3.200000e+01 : f32
    %410 = vector.broadcast %cst_253 : f32 to vector<8x1xf32>
    %411 = arith.divf %409, %410 : vector<8x1xf32>
    %412 = vector.broadcast %411 : vector<8x1xf32> to vector<8x32xf32>
    %413 = arith.subf %405, %412 : vector<8x32xf32>
    %414 = arith.mulf %413, %413 : vector<8x32xf32>
    %cst_254 = arith.constant dense<0.000000e+00> : vector<8xf32>
    %415 = vector.multi_reduction <add>, %414, %cst_254 [1] : vector<8x32xf32> to vector<8xf32>
    %416 = vector.shape_cast %415 : vector<8xf32> to vector<8x1xf32>
    %cst_255 = arith.constant 3.200000e+01 : f32
    %417 = vector.broadcast %cst_255 : f32 to vector<8x1xf32>
    %418 = arith.divf %416, %417 : vector<8x1xf32>
    %cst_256 = arith.constant 9.99999974E-6 : f32
    %419 = vector.broadcast %cst_256 : f32 to vector<8x1xf32>
    %420 = arith.addf %418, %419 : vector<8x1xf32>
    %421 = math.rsqrt %420 : vector<8x1xf32>
    %422 = vector.broadcast %421 : vector<8x1xf32> to vector<8x32xf32>
    %423 = arith.mulf %413, %422 : vector<8x32xf32>
    %424 = vector.broadcast %406 : vector<1x32xf32> to vector<8x32xf32>
    %425 = arith.mulf %423, %424 : vector<8x32xf32>
    %426 = vector.broadcast %407 : vector<1x32xf32> to vector<8x32xf32>
    %427 = arith.addf %425, %426 : vector<8x32xf32>
    %428 = arith.truncf %427 : vector<8x32xf32> to vector<8x32xbf16>
    %cst_257 = arith.constant 0.000000e+00 : f32
    %429 = vector.broadcast %cst_257 : f32 to vector<8x32xf32>
    %c0_258 = arith.constant 0 : index
    %c0_259 = arith.constant 0 : index
    %c0_260 = arith.constant 0 : index
    %430 = vector.load %arg36[%c0_258, %c0_259, %c0_260] : memref<4x32x8xbf16, #tpu.memory_space<vmem>>, vector<1x32x8xbf16>
    %431 = vector.shape_cast %430 : vector<1x32x8xbf16> to vector<32x8xbf16>
    %cst_261 = arith.constant dense<0.000000e+00> : vector<8x8xf32>
    %432 = tpu.matmul %428, %431, %cst_261 {dimension_numbers = #tpu.dot_dimension_numbers<[1], [0], [0], [1], [0, 0, 1, 1], [], []>} : vector<8x32xbf16>, vector<32x8xbf16>, vector<8x8xf32> -> vector<8x8xf32>
    %c0_262 = arith.constant 0 : index
    %c0_263 = arith.constant 0 : index
    %c0_264 = arith.constant 0 : index
    %433 = vector.load %arg37[%c0_262, %c0_263, %c0_264] : memref<4x32x8xbf16, #tpu.memory_space<vmem>>, vector<1x32x8xbf16>
    %434 = vector.shape_cast %433 : vector<1x32x8xbf16> to vector<32x8xbf16>
    %cst_265 = arith.constant dense<0.000000e+00> : vector<8x8xf32>
    %435 = tpu.matmul %428, %434, %cst_265 {dimension_numbers = #tpu.dot_dimension_numbers<[1], [0], [0], [1], [0, 0, 1, 1], [], []>} : vector<8x32xbf16>, vector<32x8xbf16>, vector<8x8xf32> -> vector<8x8xf32>
    %c0_266 = arith.constant 0 : index
    %c0_267 = arith.constant 0 : index
    %c0_268 = arith.constant 0 : index
    %436 = vector.load %arg38[%c0_266, %c0_267, %c0_268] : memref<4x32x8xbf16, #tpu.memory_space<vmem>>, vector<1x32x8xbf16>
    %437 = vector.shape_cast %436 : vector<1x32x8xbf16> to vector<32x8xbf16>
    %cst_269 = arith.constant dense<0.000000e+00> : vector<8x8xf32>
    %438 = tpu.matmul %428, %437, %cst_269 {dimension_numbers = #tpu.dot_dimension_numbers<[1], [0], [0], [1], [0, 0, 1, 1], [], []>} : vector<8x32xbf16>, vector<32x8xbf16>, vector<8x8xf32> -> vector<8x8xf32>
    %439 = arith.truncf %432 : vector<8x8xf32> to vector<8x8xbf16>
    %440 = arith.truncf %435 : vector<8x8xf32> to vector<8x8xbf16>
    %cst_270 = arith.constant dense<0.000000e+00> : vector<8x8xf32>
    %441 = tpu.matmul %439, %440, %cst_270 {dimension_numbers = #tpu.dot_dimension_numbers<[1], [1], [0], [0], [0, 0, 1, 0], [], []>} : vector<8x8xbf16>, vector<8x8xbf16>, vector<8x8xf32> -> vector<8x8xf32>
    %442 = arith.addf %441, %2 : vector<8x8xf32>
    %cst_271 = arith.constant dense<0xFF800000> : vector<8xf32>
    %443 = vector.multi_reduction <maximumf>, %442, %cst_271 [1] : vector<8x8xf32> to vector<8xf32>
    %444 = vector.shape_cast %443 : vector<8xf32> to vector<8x1xf32>
    %445 = vector.broadcast %444 : vector<8x1xf32> to vector<8x8xf32>
    %446 = arith.subf %442, %445 : vector<8x8xf32>
    %447 = math.exp %446 : vector<8x8xf32>
    %cst_272 = arith.constant dense<0.000000e+00> : vector<8xf32>
    %448 = vector.multi_reduction <add>, %447, %cst_272 [1] : vector<8x8xf32> to vector<8xf32>
    %449 = vector.shape_cast %448 : vector<8xf32> to vector<8x1xf32>
    %450 = tpu.reciprocal %449 {approx = true} : vector<8x1xf32> -> vector<8x1xf32>
    %451 = vector.broadcast %450 : vector<8x1xf32> to vector<8x8xf32>
    %452 = arith.mulf %447, %451 : vector<8x8xf32>
    %453 = arith.truncf %452 : vector<8x8xf32> to vector<8x8xbf16>
    %454 = arith.truncf %438 : vector<8x8xf32> to vector<8x8xbf16>
    %cst_273 = arith.constant dense<0.000000e+00> : vector<8x8xf32>
    %455 = tpu.matmul %453, %454, %cst_273 {dimension_numbers = #tpu.dot_dimension_numbers<[1], [0], [0], [1], [0, 0, 1, 1], [], []>} : vector<8x8xbf16>, vector<8x8xbf16>, vector<8x8xf32> -> vector<8x8xf32>
    %456 = arith.truncf %455 : vector<8x8xf32> to vector<8x8xbf16>
    %c0_274 = arith.constant 0 : index
    %c0_275 = arith.constant 0 : index
    %c0_276 = arith.constant 0 : index
    %457 = vector.load %arg39[%c0_274, %c0_275, %c0_276] : memref<4x8x32xbf16, #tpu.memory_space<vmem>>, vector<1x8x32xbf16>
    %458 = vector.shape_cast %457 : vector<1x8x32xbf16> to vector<8x32xbf16>
    %cst_277 = arith.constant dense<0.000000e+00> : vector<8x32xf32>
    %459 = tpu.matmul %456, %458, %cst_277 {dimension_numbers = #tpu.dot_dimension_numbers<[1], [0], [0], [1], [0, 0, 1, 1], [], []>} : vector<8x8xbf16>, vector<8x32xbf16>, vector<8x32xf32> -> vector<8x32xf32>
    %460 = arith.addf %429, %459 : vector<8x32xf32>
    %c1_278 = arith.constant 1 : index
    %c0_279 = arith.constant 0 : index
    %c0_280 = arith.constant 0 : index
    %461 = vector.load %arg36[%c1_278, %c0_279, %c0_280] : memref<4x32x8xbf16, #tpu.memory_space<vmem>>, vector<1x32x8xbf16>
    %462 = vector.shape_cast %461 : vector<1x32x8xbf16> to vector<32x8xbf16>
    %cst_281 = arith.constant dense<0.000000e+00> : vector<8x8xf32>
    %463 = tpu.matmul %428, %462, %cst_281 {dimension_numbers = #tpu.dot_dimension_numbers<[1], [0], [0], [1], [0, 0, 1, 1], [], []>} : vector<8x32xbf16>, vector<32x8xbf16>, vector<8x8xf32> -> vector<8x8xf32>
    %c1_282 = arith.constant 1 : index
    %c0_283 = arith.constant 0 : index
    %c0_284 = arith.constant 0 : index
    %464 = vector.load %arg37[%c1_282, %c0_283, %c0_284] : memref<4x32x8xbf16, #tpu.memory_space<vmem>>, vector<1x32x8xbf16>
    %465 = vector.shape_cast %464 : vector<1x32x8xbf16> to vector<32x8xbf16>
    %cst_285 = arith.constant dense<0.000000e+00> : vector<8x8xf32>
    %466 = tpu.matmul %428, %465, %cst_285 {dimension_numbers = #tpu.dot_dimension_numbers<[1], [0], [0], [1], [0, 0, 1, 1], [], []>} : vector<8x32xbf16>, vector<32x8xbf16>, vector<8x8xf32> -> vector<8x8xf32>
    %c1_286 = arith.constant 1 : index
    %c0_287 = arith.constant 0 : index
    %c0_288 = arith.constant 0 : index
    %467 = vector.load %arg38[%c1_286, %c0_287, %c0_288] : memref<4x32x8xbf16, #tpu.memory_space<vmem>>, vector<1x32x8xbf16>
    %468 = vector.shape_cast %467 : vector<1x32x8xbf16> to vector<32x8xbf16>
    %cst_289 = arith.constant dense<0.000000e+00> : vector<8x8xf32>
    %469 = tpu.matmul %428, %468, %cst_289 {dimension_numbers = #tpu.dot_dimension_numbers<[1], [0], [0], [1], [0, 0, 1, 1], [], []>} : vector<8x32xbf16>, vector<32x8xbf16>, vector<8x8xf32> -> vector<8x8xf32>
    %470 = arith.truncf %463 : vector<8x8xf32> to vector<8x8xbf16>
    %471 = arith.truncf %466 : vector<8x8xf32> to vector<8x8xbf16>
    %cst_290 = arith.constant dense<0.000000e+00> : vector<8x8xf32>
    %472 = tpu.matmul %470, %471, %cst_290 {dimension_numbers = #tpu.dot_dimension_numbers<[1], [1], [0], [0], [0, 0, 1, 0], [], []>} : vector<8x8xbf16>, vector<8x8xbf16>, vector<8x8xf32> -> vector<8x8xf32>
    %473 = arith.addf %472, %2 : vector<8x8xf32>
    %cst_291 = arith.constant dense<0xFF800000> : vector<8xf32>
    %474 = vector.multi_reduction <maximumf>, %473, %cst_291 [1] : vector<8x8xf32> to vector<8xf32>
    %475 = vector.shape_cast %474 : vector<8xf32> to vector<8x1xf32>
    %476 = vector.broadcast %475 : vector<8x1xf32> to vector<8x8xf32>
    %477 = arith.subf %473, %476 : vector<8x8xf32>
    %478 = math.exp %477 : vector<8x8xf32>
    %cst_292 = arith.constant dense<0.000000e+00> : vector<8xf32>
    %479 = vector.multi_reduction <add>, %478, %cst_292 [1] : vector<8x8xf32> to vector<8xf32>
    %480 = vector.shape_cast %479 : vector<8xf32> to vector<8x1xf32>
    %481 = tpu.reciprocal %480 {approx = true} : vector<8x1xf32> -> vector<8x1xf32>
    %482 = vector.broadcast %481 : vector<8x1xf32> to vector<8x8xf32>
    %483 = arith.mulf %478, %482 : vector<8x8xf32>
    %484 = arith.truncf %483 : vector<8x8xf32> to vector<8x8xbf16>
    %485 = arith.truncf %469 : vector<8x8xf32> to vector<8x8xbf16>
    %cst_293 = arith.constant dense<0.000000e+00> : vector<8x8xf32>
    %486 = tpu.matmul %484, %485, %cst_293 {dimension_numbers = #tpu.dot_dimension_numbers<[1], [0], [0], [1], [0, 0, 1, 1], [], []>} : vector<8x8xbf16>, vector<8x8xbf16>, vector<8x8xf32> -> vector<8x8xf32>
    %487 = arith.truncf %486 : vector<8x8xf32> to vector<8x8xbf16>
    %c1_294 = arith.constant 1 : index
    %c0_295 = arith.constant 0 : index
    %c0_296 = arith.constant 0 : index
    %488 = vector.load %arg39[%c1_294, %c0_295, %c0_296] : memref<4x8x32xbf16, #tpu.memory_space<vmem>>, vector<1x8x32xbf16>
    %489 = vector.shape_cast %488 : vector<1x8x32xbf16> to vector<8x32xbf16>
    %cst_297 = arith.constant dense<0.000000e+00> : vector<8x32xf32>
    %490 = tpu.matmul %487, %489, %cst_297 {dimension_numbers = #tpu.dot_dimension_numbers<[1], [0], [0], [1], [0, 0, 1, 1], [], []>} : vector<8x8xbf16>, vector<8x32xbf16>, vector<8x32xf32> -> vector<8x32xf32>
    %491 = arith.addf %460, %490 : vector<8x32xf32>
    %c2_298 = arith.constant 2 : index
    %c0_299 = arith.constant 0 : index
    %c0_300 = arith.constant 0 : index
    %492 = vector.load %arg36[%c2_298, %c0_299, %c0_300] : memref<4x32x8xbf16, #tpu.memory_space<vmem>>, vector<1x32x8xbf16>
    %493 = vector.shape_cast %492 : vector<1x32x8xbf16> to vector<32x8xbf16>
    %cst_301 = arith.constant dense<0.000000e+00> : vector<8x8xf32>
    %494 = tpu.matmul %428, %493, %cst_301 {dimension_numbers = #tpu.dot_dimension_numbers<[1], [0], [0], [1], [0, 0, 1, 1], [], []>} : vector<8x32xbf16>, vector<32x8xbf16>, vector<8x8xf32> -> vector<8x8xf32>
    %c2_302 = arith.constant 2 : index
    %c0_303 = arith.constant 0 : index
    %c0_304 = arith.constant 0 : index
    %495 = vector.load %arg37[%c2_302, %c0_303, %c0_304] : memref<4x32x8xbf16, #tpu.memory_space<vmem>>, vector<1x32x8xbf16>
    %496 = vector.shape_cast %495 : vector<1x32x8xbf16> to vector<32x8xbf16>
    %cst_305 = arith.constant dense<0.000000e+00> : vector<8x8xf32>
    %497 = tpu.matmul %428, %496, %cst_305 {dimension_numbers = #tpu.dot_dimension_numbers<[1], [0], [0], [1], [0, 0, 1, 1], [], []>} : vector<8x32xbf16>, vector<32x8xbf16>, vector<8x8xf32> -> vector<8x8xf32>
    %c2_306 = arith.constant 2 : index
    %c0_307 = arith.constant 0 : index
    %c0_308 = arith.constant 0 : index
    %498 = vector.load %arg38[%c2_306, %c0_307, %c0_308] : memref<4x32x8xbf16, #tpu.memory_space<vmem>>, vector<1x32x8xbf16>
    %499 = vector.shape_cast %498 : vector<1x32x8xbf16> to vector<32x8xbf16>
    %cst_309 = arith.constant dense<0.000000e+00> : vector<8x8xf32>
    %500 = tpu.matmul %428, %499, %cst_309 {dimension_numbers = #tpu.dot_dimension_numbers<[1], [0], [0], [1], [0, 0, 1, 1], [], []>} : vector<8x32xbf16>, vector<32x8xbf16>, vector<8x8xf32> -> vector<8x8xf32>
    %501 = arith.truncf %494 : vector<8x8xf32> to vector<8x8xbf16>
    %502 = arith.truncf %497 : vector<8x8xf32> to vector<8x8xbf16>
    %cst_310 = arith.constant dense<0.000000e+00> : vector<8x8xf32>
    %503 = tpu.matmul %501, %502, %cst_310 {dimension_numbers = #tpu.dot_dimension_numbers<[1], [1], [0], [0], [0, 0, 1, 0], [], []>} : vector<8x8xbf16>, vector<8x8xbf16>, vector<8x8xf32> -> vector<8x8xf32>
    %504 = arith.addf %503, %2 : vector<8x8xf32>
    %cst_311 = arith.constant dense<0xFF800000> : vector<8xf32>
    %505 = vector.multi_reduction <maximumf>, %504, %cst_311 [1] : vector<8x8xf32> to vector<8xf32>
    %506 = vector.shape_cast %505 : vector<8xf32> to vector<8x1xf32>
    %507 = vector.broadcast %506 : vector<8x1xf32> to vector<8x8xf32>
    %508 = arith.subf %504, %507 : vector<8x8xf32>
    %509 = math.exp %508 : vector<8x8xf32>
    %cst_312 = arith.constant dense<0.000000e+00> : vector<8xf32>
    %510 = vector.multi_reduction <add>, %509, %cst_312 [1] : vector<8x8xf32> to vector<8xf32>
    %511 = vector.shape_cast %510 : vector<8xf32> to vector<8x1xf32>
    %512 = tpu.reciprocal %511 {approx = true} : vector<8x1xf32> -> vector<8x1xf32>
    %513 = vector.broadcast %512 : vector<8x1xf32> to vector<8x8xf32>
    %514 = arith.mulf %509, %513 : vector<8x8xf32>
    %515 = arith.truncf %514 : vector<8x8xf32> to vector<8x8xbf16>
    %516 = arith.truncf %500 : vector<8x8xf32> to vector<8x8xbf16>
    %cst_313 = arith.constant dense<0.000000e+00> : vector<8x8xf32>
    %517 = tpu.matmul %515, %516, %cst_313 {dimension_numbers = #tpu.dot_dimension_numbers<[1], [0], [0], [1], [0, 0, 1, 1], [], []>} : vector<8x8xbf16>, vector<8x8xbf16>, vector<8x8xf32> -> vector<8x8xf32>
    %518 = arith.truncf %517 : vector<8x8xf32> to vector<8x8xbf16>
    %c2_314 = arith.constant 2 : index
    %c0_315 = arith.constant 0 : index
    %c0_316 = arith.constant 0 : index
    %519 = vector.load %arg39[%c2_314, %c0_315, %c0_316] : memref<4x8x32xbf16, #tpu.memory_space<vmem>>, vector<1x8x32xbf16>
    %520 = vector.shape_cast %519 : vector<1x8x32xbf16> to vector<8x32xbf16>
    %cst_317 = arith.constant dense<0.000000e+00> : vector<8x32xf32>
    %521 = tpu.matmul %518, %520, %cst_317 {dimension_numbers = #tpu.dot_dimension_numbers<[1], [0], [0], [1], [0, 0, 1, 1], [], []>} : vector<8x8xbf16>, vector<8x32xbf16>, vector<8x32xf32> -> vector<8x32xf32>
    %522 = arith.addf %491, %521 : vector<8x32xf32>
    %c3_318 = arith.constant 3 : index
    %c0_319 = arith.constant 0 : index
    %c0_320 = arith.constant 0 : index
    %523 = vector.load %arg36[%c3_318, %c0_319, %c0_320] : memref<4x32x8xbf16, #tpu.memory_space<vmem>>, vector<1x32x8xbf16>
    %524 = vector.shape_cast %523 : vector<1x32x8xbf16> to vector<32x8xbf16>
    %cst_321 = arith.constant dense<0.000000e+00> : vector<8x8xf32>
    %525 = tpu.matmul %428, %524, %cst_321 {dimension_numbers = #tpu.dot_dimension_numbers<[1], [0], [0], [1], [0, 0, 1, 1], [], []>} : vector<8x32xbf16>, vector<32x8xbf16>, vector<8x8xf32> -> vector<8x8xf32>
    %c3_322 = arith.constant 3 : index
    %c0_323 = arith.constant 0 : index
    %c0_324 = arith.constant 0 : index
    %526 = vector.load %arg37[%c3_322, %c0_323, %c0_324] : memref<4x32x8xbf16, #tpu.memory_space<vmem>>, vector<1x32x8xbf16>
    %527 = vector.shape_cast %526 : vector<1x32x8xbf16> to vector<32x8xbf16>
    %cst_325 = arith.constant dense<0.000000e+00> : vector<8x8xf32>
    %528 = tpu.matmul %428, %527, %cst_325 {dimension_numbers = #tpu.dot_dimension_numbers<[1], [0], [0], [1], [0, 0, 1, 1], [], []>} : vector<8x32xbf16>, vector<32x8xbf16>, vector<8x8xf32> -> vector<8x8xf32>
    %c3_326 = arith.constant 3 : index
    %c0_327 = arith.constant 0 : index
    %c0_328 = arith.constant 0 : index
    %529 = vector.load %arg38[%c3_326, %c0_327, %c0_328] : memref<4x32x8xbf16, #tpu.memory_space<vmem>>, vector<1x32x8xbf16>
    %530 = vector.shape_cast %529 : vector<1x32x8xbf16> to vector<32x8xbf16>
    %cst_329 = arith.constant dense<0.000000e+00> : vector<8x8xf32>
    %531 = tpu.matmul %428, %530, %cst_329 {dimension_numbers = #tpu.dot_dimension_numbers<[1], [0], [0], [1], [0, 0, 1, 1], [], []>} : vector<8x32xbf16>, vector<32x8xbf16>, vector<8x8xf32> -> vector<8x8xf32>
    %532 = arith.truncf %525 : vector<8x8xf32> to vector<8x8xbf16>
    %533 = arith.truncf %528 : vector<8x8xf32> to vector<8x8xbf16>
    %cst_330 = arith.constant dense<0.000000e+00> : vector<8x8xf32>
    %534 = tpu.matmul %532, %533, %cst_330 {dimension_numbers = #tpu.dot_dimension_numbers<[1], [1], [0], [0], [0, 0, 1, 0], [], []>} : vector<8x8xbf16>, vector<8x8xbf16>, vector<8x8xf32> -> vector<8x8xf32>
    %535 = arith.addf %534, %2 : vector<8x8xf32>
    %cst_331 = arith.constant dense<0xFF800000> : vector<8xf32>
    %536 = vector.multi_reduction <maximumf>, %535, %cst_331 [1] : vector<8x8xf32> to vector<8xf32>
    %537 = vector.shape_cast %536 : vector<8xf32> to vector<8x1xf32>
    %538 = vector.broadcast %537 : vector<8x1xf32> to vector<8x8xf32>
    %539 = arith.subf %535, %538 : vector<8x8xf32>
    %540 = math.exp %539 : vector<8x8xf32>
    %cst_332 = arith.constant dense<0.000000e+00> : vector<8xf32>
    %541 = vector.multi_reduction <add>, %540, %cst_332 [1] : vector<8x8xf32> to vector<8xf32>
    %542 = vector.shape_cast %541 : vector<8xf32> to vector<8x1xf32>
    %543 = tpu.reciprocal %542 {approx = true} : vector<8x1xf32> -> vector<8x1xf32>
    %544 = vector.broadcast %543 : vector<8x1xf32> to vector<8x8xf32>
    %545 = arith.mulf %540, %544 : vector<8x8xf32>
    %546 = arith.truncf %545 : vector<8x8xf32> to vector<8x8xbf16>
    %547 = arith.truncf %531 : vector<8x8xf32> to vector<8x8xbf16>
    %cst_333 = arith.constant dense<0.000000e+00> : vector<8x8xf32>
    %548 = tpu.matmul %546, %547, %cst_333 {dimension_numbers = #tpu.dot_dimension_numbers<[1], [0], [0], [1], [0, 0, 1, 1], [], []>} : vector<8x8xbf16>, vector<8x8xbf16>, vector<8x8xf32> -> vector<8x8xf32>
    %549 = arith.truncf %548 : vector<8x8xf32> to vector<8x8xbf16>
    %c3_334 = arith.constant 3 : index
    %c0_335 = arith.constant 0 : index
    %c0_336 = arith.constant 0 : index
    %550 = vector.load %arg39[%c3_334, %c0_335, %c0_336] : memref<4x8x32xbf16, #tpu.memory_space<vmem>>, vector<1x8x32xbf16>
    %551 = vector.shape_cast %550 : vector<1x8x32xbf16> to vector<8x32xbf16>
    %cst_337 = arith.constant dense<0.000000e+00> : vector<8x32xf32>
    %552 = tpu.matmul %549, %551, %cst_337 {dimension_numbers = #tpu.dot_dimension_numbers<[1], [0], [0], [1], [0, 0, 1, 1], [], []>} : vector<8x8xbf16>, vector<8x32xbf16>, vector<8x32xf32> -> vector<8x32xf32>
    %553 = arith.addf %522, %552 : vector<8x32xf32>
    %554 = arith.addf %405, %553 : vector<8x32xf32>
    %c0_338 = arith.constant 0 : index
    %c0_339 = arith.constant 0 : index
    %555 = vector.load %arg40[%c0_338, %c0_339] : memref<1x32xf32, #tpu.memory_space<vmem>>, vector<1x32xf32>
    %556 = vector.broadcast %555 : vector<1x32xf32> to vector<8x32xf32>
    %557 = arith.addf %554, %556 : vector<8x32xf32>
    %c0_340 = arith.constant 0 : index
    %c0_341 = arith.constant 0 : index
    %558 = vector.load %arg41[%c0_340, %c0_341] : memref<1x32xf32, #tpu.memory_space<vmem>>, vector<1x32xf32>
    %c0_342 = arith.constant 0 : index
    %c0_343 = arith.constant 0 : index
    %559 = vector.load %arg42[%c0_342, %c0_343] : memref<1x32xf32, #tpu.memory_space<vmem>>, vector<1x32xf32>
    %cst_344 = arith.constant dense<0.000000e+00> : vector<8xf32>
    %560 = vector.multi_reduction <add>, %557, %cst_344 [1] : vector<8x32xf32> to vector<8xf32>
    %561 = vector.shape_cast %560 : vector<8xf32> to vector<8x1xf32>
    %cst_345 = arith.constant 3.200000e+01 : f32
    %562 = vector.broadcast %cst_345 : f32 to vector<8x1xf32>
    %563 = arith.divf %561, %562 : vector<8x1xf32>
    %564 = vector.broadcast %563 : vector<8x1xf32> to vector<8x32xf32>
    %565 = arith.subf %557, %564 : vector<8x32xf32>
    %566 = arith.mulf %565, %565 : vector<8x32xf32>
    %cst_346 = arith.constant dense<0.000000e+00> : vector<8xf32>
    %567 = vector.multi_reduction <add>, %566, %cst_346 [1] : vector<8x32xf32> to vector<8xf32>
    %568 = vector.shape_cast %567 : vector<8xf32> to vector<8x1xf32>
    %cst_347 = arith.constant 3.200000e+01 : f32
    %569 = vector.broadcast %cst_347 : f32 to vector<8x1xf32>
    %570 = arith.divf %568, %569 : vector<8x1xf32>
    %cst_348 = arith.constant 9.99999974E-6 : f32
    %571 = vector.broadcast %cst_348 : f32 to vector<8x1xf32>
    %572 = arith.addf %570, %571 : vector<8x1xf32>
    %573 = math.rsqrt %572 : vector<8x1xf32>
    %574 = vector.broadcast %573 : vector<8x1xf32> to vector<8x32xf32>
    %575 = arith.mulf %565, %574 : vector<8x32xf32>
    %576 = vector.broadcast %558 : vector<1x32xf32> to vector<8x32xf32>
    %577 = arith.mulf %575, %576 : vector<8x32xf32>
    %578 = vector.broadcast %559 : vector<1x32xf32> to vector<8x32xf32>
    %579 = arith.addf %577, %578 : vector<8x32xf32>
    %580 = arith.truncf %579 : vector<8x32xf32> to vector<8x32xbf16>
    %c0_349 = arith.constant 0 : index
    %c0_350 = arith.constant 0 : index
    %581 = vector.load %arg43[%c0_349, %c0_350] : memref<32x128xbf16, #tpu.memory_space<vmem>>, vector<32x128xbf16>
    %cst_351 = arith.constant dense<0.000000e+00> : vector<8x128xf32>
    %582 = tpu.matmul %580, %581, %cst_351 {dimension_numbers = #tpu.dot_dimension_numbers<[1], [0], [0], [1], [0, 0, 1, 1], [], []>} : vector<8x32xbf16>, vector<32x128xbf16>, vector<8x128xf32> -> vector<8x128xf32>
    %c0_352 = arith.constant 0 : index
    %c0_353 = arith.constant 0 : index
    %583 = vector.load %arg44[%c0_352, %c0_353] : memref<1x128xf32, #tpu.memory_space<vmem>>, vector<1x128xf32>
    %584 = vector.broadcast %583 : vector<1x128xf32> to vector<8x128xf32>
    %585 = arith.addf %582, %584 : vector<8x128xf32>
    %cst_354 = arith.constant 0.000000e+00 : f32
    %586 = vector.broadcast %cst_354 : f32 to vector<8x128xf32>
    %587 = arith.maximumf %585, %586 : vector<8x128xf32>
    %588 = arith.truncf %587 : vector<8x128xf32> to vector<8x128xbf16>
    %c0_355 = arith.constant 0 : index
    %c0_356 = arith.constant 0 : index
    %589 = vector.load %arg45[%c0_355, %c0_356] : memref<128x32xbf16, #tpu.memory_space<vmem>>, vector<128x32xbf16>
    %cst_357 = arith.constant dense<0.000000e+00> : vector<8x32xf32>
    %590 = tpu.matmul %588, %589, %cst_357 {dimension_numbers = #tpu.dot_dimension_numbers<[1], [0], [0], [1], [0, 0, 1, 1], [], []>} : vector<8x128xbf16>, vector<128x32xbf16>, vector<8x32xf32> -> vector<8x32xf32>
    %c0_358 = arith.constant 0 : index
    %c0_359 = arith.constant 0 : index
    %591 = vector.load %arg46[%c0_358, %c0_359] : memref<1x32xf32, #tpu.memory_space<vmem>>, vector<1x32xf32>
    %592 = vector.broadcast %591 : vector<1x32xf32> to vector<8x32xf32>
    %593 = arith.addf %590, %592 : vector<8x32xf32>
    %594 = arith.addf %557, %593 : vector<8x32xf32>
    %c0_360 = arith.constant 0 : index
    %c0_361 = arith.constant 0 : index
    %c0_362 = arith.constant 0 : index
    %595 = vector.load %arg47[%c0_360, %c0_361, %c0_362] : memref<1x8x32xf32, #tpu.memory_space<vmem>>, vector<1x8x32xf32>
    %596 = vector.shape_cast %595 : vector<1x8x32xf32> to vector<8x32xf32>
    %597 = vector.shape_cast %594 : vector<8x32xf32> to vector<1x8x32xf32>
    tpu.vector_store %arg47[%c0_360, %c0_361, %c0_362], %597 {strides = array<i32>} : memref<1x8x32xf32, #tpu.memory_space<vmem>>, vector<1x8x32xf32>,
    return
  }
  func.func @transform_0(%arg0: i32) -> (i32, i32, i32) {
    %c0_i32 = arith.constant 0 : i32
    %c0_i32_0 = arith.constant 0 : i32
    %c0_i32_1 = arith.constant 0 : i32
    return %arg0, %c0_i32, %c0_i32_0 : i32, i32, i32
  }
  func.func @transform_1(%arg0: i32) -> (i32, i32) {
    %c0_i32 = arith.constant 0 : i32
    %c0_i32_0 = arith.constant 0 : i32
    %c0_i32_1 = arith.constant 0 : i32
    return %c0_i32, %c0_i32_0 : i32, i32
  }
  func.func @transform_2(%arg0: i32) -> (i32, i32) {
    %c0_i32 = arith.constant 0 : i32
    %c0_i32_0 = arith.constant 0 : i32
    %c0_i32_1 = arith.constant 0 : i32
    return %c0_i32, %c0_i32_0 : i32, i32
  }
  func.func @transform_3(%arg0: i32) -> (i32, i32) {
    %c0_i32 = arith.constant 0 : i32
    %c0_i32_0 = arith.constant 0 : i32
    %c0_i32_1 = arith.constant 0 : i32
    return %c0_i32, %c0_i32_0 : i32, i32
  }
  func.func @transform_4(%arg0: i32) -> (i32, i32, i32) {
    %c0_i32 = arith.constant 0 : i32
    %c0_i32_0 = arith.constant 0 : i32
    %c0_i32_1 = arith.constant 0 : i32
    %c0_i32_2 = arith.constant 0 : i32
    return %c0_i32, %c0_i32_0, %c0_i32_1 : i32, i32, i32
  }
  func.func @transform_5(%arg0: i32) -> (i32, i32, i32) {
    %c0_i32 = arith.constant 0 : i32
    %c0_i32_0 = arith.constant 0 : i32
    %c0_i32_1 = arith.constant 0 : i32
    %c0_i32_2 = arith.constant 0 : i32
    return %c0_i32, %c0_i32_0, %c0_i32_1 : i32, i32, i32
  }
  func.func @transform_6(%arg0: i32) -> (i32, i32, i32) {
    %c0_i32 = arith.constant 0 : i32
    %c0_i32_0 = arith.constant 0 : i32
    %c0_i32_1 = arith.constant 0 : i32
    %c0_i32_2 = arith.constant 0 : i32
    return %c0_i32, %c0_i32_0, %c0_i32_1 : i32, i32, i32
  }
  func.func @transform_7(%arg0: i32) -> (i32, i32, i32) {
    %c0_i32 = arith.constant 0 : i32
    %c0_i32_0 = arith.constant 0 : i32
    %c0_i32_1 = arith.constant 0 : i32
    %c0_i32_2 = arith.constant 0 : i32
    return %c0_i32, %c0_i32_0, %c0_i32_1 : i32, i32, i32
  }
  func.func @transform_8(%arg0: i32) -> (i32, i32) {
    %c0_i32 = arith.constant 0 : i32
    %c0_i32_0 = arith.constant 0 : i32
    %c0_i32_1 = arith.constant 0 : i32
    return %c0_i32, %c0_i32_0 : i32, i32
  }
  func.func @transform_9(%arg0: i32) -> (i32, i32) {
    %c0_i32 = arith.constant 0 : i32
    %c0_i32_0 = arith.constant 0 : i32
    %c0_i32_1 = arith.constant 0 : i32
    return %c0_i32, %c0_i32_0 : i32, i32
  }
  func.func @transform_10(%arg0: i32) -> (i32, i32) {
    %c0_i32 = arith.constant 0 : i32
    %c0_i32_0 = arith.constant 0 : i32
    %c0_i32_1 = arith.constant 0 : i32
    return %c0_i32, %c0_i32_0 : i32, i32
  }
  func.func @transform_11(%arg0: i32) -> (i32, i32) {
    %c0_i32 = arith.constant 0 : i32
    %c0_i32_0 = arith.constant 0 : i32
    %c0_i32_1 = arith.constant 0 : i32
    return %c0_i32, %c0_i32_0 : i32, i32
  }
  func.func @transform_12(%arg0: i32) -> (i32, i32) {
    %c0_i32 = arith.constant 0 : i32
    %c0_i32_0 = arith.constant 0 : i32
    %c0_i32_1 = arith.constant 0 : i32
    return %c0_i32, %c0_i32_0 : i32, i32
  }
  func.func @transform_13(%arg0: i32) -> (i32, i32) {
    %c0_i32 = arith.constant 0 : i32
    %c0_i32_0 = arith.constant 0 : i32
    %c0_i32_1 = arith.constant 0 : i32
    return %c0_i32, %c0_i32_0 : i32, i32
  }
  func.func @transform_14(%arg0: i32) -> (i32, i32) {
    %c0_i32 = arith.constant 0 : i32
    %c0_i32_0 = arith.constant 0 : i32
    %c0_i32_1 = arith.constant 0 : i32
    return %c0_i32, %c0_i32_0 : i32, i32
  }
  func.func @transform_15(%arg0: i32) -> (i32, i32, i32) {
    %c0_i32 = arith.constant 0 : i32
    %c0_i32_0 = arith.constant 0 : i32
    %c0_i32_1 = arith.constant 0 : i32
    %c0_i32_2 = arith.constant 0 : i32
    return %c0_i32, %c0_i32_0, %c0_i32_1 : i32, i32, i32
  }
  func.func @transform_16(%arg0: i32) -> (i32, i32) {
    %c0_i32 = arith.constant 0 : i32
    %c0_i32_0 = arith.constant 0 : i32
    %c0_i32_1 = arith.constant 0 : i32
    return %c0_i32, %c0_i32_0 : i32, i32
  }
  func.func @transform_17(%arg0: i32) -> (i32, i32, i32) {
    %c0_i32 = arith.constant 0 : i32
    %c0_i32_0 = arith.constant 0 : i32
    %c0_i32_1 = arith.constant 0 : i32
    %c0_i32_2 = arith.constant 0 : i32
    return %c0_i32, %c0_i32_0, %c0_i32_1 : i32, i32, i32
  }
  func.func @transform_18(%arg0: i32) -> (i32, i32) {
    %c0_i32 = arith.constant 0 : i32
    %c0_i32_0 = arith.constant 0 : i32
    %c0_i32_1 = arith.constant 0 : i32
    return %c0_i32, %c0_i32_0 : i32, i32
  }
  func.func @transform_19(%arg0: i32) -> (i32, i32) {
    %c0_i32 = arith.constant 0 : i32
    %c0_i32_0 = arith.constant 0 : i32
    %c0_i32_1 = arith.constant 0 : i32
    return %c0_i32, %c0_i32_0 : i32, i32
  }
  func.func @transform_20(%arg0: i32) -> (i32, i32) {
    %c0_i32 = arith.constant 0 : i32
    %c0_i32_0 = arith.constant 0 : i32
    %c0_i32_1 = arith.constant 0 : i32
    return %c0_i32, %c0_i32_0 : i32, i32
  }
  func.func @transform_21(%arg0: i32) -> (i32, i32) {
    %c0_i32 = arith.constant 0 : i32
    %c0_i32_0 = arith.constant 0 : i32
    %c0_i32_1 = arith.constant 0 : i32
    return %c0_i32, %c0_i32_0 : i32, i32
  }
  func.func @transform_22(%arg0: i32) -> (i32, i32, i32) {
    %c0_i32 = arith.constant 0 : i32
    %c0_i32_0 = arith.constant 0 : i32
    %c0_i32_1 = arith.constant 0 : i32
    %c0_i32_2 = arith.constant 0 : i32
    return %c0_i32, %c0_i32_0, %c0_i32_1 : i32, i32, i32
  }
  func.func @transform_23(%arg0: i32) -> (i32, i32, i32) {
    %c0_i32 = arith.constant 0 : i32
    %c0_i32_0 = arith.constant 0 : i32
    %c0_i32_1 = arith.constant 0 : i32
    %c0_i32_2 = arith.constant 0 : i32
    return %c0_i32, %c0_i32_0, %c0_i32_1 : i32, i32, i32
  }
  func.func @transform_24(%arg0: i32) -> (i32, i32, i32) {
    %c0_i32 = arith.constant 0 : i32
    %c0_i32_0 = arith.constant 0 : i32
    %c0_i32_1 = arith.constant 0 : i32
    %c0_i32_2 = arith.constant 0 : i32
    return %c0_i32, %c0_i32_0, %c0_i32_1 : i32, i32, i32
  }
  func.func @transform_25(%arg0: i32) -> (i32, i32, i32) {
    %c0_i32 = arith.constant 0 : i32
    %c0_i32_0 = arith.constant 0 : i32
    %c0_i32_1 = arith.constant 0 : i32
    %c0_i32_2 = arith.constant 0 : i32
    return %c0_i32, %c0_i32_0, %c0_i32_1 : i32, i32, i32
  }
  func.func @transform_26(%arg0: i32) -> (i32, i32) {
    %c0_i32 = arith.constant 0 : i32
    %c0_i32_0 = arith.constant 0 : i32
    %c0_i32_1 = arith.constant 0 : i32
    return %c0_i32, %c0_i32_0 : i32, i32
  }
  func.func @transform_27(%arg0: i32) -> (i32, i32) {
    %c0_i32 = arith.constant 0 : i32
    %c0_i32_0 = arith.constant 0 : i32
    %c0_i32_1 = arith.constant 0 : i32
    return %c0_i32, %c0_i32_0 : i32, i32
  }
  func.func @transform_28(%arg0: i32) -> (i32, i32) {
    %c0_i32 = arith.constant 0 : i32
    %c0_i32_0 = arith.constant 0 : i32
    %c0_i32_1 = arith.constant 0 : i32
    return %c0_i32, %c0_i32_0 : i32, i32
  }
  func.func @transform_29(%arg0: i32) -> (i32, i32) {
    %c0_i32 = arith.constant 0 : i32
    %c0_i32_0 = arith.constant 0 : i32
    %c0_i32_1 = arith.constant 0 : i32
    return %c0_i32, %c0_i32_0 : i32, i32
  }
  func.func @transform_30(%arg0: i32) -> (i32, i32) {
    %c0_i32 = arith.constant 0 : i32
    %c0_i32_0 = arith.constant 0 : i32
    %c0_i32_1 = arith.constant 0 : i32
    return %c0_i32, %c0_i32_0 : i32, i32
  }
  func.func @transform_31(%arg0: i32) -> (i32, i32) {
    %c0_i32 = arith.constant 0 : i32
    %c0_i32_0 = arith.constant 0 : i32
    %c0_i32_1 = arith.constant 0 : i32
    return %c0_i32, %c0_i32_0 : i32, i32
  }
  func.func @transform_32(%arg0: i32) -> (i32, i32) {
    %c0_i32 = arith.constant 0 : i32
    %c0_i32_0 = arith.constant 0 : i32
    %c0_i32_1 = arith.constant 0 : i32
    return %c0_i32, %c0_i32_0 : i32, i32
  }
  func.func @transform_33(%arg0: i32) -> (i32, i32) {
    %c0_i32 = arith.constant 0 : i32
    %c0_i32_0 = arith.constant 0 : i32
    %c0_i32_1 = arith.constant 0 : i32
    return %c0_i32, %c0_i32_0 : i32, i32
  }
  func.func @transform_34(%arg0: i32) -> (i32, i32) {
    %c0_i32 = arith.constant 0 : i32
    %c0_i32_0 = arith.constant 0 : i32
    %c0_i32_1 = arith.constant 0 : i32
    return %c0_i32, %c0_i32_0 : i32, i32
  }
  func.func @transform_35(%arg0: i32) -> (i32, i32, i32) {
    %c0_i32 = arith.constant 0 : i32
    %c0_i32_0 = arith.constant 0 : i32
    %c0_i32_1 = arith.constant 0 : i32
    %c0_i32_2 = arith.constant 0 : i32
    return %c0_i32, %c0_i32_0, %c0_i32_1 : i32, i32, i32
  }
  func.func @transform_36(%arg0: i32) -> (i32, i32, i32) {
    %c0_i32 = arith.constant 0 : i32
    %c0_i32_0 = arith.constant 0 : i32
    %c0_i32_1 = arith.constant 0 : i32
    %c0_i32_2 = arith.constant 0 : i32
    return %c0_i32, %c0_i32_0, %c0_i32_1 : i32, i32, i32
  }
  func.func @transform_37(%arg0: i32) -> (i32, i32, i32) {
    %c0_i32 = arith.constant 0 : i32
    %c0_i32_0 = arith.constant 0 : i32
    %c0_i32_1 = arith.constant 0 : i32
    %c0_i32_2 = arith.constant 0 : i32
    return %c0_i32, %c0_i32_0, %c0_i32_1 : i32, i32, i32
  }
  func.func @transform_38(%arg0: i32) -> (i32, i32, i32) {
    %c0_i32 = arith.constant 0 : i32
    %c0_i32_0 = arith.constant 0 : i32
    %c0_i32_1 = arith.constant 0 : i32
    %c0_i32_2 = arith.constant 0 : i32
    return %c0_i32, %c0_i32_0, %c0_i32_1 : i32, i32, i32
  }
  func.func @transform_39(%arg0: i32) -> (i32, i32) {
    %c0_i32 = arith.constant 0 : i32
    %c0_i32_0 = arith.constant 0 : i32
    %c0_i32_1 = arith.constant 0 : i32
    return %c0_i32, %c0_i32_0 : i32, i32
  }
  func.func @transform_40(%arg0: i32) -> (i32, i32) {
    %c0_i32 = arith.constant 0 : i32
    %c0_i32_0 = arith.constant 0 : i32
    %c0_i32_1 = arith.constant 0 : i32
    return %c0_i32, %c0_i32_0 : i32, i32
  }
  func.func @transform_41(%arg0: i32) -> (i32, i32) {
    %c0_i32 = arith.constant 0 : i32
    %c0_i32_0 = arith.constant 0 : i32
    %c0_i32_1 = arith.constant 0 : i32
    return %c0_i32, %c0_i32_0 : i32, i32
  }
  func.func @transform_42(%arg0: i32) -> (i32, i32) {
    %c0_i32 = arith.constant 0 : i32
    %c0_i32_0 = arith.constant 0 : i32
    %c0_i32_1 = arith.constant 0 : i32
    return %c0_i32, %c0_i32_0 : i32, i32
  }
  func.func @transform_43(%arg0: i32) -> (i32, i32) {
    %c0_i32 = arith.constant 0 : i32
    %c0_i32_0 = arith.constant 0 : i32
    %c0_i32_1 = arith.constant 0 : i32
    return %c0_i32, %c0_i32_0 : i32, i32
  }
  func.func @transform_44(%arg0: i32) -> (i32, i32) {
    %c0_i32 = arith.constant 0 : i32
    %c0_i32_0 = arith.constant 0 : i32
    %c0_i32_1 = arith.constant 0 : i32
    return %c0_i32, %c0_i32_0 : i32, i32
  }
  func.func @transform_45(%arg0: i32) -> (i32, i32) {
    %c0_i32 = arith.constant 0 : i32
    %c0_i32_0 = arith.constant 0 : i32
    %c0_i32_1 = arith.constant 0 : i32
    return %c0_i32, %c0_i32_0 : i32, i32
  }
  func.func @transform_46(%arg0: i32) -> (i32, i32, i32) {
    %c0_i32 = arith.constant 0 : i32
    %c0_i32_0 = arith.constant 0 : i32
    %c0_i32_1 = arith.constant 0 : i32
    return %arg0, %c0_i32, %c0_i32_0 : i32, i32, i32
  }
}

</mosaic_0001>

<bundles_post_ra>
// kernel: tpu_custom_call.1
= control target key start
LH: loop header
LB: loop body
LE: loop exit
PB: predicated region body
PF: predicated region fallthrough
CT: control target
= control target key end

     0   :  { %s5195_s6 = smov 1   ;;  %s5196_s10 = smov 2   ;;  %s5978_s0 = inlined_call_operand.smem [shape: u32[47], index: -1, kind: input, shape index: {}] }
   0x1   :  { %s5251_s5 = sld [smem:[%s5978_s0]]   ;;  %s5197_s14 = smov 3  }
   0x2   :  { %s5256_s9 = sld [smem:[%s5978_s0 + %s5195_s6]]   ;;  %s5198_s18 = smov 4  }
   0x3   :  { %s5261_s13 = sld [smem:[%s5978_s0 + %s5196_s10]]   ;;  %s5199_s22 = smov 5  }
   0x4   :  { %s5266_s17 = sld [smem:[%s5978_s0 + %s5197_s14]]   ;;  %s5200_s26 = smov 6  }
   0x5   :  { %s5271_s21 = sld [smem:[%s5978_s0 + %s5198_s18]]   ;;  %s5201_s30 = smov 7  }
   0x6   :  { %s5276_s25 = sld [smem:[%s5978_s0 + %s5199_s22]]   ;;  %s5202_s4 = smov 8  }
   0x7   :  { %6006 = sst [smem:[#allocation5_spill]] %s5251_s5  ;;  %s5203_s10 = smov 9  }
   0x8   :  { %6007 = sst [smem:[#allocation6_spill]] %s5256_s9  ;;  %s5204_s15 = smov 10  }
   0x9   :  { %6008 = sst [smem:[#allocation7_spill]] %s5261_s13  ;;  %s5205_s20 = smov 11  }
   0xa   :  { %s5281_s29 = sld [smem:[%s5978_s0 + %s5200_s26]]   ;;  %s5206_s26 = smov 12  }
   0xb   :  { %s5286_s3 = sld [smem:[%s5978_s0 + %s5201_s30]]   ;;  %s5207_s1 = smov 13  }
   0xc   :  { %s5291_s8 = sld [smem:[%s5978_s0 + %s5202_s4]]   ;;  %s5208_s7 = smov 14  }
   0xd   :  { %s5296_s14 = sld [smem:[%s5978_s0 + %s5203_s10]]   ;;  %s5210_s22 = smov 16  }
   0xe   :  { %s5301_s19 = sld [smem:[%s5978_s0 + %s5204_s15]]   ;;  %s5209_s15 = smov 15  }
   0xf   :  { %s5306_s24 = sld [smem:[%s5978_s0 + %s5205_s20]]   ;;  %s5211_s28 = smov 17  }
  0x10   :  { %s5311_s30 = sld [smem:[%s5978_s0 + %s5206_s26]]  }
  0x11   :  { %6009 = sst [smem:[#allocation8_spill]] %s5286_s3 }
  0x12   :  { %6010 = sst [smem:[#allocation9_spill]] %s5291_s8 }
  0x13   :  { %6011 = sst [smem:[#allocation10_spill]] %s5296_s14 }
  0x14   :  { %s5316_s6 = sld [smem:[%s5978_s0 + %s5207_s1]]  }
  0x15   :  { %s5321_s12 = sld [smem:[%s5978_s0 + %s5208_s7]]   ;;  %s5212_s7 = smov 18  }
  0x16   :  { %s5326_s20 = sld [smem:[%s5978_s0 + %s5209_s15]]   ;;  %s5213_s15 = smov 19  }
  0x17   :  { %s5331_s27 = sld [smem:[%s5978_s0 + %s5210_s22]]   ;;  %s5214_s22 = smov 20  }
  0x18   :  { %s5336_s4 = sld [smem:[%s5978_s0 + %s5211_s28]]   ;;  %s5215_s28 = smov 21  }
  0x1a   :  { %6012 = sst [smem:[#allocation11_spill]] %s5316_s6 }
  0x1b   :  { %6013 = sst [smem:[#allocation12_spill]] %s5321_s12 }
  0x1c   :  { %6014 = sst [smem:[#allocation13_spill]] %s5326_s20 }
  0x1d   :  { %6015 = sst [smem:[#allocation14_spill]] %s5331_s27 }
  0x1e   :  { %6016 = sst [smem:[#allocation15_spill]] %s5336_s4 }
  0x1f   :  { %s5341_s12 = sld [smem:[%s5978_s0 + %s5212_s7]]   ;;  %s5216_s7 = smov 22  }
  0x20   :  { %s5346_s20 = sld [smem:[%s5978_s0 + %s5213_s15]]   ;;  %s5217_s15 = smov 23  }
  0x21   :  { %s5351_s27 = sld [smem:[%s5978_s0 + %s5214_s22]]   ;;  %s5218_s22 = smov 24  }
  0x22   :  { %s5356_s4 = sld [smem:[%s5978_s0 + %s5215_s28]]   ;;  %s5219_s28 = smov 25  }
  0x25   :  { %6017 = sst [smem:[#allocation16_spill]] %s5341_s12 }
  0x26   :  { %6018 = sst [smem:[#allocation17_spill]] %s5346_s20 }
  0x27   :  { %6019 = sst [smem:[#allocation18_spill]] %s5351_s27 }
  0x28   :  { %6020 = sst [smem:[#allocation19_spill]] %s5356_s4 }
  0x29   :  { %s5361_s12 = sld [smem:[%s5978_s0 + %s5216_s7]]   ;;  %s5220_s7 = smov 26  }
  0x2a   :  { %s5366_s20 = sld [smem:[%s5978_s0 + %s5217_s15]]   ;;  %s5221_s15 = smov 27  }
  0x2b   :  { %s5371_s27 = sld [smem:[%s5978_s0 + %s5218_s22]]   ;;  %s5222_s22 = smov 28  }
  0x2c   :  { %s5376_s4 = sld [smem:[%s5978_s0 + %s5219_s28]]   ;;  %s5223_s28 = smov 29  }
  0x2f   :  { %6021 = sst [smem:[#allocation20_spill]] %s5361_s12 }
  0x30   :  { %6022 = sst [smem:[#allocation21_spill]] %s5366_s20 }
  0x31   :  { %6023 = sst [smem:[#allocation22_spill]] %s5371_s27 }
  0x32   :  { %6024 = sst [smem:[#allocation23_spill]] %s5376_s4 }
  0x33   :  { %s5381_s12 = sld [smem:[%s5978_s0 + %s5220_s7]]   ;;  %s5224_s7 = smov 30  }
  0x34   :  { %s5386_s20 = sld [smem:[%s5978_s0 + %s5221_s15]]   ;;  %s5225_s15 = smov 31  }
  0x35   :  { %s5391_s27 = sld [smem:[%s5978_s0 + %s5222_s22]]   ;;  %s5226_s22 = smov 32  }
  0x36   :  { %s5396_s4 = sld [smem:[%s5978_s0 + %s5223_s28]]   ;;  %s5227_s28 = smov 33  }
  0x39   :  { %6025 = sst [smem:[#allocation24_spill]] %s5381_s12 }
  0x3a   :  { %6026 = sst [smem:[#allocation25_spill]] %s5386_s20 }
  0x3b   :  { %6027 = sst [smem:[#allocation26_spill]] %s5391_s27 }
  0x3c   :  { %6028 = sst [smem:[#allocation27_spill]] %s5396_s4 }
  0x3d   :  { %s5401_s12 = sld [smem:[%s5978_s0 + %s5224_s7]]   ;;  %s5228_s7 = smov 34  }
  0x3e   :  { %s5406_s20 = sld [smem:[%s5978_s0 + %s5225_s15]]   ;;  %s5229_s15 = smov 35  }
  0x3f   :  { %s5411_s27 = sld [smem:[%s5978_s0 + %s5226_s22]]   ;;  %s5230_s22 = smov 36  }
  0x40   :  { %s5416_s4 = sld [smem:[%s5978_s0 + %s5227_s28]]   ;;  %s5231_s28 = smov 37  }
  0x43   :  { %6029 = sst [smem:[#allocation28_spill]] %s5401_s12 }
  0x44   :  { %6030 = sst [smem:[#allocation29_spill]] %s5406_s20 }
  0x45   :  { %6031 = sst [smem:[#allocation30_spill]] %s5411_s27 }
  0x46   :  { %6032 = sst [smem:[#allocation31_spill]] %s5416_s4 }
  0x47   :  { %s5421_s12 = sld [smem:[%s5978_s0 + %s5228_s7]]   ;;  %s5232_s7 = smov 38  }
  0x48   :  { %s5426_s20 = sld [smem:[%s5978_s0 + %s5229_s15]]   ;;  %s5233_s15 = smov 39  }
  0x49   :  { %s5431_s27 = sld [smem:[%s5978_s0 + %s5230_s22]]   ;;  %s5234_s22 = smov 40  }
  0x4a   :  { %s5436_s4 = sld [smem:[%s5978_s0 + %s5231_s28]]   ;;  %s5235_s28 = smov 41  }
  0x4d   :  { %6033 = sst [smem:[#allocation32_spill]] %s5421_s12 }
  0x4e   :  { %6034 = sst [smem:[#allocation33_spill]] %s5426_s20 }
  0x4f   :  { %6035 = sst [smem:[#allocation34_spill]] %s5431_s27 }
  0x50   :  { %6036 = sst [smem:[#allocation35_spill]] %s5436_s4 }
  0x51   :  { %s5441_s12 = sld [smem:[%s5978_s0 + %s5232_s7]]   ;;  %s5236_s7 = smov 42  }
  0x52   :  { %s5446_s20 = sld [smem:[%s5978_s0 + %s5233_s15]]   ;;  %s5237_s15 = smov 43  }
  0x53   :  { %s5451_s27 = sld [smem:[%s5978_s0 + %s5234_s22]]   ;;  %s5238_s22 = smov 44  }
  0x54   :  { %s5456_s4 = sld [smem:[%s5978_s0 + %s5235_s28]]   ;;  %s5239_s28 = smov 45  }
  0x57   :  { %6037 = sst [smem:[#allocation36_spill]] %s5441_s12 }
  0x58   :  { %6038 = sst [smem:[#allocation37_spill]] %s5446_s20 }
  0x59   :  { %6039 = sst [smem:[#allocation38_spill]] %s5451_s27 }
  0x5a   :  { %6040 = sst [smem:[#allocation39_spill]] %s5456_s4 }
  0x5b   :  { %s5461_s12 = sld [smem:[%s5978_s0 + %s5236_s7]]   ;;  %s5240_s7 = smov 46  }
  0x5c   :  { %s5466_s20 = sld [smem:[%s5978_s0 + %s5237_s15]]  }
  0x5d   :  { %s5471_s27 = sld [smem:[%s5978_s0 + %s5238_s22]]  }
  0x5e   :  { %s5476_s4 = sld [smem:[%s5978_s0 + %s5239_s28]]  }
  0x61   :  { %6041 = sst [smem:[#allocation40_spill]] %s5461_s12 }
  0x62   :  { %s5481_s12 = sld [smem:[%s5978_s0 + %s5240_s7]]  }
  0x63   :  { %98 = vsyncpa [#allocation3], 0 }
  0x64   :  { %100 = vsyncpa [#allocation3 + $0x1], 0  ;;  %s5483_s15 = smov 0   ;;  %s5485_s16 = smov 0  }
  0x65   :  { %s5487_s18 = smov 0   ;;  %s5489_s22 = smov 0  }
  0x66 LB: > { %s6042_s9 = sld [smem:[#allocation6_spill]]  ;;  %s5504_s0 = sadd.s32 4294967295, %s5193_s22   ;;  %s5189_s18 = sphi %s5487_s18, %s6082_s18   ;;  %s5185_s16 = sphi %s5485_s16, %s6081_s16   ;;  %s5181_s15 = sphi %s5483_s15, %s6080_s15   ;;  %s5193_s22 = sphi %s5489_s22, %s6083_s22  }
  0x67   : > { %s6043_s6 = sld [smem:[#allocation11_spill]]  ;;  %s4216_s23 = sadd.s32 4294967294, %s5193_s22  }
  0x68   : > { %s6044_s3 = sld [smem:[#allocation8_spill]]  ;;  %s5508_s26 = sadd.s32 1, %s5193_s22  }
  0x69   : > { %s1084_s28 = sadd.s32 1, %s5189_s18  ;;  %s1081_s1 = ssub.s32 %s5193_s22, %s5508_s26 }
  0x6a   : > { %p1094_p0 = scmp.ne.s32.totalorder %s5189_s18, %s5185_s16  ;;  %p1082_p1 = scmp.eq.s32.totalorder %s1081_s1, 0 }
  0x6b   : > { %p1095_p2 = scmp.eq.s32.totalorder %s5504_s0, 1  ;;  %p1100_p3 = scmp.ne.s32.totalorder %s5185_s16, %s5181_s15 }
  0x6c   : > { %p1101_p4 = scmp.eq.s32.totalorder %s4216_s23, 1  ;;  %p4219_p7 = scmp.ge.s32.totalorder %s5193_s22, 1 }
  0x6d   : > { %s5519_s2 = scalar_select %p1082_p1, %s5189_s18, %s1084_s28  }
  0x6e   : > { %p5521_p5 = por %p1095_p2, %p1094_p0  ;;  %p5525_p6 = por %p1101_p4, %p1100_p3 }
  0x6f   : > { %p1261_p8 = scmp.lt.s32.totalorder %s5193_s22, 3 }
  0x71   : > { %p1262_p9 = pnand %p4219_p7, %p1261_p8 }
  0x72   : > { %s6047_s5 = sld [smem:[#allocation5_spill]] (!%p1262_p9)  ;;  %p1370_p10 = scmp.lt.s32.totalorder (!%p1262_p9), %s5504_s0, 1 }
  0x73   : > { %1265 = sbr.rel (%p1262_p9) target bundleno = 9790 (0x263e), region = 204  ;;  %s6048_s13 = sld [smem:[#allocation7_spill]] (!%p1262_p9) }
  0x74   : > { %s6049_s8 = sld [smem:[#allocation9_spill]] (!%p1262_p9) }
  0x75   : > { %s6050_s14 = sld [smem:[#allocation10_spill]] (!%p1262_p9) }
  0x76   : > { %s6051_s1 = sld [smem:[#allocation15_spill]] (!%p1262_p9) }
  0x78   : > { %s1371_s11 = scalar_select %p1370_p10, %s5504_s0, 1  ;;  %vm1379_vm0 = vcmask 261120   ;;  %v5241_v2 = vmov 32.0   ;;  %v4854_v14 = vld [vmem:[%s5271_s21 + $0x8] sm:$0xff]  ;;  %v4860_v16 = vld [vmem:[%s5271_s21 + $0x18] sm:$0xff]  ;;  %v4853_v17 = vld [vmem:[%s5271_s21] sm:$0xff] }
  0x79   : > { %5068 = vrcp.f32 %v5241_v2  ;;  %v4858_v15 = vld [vmem:[%s5281_s29 + $0x8] sm:$0xff]  ;;  %1443 = vmatpush.bf16.msra.mxu0 %v4854_v14  ;;  %1588 = vmatpush.bf16.msra.mxu1 %v4860_v16  ;;  %v4857_v18 = vld [vmem:[%s5281_s29] sm:$0xff]  ;;  %v4859_v19 = vld [vmem:[%s5271_s21 + $0x10] sm:$0xff]  ;;  %vm1546_vm5 = vcmask 1043456   ;;  %vm1510_vm6 = vcmask 64512   ;;  %vm2354_vm10 = vcmask 258048  }
  0x7a   : > { %s4221_s23 = sshll.u32 %s1371_s11, 3  ;;  %1501 = vmatpush.bf16.msra.mxu2 %v4858_v15  ;;  %v4856_v21 = vld [vmem:[%s5276_s25 + $0x8] sm:$0xff]  ;;  %v4862_v22 = vld [vmem:[%s5276_s25 + $0x18] sm:$0xff]  ;;  %v4855_v24 = vld [vmem:[%s5276_s25] sm:$0xff]  ;;  %s6052_s11 = sld [smem:[#allocation12_spill]]  ;;  %vm2515_vm14 = vcmask 1041408  }
  0x7b   : > { %s1373_s28 = scalar_lea.vmem %s6047_s5, %s4221_s23  ;;  %v4861_v25 = vld [vmem:[%s5276_s25 + $0x10] sm:$0xff]  ;;  %v5046_v33 = vld [vmem:[%s6048_s13] ss:$0 sm:$0xff]  ;;  %v4864_v50 = vld [vmem:[%s5281_s29 + $0x18] sm:$0xff]  ;;  %s6053_s23 = sld [smem:[#allocation13_spill]]  ;;  %vm2516_vm15 = vcmask 1042432  }
  0x7c   : > { %v5534_v0 = vld [vmem:[%s1373_s28] sm:$0xff]  ;;  %v4863_v52 = vld [vmem:[%s5281_s29 + $0x10] sm:$0xff]  ;;  %v4866_v14 = vld [vmem:[%s5271_s21 + $0x28] sm:$0xff]  ;;  %s6054_s28 = sld [smem:[#allocation16_spill]] }
  0x7d   : > { %v1380_v1 = vsel %vm1379_vm0, %v5534_v0, 0.0  ;;  %1444 = vmatpush.bf16.msra.mxu0 %v4853_v17  ;;  %1589 = vmatpush.bf16.msra.mxu1 %v4859_v19  ;;  %v5047_v35 = vld [vmem:[%s5266_s17] ss:$0 sm:$0xff]  ;;  %s6057_s5 = sld [smem:[#allocation22_spill]] }
  0x7e   : > { %1381 = vadd.xlane.f32.xlu0 %v1380_v1  ;;  %1502 = vmatpush.bf16.msra.mxu2 %v4857_v18  ;;  %v5577_v59 = vld [vmem:[%s6042_s9] sm:$0xff]  ;;  %s6072_s13 = sld [smem:[#allocation35_spill]] }
  0x7f   : > { %v5069_v3 = vpop.eup %5068  ;;  %v4865_v16 = vld [vmem:[%s5271_s21 + $0x20] sm:$0xff] }
  0x80   : > { %v1384_v4 = vmul.f32 32.0, %v5069_v3  ;;  %vm1388_vm1 = vweird.f32 %v5069_v3  ;;  %v1564_v18 = vld [vmem:[%s6044_s3] sm:$0xf] }
  0x81   : > { %1472 = vmatpush.bf16.msrb.mxu0 %v4856_v21  ;;  %v1734_v19 = vsel %vm1546_vm5, %v1564_v18, 0 }
  0x82   : > { %v1385_v5 = vsub.f32 1.0, %v1384_v4  ;;  %1618 = vmatpush.bf16.msrb.mxu2 %v4862_v22 }
  0x84   : > { %v1386_v6 = vmul.f32 %v5069_v3, %v1385_v5 }
  0x85   : > { %1473 = vmatpush.bf16.msrb.mxu0 %v4855_v24 }
  0x86   : > { %v1387_v7 = vadd.f32 %v5069_v3, %v1386_v6  ;;  %1619 = vmatpush.bf16.msrb.mxu2 %v4861_v25 }
  0x88   : > { %v5538_v8 = vsel %vm1388_vm1, %v5069_v3, %v1387_v7  ;;  %vm2497_vm1 = vcmask 36864  }
  0xf1   : > { %v1382_v9 = vpop.xlane.xlu0 %1381 }
  0xf2   : > { %v1390_v10 = vmul.f32 %v5538_v8, %v1382_v9 }
  0xf4   : > { %v1391_v11 = vsub.f32 %v5534_v0, %v1390_v10 }
  0xf6   : > { %v1392_v12 = vmul.f32 %v1391_v11, %v1391_v11 }
  0xf8   : > { %v1393_v13 = vsel %vm1379_vm0, %v1392_v12, 0.0 }
  0xf9   : > { %1394 = vadd.xlane.f32.xlu0 %v1393_v13 }
 0x16c   : > { %v1395_v20 = vpop.xlane.xlu0 %1394 }
 0x16d   : > { %v1396_v23 = vmul.f32 %v1395_v20, %v5538_v8 }
 0x16f   : > { %v1397_v26 = vadd.f32 1e-05, %v1396_v23 }
 0x171   : > { %5070 = vrsqrt.f32 %v1397_v26  ;;  %vm1404_vm3 = vweird.f32 %v1397_v26 }
 0x177   : > { %v5071_v27 = vpop.eup %5070 }
 0x178   : > { %v1399_v28 = vmul.f32 %v5071_v27, %v1397_v26  ;;  %vm1405_vm2 = vweird.f32 %v5071_v27 }
 0x179   : > { %vm1406_vm4 = vmor %vm1404_vm3, %vm1405_vm2  ;;  %vm2511_vm2 = vcmask 39936  }
 0x17a   : > { %v1400_v29 = vmul.f32 %v5071_v27, %v1399_v28 }
 0x17c   : > { %v1401_v30 = vmul.f32 0.5, %v1400_v29 }
 0x17e   : > { %v1402_v31 = vsub.f32 1.5, %v1401_v30 }
 0x180   : > { %v1403_v32 = vmul.f32 %v5071_v27, %v1402_v31 }
 0x182   : > { %v1407_v34 = vsel %vm1406_vm4, %v5071_v27, %v1403_v32 }
 0x183   : > { %v1408_v36 = vmul.f32 %v1407_v34, %v1391_v11 }
 0x185   : > { %v1412_v37 = vmul.f32 %v5046_v33, %v1408_v36  ;;  %v4868_v36 = vld [vmem:[%s5276_s25 + $0x28] sm:$0xff] }
 0x187   : > { %v1416_v38 = vadd.f32 %v5047_v35, %v1412_v37  ;;  %v4867_v37 = vld [vmem:[%s5276_s25 + $0x20] sm:$0xff] }
 0x189   : > { %v5556_v39 = vpack.c.bf16 %v1416_v38, %v1416_v38 }
 0x18b   : > { %4230 = vmatmul.msk.bf16.vlgmr.msra.gmra.mxu0 %vm1379_vm0, %v5556_v39  ;;  %4248 = vmatmul.msk.bf16.vlgmr.msra.gmra.mxu2 %vm1379_vm0, %v5556_v39 }
 0x18c   : > { %4263 = vmatmul.msk.bf16.vlgmr.msra.gmra.mxu1 %vm1379_vm0, %v5556_v39 }
 0x19b   : > { %4239 = vmatmul.msk.bf16.vlgmr.msrb.gmra.mxu0 %vm1379_vm0, %v5556_v39  ;;  %4276 = vmatmul.msk.bf16.vlgmr.msrb.gmra.mxu2 %vm1379_vm0, %v5556_v39 }
 0x208   : > { %v1446_v40 = vpop.f32.mrf.mxu0 }
 0x209   : > { %v1591_v41 = vpop.f32.mrf.mxu1  ;;  %v1508_v56 = vpack.c.bf16 %v1446_v40, %v1446_v40 }
 0x20a   : > { %v1655_v17 = vpack.c.bf16 %v1591_v41, %v1591_v41 }
 0x20e   : > { %v1504_v42 = vpop.f32.mrf.mxu2 }
 0x20f   : > { %v1542_v43 = vpack.c.bf16 %v1504_v42, %v1504_v42 }
 0x210   : > { %v1448_v44 = vpop.f32.mrf.mxu0 }
 0x211   : > { %v1548_v45 = vsel %vm1546_vm5, %v1542_v43, 0  ;;  %v1593_v46 = vpop.f32.mrf.mxu1  ;;  %v4292_v43 = vld [vmem:[%s6044_s3 + $0x4] sm:$0xf] }
 0x212   : > { %1557 = vmatpush.bf16.msra.mxu0 %v1548_v45  ;;  %v1715_v44 = vsel %vm1546_vm5, %v4292_v43, 0  ;;  %v4870_v45 = vld [vmem:[%s5281_s29 + $0x28] sm:$0xff]  ;;  %v4869_v46 = vld [vmem:[%s5281_s29 + $0x20] sm:$0xff] }
 0x213   : > { %1724 = vmatpush.bf16.msra.mxu2 %v1715_v44 }
 0x216   : > { %v1506_v47 = vpop.f32.mrf.mxu2 }
 0x217   : > { %1832 = vmatpush.bf16.msrb.mxu2 %v4870_v45 }
 0x218   : > { %v1475_v48 = vpop.f32.mrf.mxu0 }
 0x219   : > { %v1509_v49 = vpack.c.bf16 %v1475_v48, %v1475_v48  ;;  %v4872_v48 = vld [vmem:[%s5271_s21 + $0x38] sm:$0xff] }
 0x21b   : > { %v1515_v51 = vsel %vm1510_vm6, %v1509_v49, 0  ;;  %1833 = vmatpush.bf16.msrb.mxu2 %v4869_v46 }
 0x21c   : > { %1524 = vmatpush.bf16.xpose.msra.mxu3 %v1515_v51 }
 0x21e   : > { %v1621_v53 = vpop.f32.mrf.mxu2 }
 0x21f   : > { %v1656_v54 = vpack.c.bf16 %v1621_v53, %v1621_v53 }
 0x220   : > { %v1477_v55 = vpop.f32.mrf.mxu0 }
 0x221   : > { %v1661_v57 = vsel %vm1510_vm6, %v1656_v54, 0  ;;  %v4874_v54 = vld [vmem:[%s5276_s25 + $0x38] sm:$0xff] }
 0x222   : > { %1670 = vmatpush.bf16.xpose.msrb.mxu0 %v1661_v57 }
 0x223   : > { %4249 = vmatmul.msk.bf16.vlgmr.msra.gmra.mxu3 %vm1510_vm6, %v1508_v56  ;;  %v4873_v56 = vld [vmem:[%s5276_s25 + $0x30] sm:$0xff] }
 0x224   : > { %1648 = vmatpush.bf16.msrb.mxu3 %v4864_v50  ;;  %v4871_v50 = vld [vmem:[%s5271_s21 + $0x30] sm:$0xff] }
 0x226   : > { %v1623_v58 = vpop.f32.mrf.mxu2 }
 0x228   : > { %1649 = vmatpush.bf16.msrb.mxu3 %v4863_v52 }
 0x22c   : > { %1743 = vmatpush.bf16.msra.mxu3 %v1734_v19 }
 0x233   : > { %4289 = vmatmul.msk.bf16.vlgmr.msrb.gmra.mxu3 %vm1379_vm0, %v5556_v39 }
 0x2a6   : > { %v1526_v60 = vpop.f32.mrf.mxu3 }
 0x2a7   : > { %v1527_v61 = vadd.f32 %v1526_v60, %v5577_v59 }
 0x2a9   : > { %v1530_v62 = vsel %vm1510_vm6, %v1527_v61, -inf }
 0x2aa   : > { %1531 = vmax.xlane.f32.xlu1 %v1530_v62  ;;  %v4336_v62 = vld [vmem:[%s6044_s3 + $0x8] sm:$0xf] }
 0x2ae   : > { %v1528_v63 = vpop.f32.mrf.mxu3 }
 0x2af   : > { %v1899_v63 = vsel %vm1546_vm5, %v4336_v62, 0 }
 0x2b6   : > { %v1651_v1 = vpop.f32.mrf.mxu3 }
 0x2b7   : > { %v1688_v2 = vpack.c.bf16 %v1651_v1, %v1651_v1 }
 0x2b9   : > { %v1693_v3 = vsel %vm1546_vm5, %v1688_v2, 0 }
 0x2ba   : > { %1702 = vmatpush.bf16.msrb.mxu1 %v1693_v3 }
 0x2be   : > { %v1653_v4 = vpop.f32.mrf.mxu3  ;;  %1802 = vmatpush.bf16.msra.mxu1 %v4868_v36 }
 0x2c2   : > { %1803 = vmatpush.bf16.msra.mxu1 %v4867_v37 }
 0x31d   : > { %v1532_v5 = vpop.xlane.xlu1 %1531 }
 0x31e   : > { %v1533_v6 = vsub.f32 %v1527_v61, %v1532_v5 }
 0x320   : > { %v1534_v7 = vmul.f32 1.442695, %v1533_v6 }
 0x322   : > { %5072 = vpow2.f32 %v1534_v7 }
 0x328   : > { %v5073_v9 = vpop.eup %5072 }
 0x329   : > { %v1536_v10 = vsel %vm1510_vm6, %v5073_v9, 0.0 }
 0x32a   : > { %1537 = vadd.xlane.f32.xlu1 %v1536_v10 }
 0x39d   : > { %v1538_v11 = vpop.xlane.xlu1 %1537 }
 0x39e   : > { %5074 = vrcp.f32 %v1538_v11 }
 0x3a4   : > { %v5075_v12 = vpop.eup %5074 }
 0x3a5   : > { %v1540_v13 = vmul.f32 %v5075_v12, %v5073_v9 }
 0x3a7   : > { %v1541_v15 = vpack.c.bf16 %v1540_v13, %v1540_v13 }
 0x3a9   : > { %4250 = vmatmul.msk.bf16.vlgmr.msra.gmra.mxu0 %vm1510_vm6, %v1541_v15 }
 0x3aa   : > { %1772 = vmatpush.bf16.msra.mxu0 %v4866_v14 }
 0x3ae   : > { %1773 = vmatpush.bf16.msra.mxu0 %v4865_v16 }
 0x3b9   : > { %4290 = vmatmul.msk.bf16.vlgmr.msrb.gmra.mxu0 %vm1510_vm6, %v1655_v17 }
 0x3c9   : > { %4307 = vmatmul.msk.bf16.vlgmr.msra.gmra.mxu0 %vm1379_vm0, %v5556_v39 }
 0x426   : > { %v1559_v20 = vpop.f32.mrf.mxu0 }
 0x427   : > { %v1563_v21 = vpack.c.bf16 %v1559_v20, %v1559_v20 }
 0x429   : > { %4294 = vmatmul.msk.bf16.vlgmr.msra.gmra.mxu3 %vm1510_vm6, %v1563_v21  ;;  %v4876_v21 = vld [vmem:[%s5281_s29 + $0x38] sm:$0xff] }
 0x42e   : > { %v1561_v22 = vpop.f32.mrf.mxu0 }
 0x42f   : > { %v4875_v22 = vld [vmem:[%s5281_s29 + $0x30] sm:$0xff] }
 0x436   : > { %v1672_v23 = vpop.f32.mrf.mxu0 }
 0x437   : > { %v1673_v24 = vadd.f32 %v1672_v23, %v5577_v59 }
 0x439   : > { %v1676_v25 = vsel %vm1510_vm6, %v1673_v24, -inf }
 0x43a   : > { %1677 = vmax.xlane.f32.xlu2 %v1676_v25 }
 0x43e   : > { %v1674_v26 = vpop.f32.mrf.mxu0 }
 0x446   : > { %v1775_v27 = vpop.f32.mrf.mxu0 }
 0x447   : > { %v1839_v58 = vpack.c.bf16 %v1775_v27, %v1775_v27 }
 0x44e   : > { %v1777_v28 = vpop.f32.mrf.mxu0 }
 0x4ac   : > { %v5594_v29 = vpop.f32.mrf.mxu3 }
 0x4ad   : > { %v1678_v30 = vpop.xlane.xlu2 %1677 }
 0x4ae   : > { %v1679_v31 = vsub.f32 %v1673_v24, %v1678_v30 }
 0x4b0   : > { %v1680_v32 = vmul.f32 1.442695, %v1679_v31 }
 0x4b2   : > { %5076 = vpow2.f32 %v1680_v32 }
 0x4b4   : > { %v1747_v33 = vpop.f32.mrf.mxu3 }
 0x4b8   : > { %v5077_v34 = vpop.eup %5076 }
 0x4b9   : > { %v1682_v35 = vsel %vm1510_vm6, %v5077_v34, 0.0 }
 0x4ba   : > { %1683 = vadd.xlane.f32.xlu2 %v1682_v35 }
 0x52d   : > { %v1684_v38 = vpop.xlane.xlu2 %1683 }
 0x52e   : > { %5078 = vrcp.f32 %v1684_v38 }
 0x534   : > { %v5079_v40 = vpop.eup %5078 }
 0x535   : > { %v1686_v41 = vmul.f32 %v5079_v40, %v5077_v34 }
 0x537   : > { %v1687_v42 = vpack.c.bf16 %v1686_v41, %v1686_v41 }
 0x539   : > { %4291 = vmatmul.msk.bf16.vlgmr.msrb.gmra.mxu1 %vm1510_vm6, %v1687_v42 }
 0x53a   : > { %1908 = vmatpush.bf16.msrb.mxu1 %v1899_v63 }
 0x549   : > { %4320 = vmatmul.msk.bf16.vlgmr.msra.gmra.mxu1 %vm1379_vm0, %v5556_v39 }
 0x5b6   : > { %v1704_v47 = vpop.f32.mrf.mxu1 }
 0x5b7   : > { %v1708_v49 = vpack.c.bf16 %v1704_v47, %v1704_v47 }
 0x5b9   : > { %4293 = vmatmul.msk.bf16.vlgmr.msra.gmra.mxu2 %vm1510_vm6, %v1708_v49 }
 0x5ba   : > { %1938 = vmatpush.bf16.msra.mxu2 %v4872_v48 }
 0x5be   : > { %v1706_v51 = vpop.f32.mrf.mxu1  ;;  %1939 = vmatpush.bf16.msra.mxu2 %v4871_v50 }
 0x5c6   : > { %v1805_v52 = vpop.f32.mrf.mxu1 }
 0x5c7   : > { %v1840_v53 = vpack.c.bf16 %v1805_v52, %v1805_v52 }
 0x5c9   : > { %4333 = vmatmul.msk.bf16.vlgmr.msrb.gmra.mxu2 %vm1379_vm0, %v5556_v39  ;;  %v1845_v55 = vsel %vm1510_vm6, %v1840_v53, 0 }
 0x5ca   : > { %1854 = vmatpush.bf16.xpose.msrb.mxu3 %v1845_v55 }
 0x5ce   : > { %v1807_v57 = vpop.f32.mrf.mxu1 }
 0x5d1   : > { %4334 = vmatmul.msk.bf16.vlgmr.msrb.gmra.mxu3 %vm1510_vm6, %v1839_v58 }
 0x5d2   : > { %1968 = vmatpush.bf16.msra.mxu3 %v4874_v54 }
 0x5d6   : > { %1969 = vmatpush.bf16.msra.mxu3 %v4873_v56 }
 0x5d9   : > { %4350 = vmatmul.msk.bf16.vlgmr.msra.gmra.mxu2 %vm1379_vm0, %v5556_v39 }
 0x5e1   : > { %4363 = vmatmul.msk.bf16.vlgmr.msra.gmra.mxu3 %vm1379_vm0, %v5556_v39 }
 0x63c   : > { %v5619_v60 = vpop.f32.mrf.mxu2 }
 0x63d   : > { %v1746_v55 = vadd.f32 %v5594_v29, %v5619_v60 }
 0x644   : > { %v1728_v61 = vpop.f32.mrf.mxu2 }
 0x645   : > { %v5048_v61 = vld [vmem:[%s6049_s8] ss:$0 sm:$0xff]  ;;  %s6068_s8 = sld [smem:[#allocation30_spill]] }
 0x64c   : > { %v1835_v1 = vpop.f32.mrf.mxu2 }
 0x64d   : > { %v1872_v2 = vpack.c.bf16 %v1835_v1, %v1835_v1 }
 0x64f   : > { %v1877_v3 = vsel %vm1546_vm5, %v1872_v2, 0 }
 0x650   : > { %1886 = vmatpush.bf16.msrb.mxu0 %v1877_v3 }
 0x654   : > { %v1837_v4 = vpop.f32.mrf.mxu2  ;;  %v1856_v5 = vpop.f32.mrf.mxu3  ;;  %1998 = vmatpush.bf16.msra.mxu0 %v4876_v21 }
 0x655   : > { %v1857_v6 = vadd.f32 %v1856_v5, %v5577_v59 }
 0x657   : > { %v1860_v7 = vsel %vm1510_vm6, %v1857_v6, -inf }
 0x658   : > { %1861 = vmax.xlane.f32.xlu0 %v1860_v7  ;;  %1999 = vmatpush.bf16.msra.mxu0 %v4875_v22  ;;  %v4886_v7 = vld [vmem:[%s6043_s6 + $0x38] sm:$0xff] }
 0x65c   : > { %v1858_v9 = vpop.f32.mrf.mxu3  ;;  %v1941_v10 = vpop.f32.mrf.mxu2 }
 0x65d   : > { %v2005_v32 = vpack.c.bf16 %v1941_v10, %v1941_v10 }
 0x664   : > { %v1943_v11 = vpop.f32.mrf.mxu2  ;;  %v1971_v12 = vpop.f32.mrf.mxu3 }
 0x665   : > { %v2006_v13 = vpack.c.bf16 %v1971_v12, %v1971_v12  ;;  %v4885_v11 = vld [vmem:[%s6043_s6 + $0x30] sm:$0xff] }
 0x667   : > { %v2011_v14 = vsel %vm1510_vm6, %v2006_v13, 0  ;;  %v4884_v13 = vld [vmem:[%s6043_s6 + $0x28] sm:$0xff] }
 0x668   : > { %2020 = vmatpush.bf16.xpose.msra.mxu1 %v2011_v14  ;;  %v4883_v14 = vld [vmem:[%s6043_s6 + $0x20] sm:$0xff] }
 0x66c   : > { %v1973_v15 = vpop.f32.mrf.mxu3 }
 0x6cb   : > { %v1862_v16 = vpop.xlane.xlu0 %1861 }
 0x6cc   : > { %v1863_v17 = vsub.f32 %v1857_v6, %v1862_v16  ;;  %v4877_v6 = vld [vmem:[%s5306_s24] sm:$0xff] }
 0x6ce   : > { %v1864_v18 = vmul.f32 1.442695, %v1863_v17  ;;  %v4882_v17 = vld [vmem:[%s6043_s6 + $0x18] sm:$0xff] }
 0x6d0   : > { %5080 = vpow2.f32 %v1864_v18 }
 0x6d6   : > { %v5081_v19 = vpop.eup %5080 }
 0x6d7   : > { %v1866_v20 = vsel %vm1510_vm6, %v5081_v19, 0.0 }
 0x6d8   : > { %1867 = vadd.xlane.f32.xlu1 %v1866_v20  ;;  %v4881_v20 = vld [vmem:[%s6043_s6 + $0x10] sm:$0xff] }
 0x74b   : > { %v1868_v23 = vpop.xlane.xlu1 %1867 }
 0x74c   : > { %5082 = vrcp.f32 %v1868_v23  ;;  %v5049_v23 = vld [vmem:[%s6050_s14] ss:$0 sm:$0xff] }
 0x752   : > { %v5083_v24 = vpop.eup %5082 }
 0x753   : > { %v1870_v25 = vmul.f32 %v5083_v24, %v5081_v19 }
 0x755   : > { %v1871_v26 = vpack.c.bf16 %v1870_v25, %v1870_v25 }
 0x757   : > { %4335 = vmatmul.msk.bf16.vlgmr.msrb.gmra.mxu0 %vm1510_vm6, %v1871_v26  ;;  %v5050_v26 = vld [vmem:[%s5301_s19] ss:$0 sm:$0xff] }
 0x767   : > { %4376 = vmatmul.msk.bf16.vlgmr.msra.gmra.mxu0 %vm1379_vm0, %v5556_v39 }
 0x7d4   : > { %v1888_v27 = vpop.f32.mrf.mxu0 }
 0x7d5   : > { %v1892_v28 = vpack.c.bf16 %v1888_v27, %v1888_v27 }
 0x7d7   : > { %4337 = vmatmul.msk.bf16.vlgmr.msrb.gmra.mxu1 %vm1510_vm6, %v1892_v28 }
 0x7d8   : > { %2226 = vmatpush.bf16.msrb.mxu1 %v4886_v7 }
 0x7dc   : > { %v1890_v30 = vpop.f32.mrf.mxu0  ;;  %2227 = vmatpush.bf16.msrb.mxu1 %v4885_v11 }
 0x7e0   : > { %2228 = vmatpush.bf16.msrb.mxu1 %v4884_v13 }
 0x7e4   : > { %v2001_v31 = vpop.f32.mrf.mxu0  ;;  %2229 = vmatpush.bf16.msrb.mxu1 %v4883_v14 }
 0x7e5   : > { %v2038_v33 = vpack.c.bf16 %v2001_v31, %v2001_v31  ;;  %v4880_v31 = vld [vmem:[%s6043_s6 + $0x8] sm:$0xff] }
 0x7e7   : > { %v2043_v34 = vsel %vm1546_vm5, %v2038_v33, 0  ;;  %4377 = vmatmul.msk.bf16.vlgmr.msra.gmra.mxu1 %vm1510_vm6, %v2005_v32  ;;  %v4879_v32 = vld [vmem:[%s6043_s6] sm:$0xff]  ;;  %s6066_s6 = sld [smem:[#allocation26_spill]] }
 0x7e8   : > { %2052 = vmatpush.bf16.msrb.mxu2 %v2043_v34  ;;  %2230 = vmatpush.bf16.msrb.mxu1 %v4882_v17  ;;  %v5051_v33 = vld [vmem:[%s5311_s30] ss:$0 sm:$0xff] }
 0x7ec   : > { %v2003_v35 = vpop.f32.mrf.mxu0  ;;  %2231 = vmatpush.bf16.msrb.mxu1 %v4881_v20 }
 0x7f0   : > { %2232 = vmatpush.bf16.msrb.mxu1 %v4880_v31 }
 0x7f4   : > { %2233 = vmatpush.bf16.msrb.mxu1 %v4879_v32 }
 0x854   : > { %v1910_v36 = vpop.f32.mrf.mxu1 }
 0x855   : > { %v1914_v56 = vadd.f32 %v1910_v36, %v1746_v55 }
 0x85c   : > { %v1912_v37 = vpop.f32.mrf.mxu1 }
 0x864   : > { %v2022_v38 = vpop.f32.mrf.mxu1 }
 0x865   : > { %v2023_v40 = vadd.f32 %v2022_v38, %v5577_v59  ;;  %v4379_v59 = vld [vmem:[%s6044_s3 + $0xc] sm:$0xf]  ;;  %s6056_s3 = sld [smem:[#allocation21_spill]] }
 0x866   : > { %v2065_v51 = vsel %vm1546_vm5, %v4379_v59, 0  ;;  %v4887_v59 = vld [vmem:[%s6051_s1] sm:$0xff] }
 0x867   : > { %v2026_v39 = vsel %vm1510_vm6, %v2023_v40, -inf  ;;  %2074 = vmatpush.bf16.msrb.mxu3 %v2065_v51 }
 0x868   : > { %2027 = vmax.xlane.f32.xlu2 %v2026_v39  ;;  %v5052_v39 = vld [vmem:[%s6052_s11] ss:$0 sm:$0xff]  ;;  %s6055_s11 = sld [smem:[#allocation20_spill]] }
 0x86b   : > { %v4894_v7 = vld [vmem:[%s6056_s3 + $0x8] sm:$0xff]  ;;  %v4893_v11 = vld [vmem:[%s6056_s3] sm:$0xff] }
 0x86c   : > { %v2024_v41 = vpop.f32.mrf.mxu1 }
 0x86e   : > { %v4898_v14 = vld [vmem:[%s6055_s11 + $0x18] sm:$0xff]  ;;  %v4897_v17 = vld [vmem:[%s6055_s11 + $0x10] sm:$0xff] }
 0x8db   : > { %v2028_v42 = vpop.xlane.xlu2 %2027 }
 0x8dc   : > { %v2029_v43 = vsub.f32 %v2023_v40, %v2028_v42  ;;  %v4890_v40 = vld [vmem:[%s6051_s1 + $0x18] sm:$0xff] }
 0x8de   : > { %v2030_v44 = vmul.f32 1.442695, %v2029_v43 }
 0x8e0   : > { %5084 = vpow2.f32 %v2030_v44 }
 0x8e6   : > { %v5085_v45 = vpop.eup %5084 }
 0x8e7   : > { %v2032_v46 = vsel %vm1510_vm6, %v5085_v45, 0.0 }
 0x8e8   : > { %2033 = vadd.xlane.f32.xlu0 %v2032_v46 }
 0x95b   : > { %v2034_v47 = vpop.xlane.xlu0 %2033 }
 0x95c   : > { %5086 = vrcp.f32 %v2034_v47 }
 0x962   : > { %v5087_v48 = vpop.eup %5086 }
 0x963   : > { %v2036_v49 = vmul.f32 %v5087_v48, %v5085_v45  ;;  %v4888_v45 = vld [vmem:[%s6051_s1 + $0x8] sm:$0xff]  ;;  %v2241_v48 = vld [vmem:[%s6053_s23] sm:$0x7] }
 0x965   : > { %v2037_v50 = vpack.c.bf16 %v2036_v49, %v2036_v49  ;;  %v4423_v49 = vld [vmem:[%s6053_s23 + $0x4] sm:$0x7] }
 0x967   : > { %4378 = vmatmul.msk.bf16.vlgmr.msrb.gmra.mxu2 %vm1510_vm6, %v2037_v50  ;;  %v4889_v50 = vld [vmem:[%s6051_s1 + $0x10] sm:$0xff]  ;;  %s6059_s1 = sld [smem:[#allocation19_spill]] }
 0x9ea   : > { %v2054_v52 = vpop.f32.mrf.mxu2 }
 0x9eb   : > { %v2058_v53 = vpack.c.bf16 %v2054_v52, %v2054_v52 }
 0x9ed   : > { %4380 = vmatmul.msk.bf16.vlgmr.msrb.gmra.mxu3 %vm1510_vm6, %v2058_v53 }
 0x9f2   : > { %v2056_v54 = vpop.f32.mrf.mxu2 }
 0xa70   : > { %v2076_v57 = vpop.f32.mrf.mxu3 }
 0xa71   : > { %v2080_v58 = vadd.f32 %v2076_v57, %v1914_v56 }
 0xa73   : > { %v2081_v62 = vadd.f32 %v2080_v58, %v5534_v0  ;;  %v4878_v0 = vld [vmem:[%s5306_s24 + $0x8] sm:$0xff]  ;;  %v5053_v58 = vld [vmem:[%s6054_s28] ss:$0 sm:$0xff]  ;;  %s6058_s28 = sld [smem:[#allocation18_spill]] }
 0xa74   : > { %2149 = vmatpush.bf16.msrb.mxu0 %v4878_v0 }
 0xa75   : > { %v5647_v63 = vadd.f32 %v5048_v61, %v2081_v62 }
 0xa77   : > { %v2089_v1 = vsel %vm1379_vm0, %v5647_v63, 0.0 }
 0xa78   : > { %2090 = vadd.xlane.f32.xlu1 %v2089_v1  ;;  %v2078_v2 = vpop.f32.mrf.mxu3  ;;  %2150 = vmatpush.bf16.msrb.mxu0 %v4877_v6  ;;  %v4892_v6 = vld [vmem:[%s6055_s11 + $0x8] sm:$0xff] }
 0xa7c   : > { %2311 = vmatpush.bf16.msra.mxu0 %v4890_v40 }
 0xa80   : > { %2312 = vmatpush.bf16.msra.mxu0 %v4889_v50 }
 0xaeb   : > { %v2091_v3 = vpop.xlane.xlu1 %2090 }
 0xaec   : > { %v2092_v29 = vmul.f32 %v2091_v3, %v5538_v8 }
 0xaee   : > { %v2093_v60 = vsub.f32 %v5647_v63, %v2092_v29 }
 0xaf0   : > { %v2094_v4 = vmul.f32 %v2093_v60, %v2093_v60 }
 0xaf2   : > { %v2095_v5 = vsel %vm1379_vm0, %v2094_v4, 0.0 }
 0xaf3   : > { %2096 = vadd.xlane.f32.xlu2 %v2095_v5 }
 0xb66   : > { %v2097_v9 = vpop.xlane.xlu2 %2096 }
 0xb67   : > { %v2098_v10 = vmul.f32 %v2097_v9, %v5538_v8  ;;  %v4896_v9 = vld [vmem:[%s6057_s5 + $0x8] sm:$0xff] }
 0xb68   : > { %2469 = vmatpush.bf16.msra.mxu1 %v4896_v9 }
 0xb69   : > { %v2099_v12 = vadd.f32 1e-05, %v2098_v10  ;;  %v4891_v10 = vld [vmem:[%s6055_s11] sm:$0xff] }
 0xb6b   : > { %5088 = vrsqrt.f32 %v2099_v12  ;;  %vm2106_vm8 = vweird.f32 %v2099_v12 }
 0xb71   : > { %v5089_v15 = vpop.eup %5088 }
 0xb72   : > { %v2101_v16 = vmul.f32 %v5089_v15, %v2099_v12  ;;  %vm2107_vm7 = vweird.f32 %v5089_v15  ;;  %v4895_v12 = vld [vmem:[%s6057_s5] sm:$0xff] }
 0xb73   : > { %vm2108_vm9 = vmor %vm2106_vm8, %vm2107_vm7  ;;  %2470 = vmatpush.bf16.msra.mxu1 %v4895_v12  ;;  %vm3216_vm8 = vcmask 1044480  }
 0xb74   : > { %v2102_v18 = vmul.f32 %v5089_v15, %v2101_v16 }
 0xb76   : > { %v2103_v19 = vmul.f32 0.5, %v2102_v18  ;;  %v4899_v18 = vld [vmem:[%s6056_s3 + $0x10] sm:$0xff] }
 0xb78   : > { %v2104_v21 = vsub.f32 1.5, %v2103_v19 }
 0xb7a   : > { %v2105_v22 = vmul.f32 %v5089_v15, %v2104_v21 }
 0xb7c   : > { %v2109_v24 = vsel %vm2108_vm9, %v5089_v15, %v2105_v22  ;;  %v4900_v15 = vld [vmem:[%s6056_s3 + $0x18] sm:$0xff] }
 0xb7d   : > { %v2110_v25 = vmul.f32 %v2109_v24, %v2093_v60 }
 0xb7f   : > { %v2114_v27 = vmul.f32 %v5049_v23, %v2110_v25 }
 0xb81   : > { %v2118_v28 = vadd.f32 %v5050_v26, %v2114_v27  ;;  %v5054_v26 = vld [vmem:[%s6058_s28] ss:$0 sm:$0xff]  ;;  %s6061_s28 = sld [smem:[#allocation23_spill]] }
 0xb83   : > { %v2119_v30 = vpack.c.bf16 %v2118_v28, %v2118_v28  ;;  %v5055_v28 = vld [vmem:[%s6059_s1] ss:$0 sm:$0xff]  ;;  %s6060_s1 = sld [smem:[#allocation17_spill]] }
 0xb85   : > { %4389 = vmatmul.msk.bf16.vlgmr.msrb.gmra.mxu0 %vm1379_vm0, %v2119_v30 }
 0xb86   : > { %2440 = vmatpush.bf16.msrb.mxu0 %v4894_v7 }
 0xb8a   : > { %2441 = vmatpush.bf16.msrb.mxu0 %v4893_v11  ;;  %v4904_v11 = vld [vmem:[%s6055_s11 + $0x28] sm:$0xff] }
 0xc02   : > { %v2152_v34 = vpop.f32.mrf.mxu0 }
 0xc03   : > { %v2153_v35 = vadd.f32 %v5051_v33, %v2152_v34  ;;  %v5242_v34 = vmov 65535  }
 0xc05   : > { %v2156_v36 = vmax.f32 %v2153_v35, 0.0  ;;  %v2517_v35 = vsel %vm2515_vm14, 4294967295, %v5242_v34 }
 0xc06   : > { %v5719_v40 = vsel %vm2516_vm15, %v2517_v35, 0  ;;  %v4906_v35 = vld [vmem:[%s6056_s3 + $0x28] sm:$0xff] }
 0xc07   : > { %v2157_v37 = vpack.c.bf16 %v2156_v36, %v2156_v36 }
 0xc09   : > { %2234 = vmatmul.bf16.vlgmr.msrb.gmra.mxu1 %v2157_v37 }
 0xc0a   : > { %v2154_v38 = vpop.f32.mrf.mxu0  ;;  %2590 = vmatpush.bf16.msrb.mxu1 %v4900_v15  ;;  %v2536_v15 = vld [vmem:[%s6061_s28] sm:$0xf] }
 0xc0e   : > { %2591 = vmatpush.bf16.msrb.mxu1 %v4899_v18 }
 0xc86   : > { %v2235_v41 = vpop.f32.mrf.mxu1 }
 0xc87   : > { %v2236_v42 = vadd.f32 %v5052_v39, %v2235_v41  ;;  %v4902_v39 = vld [vmem:[%s6057_s5 + $0x18] sm:$0xff] }
 0xc89   : > { %v5672_v43 = vadd.f32 %v2236_v42, %v5647_v63 }
 0xc8b   : > { %v2240_v44 = vpack.c.bf16 %v5672_v43, %v5672_v43 }
 0xc8d   : > { %v2246_v46 = vsel %vm1546_vm5, %v2240_v44, 0 }
 0xc8e   : > { %v2237_v47 = vpop.f32.mrf.mxu1  ;;  %2255 = vmatpush.bf16.msra.mxu2 %v2246_v46  ;;  %2278 = vmatpush.bf16.msra.mxu3 %v2246_v46 }
 0xc91   : > { %4422 = vmatmul.msk.bf16.vlgmr.msra.gmra.mxu2 %vm1510_vm6, %v2241_v48  ;;  %4424 = vmatmul.msk.bf16.vlgmr.msra.gmra.mxu3 %vm1510_vm6, %v4423_v49 }
 0xc92   : > { %2339 = vmatpush.bf16.msrb.mxu2 %v4888_v45  ;;  %2411 = vmatpush.bf16.msrb.mxu3 %v4892_v6  ;;  %v4901_v45 = vld [vmem:[%s6057_s5 + $0x10] sm:$0xff] }
 0xc96   : > { %2340 = vmatpush.bf16.msrb.mxu2 %v4887_v59  ;;  %2412 = vmatpush.bf16.msrb.mxu3 %v4891_v10 }
 0xd14   : > { %v2257_v51 = vpop.f32.mrf.mxu2  ;;  %v2280_v52 = vpop.f32.mrf.mxu3 }
 0xd15   : > { %v2261_v53 = vpack.c.bf16 %v2257_v51, %v2257_v51  ;;  %v2284_v54 = vpack.c.bf16 %v2280_v52, %v2280_v52 }
 0xd17   : > { %4437 = vmatmul.msk.bf16.vlgmr.msra.gmra.mxu0 %vm1379_vm0, %v2284_v54  ;;  %4446 = vmatmul.msk.bf16.vlgmr.msrb.gmra.mxu2 %vm1379_vm0, %v2261_v53 }
 0xd18   : > { %2560 = vmatpush.bf16.msra.mxu0 %v4898_v14 }
 0xd1c   : > { %v2259_v55 = vpop.f32.mrf.mxu2  ;;  %v2282_v56 = vpop.f32.mrf.mxu3  ;;  %2561 = vmatpush.bf16.msra.mxu0 %v4897_v17 }
 0xd1d   : > { %v5730_v56 = vld [vmem:[%s6060_s1] sm:$0x1f]  ;;  %s6062_s1 = sld [smem:[#allocation24_spill]] }
 0xd94   : > { %v2314_v57 = vpop.f32.mrf.mxu0 }
 0xd9a   : > { %v2342_v61 = vpop.f32.mrf.mxu2 }
 0xd9b   : > { %v2343_v62 = vadd.f32 %v2342_v61, %v2314_v57 }
 0xd9c   : > { %v2316_v63 = vpop.f32.mrf.mxu0 }
 0xd9d   : > { %v5687_v1 = vadd.f32 %v5053_v58, %v2343_v62 }
 0xd9f   : > { %v2355_v2 = vsel %vm2354_vm10, %v5687_v1, 0.0 }
 0xda0   : > { %2356 = vadd.xlane.f32.xlu0 %v2355_v2 }
 0xda2   : > { %v2344_v3 = vpop.f32.mrf.mxu2 }
 0xe13   : > { %v2357_v29 = vpop.xlane.xlu0 %2356 }
 0xe14   : > { %v2358_v60 = vmul.f32 %v2357_v29, %v5538_v8 }
 0xe16   : > { %v2359_v4 = vsub.f32 %v5687_v1, %v2358_v60 }
 0xe18   : > { %v2360_v5 = vmul.f32 %v2359_v4, %v2359_v4 }
 0xe1a   : > { %v2361_v0 = vsel %vm2354_vm10, %v2360_v5, 0.0 }
 0xe1b   : > { %2362 = vadd.xlane.f32.xlu1 %v2361_v0 }
 0xe8e   : > { %v2363_v13 = vpop.xlane.xlu1 %2362 }
 0xe8f   : > { %v2364_v16 = vmul.f32 %v2363_v13, %v5538_v8  ;;  %v4903_v13 = vld [vmem:[%s6055_s11 + $0x20] sm:$0xff] }
 0xe91   : > { %v2365_v19 = vadd.f32 1e-05, %v2364_v16  ;;  %v2706_v16 = vsel %vm1546_vm5, %v2536_v15, 0 }
 0xe93   : > { %5090 = vrsqrt.f32 %v2365_v19  ;;  %vm2372_vm12 = vweird.f32 %v2365_v19 }
 0xe99   : > { %v5091_v20 = vpop.eup %5090 }
 0xe9a   : > { %v2367_v21 = vmul.f32 %v5091_v20, %v2365_v19  ;;  %vm2373_vm11 = vweird.f32 %v5091_v20 }
 0xe9b   : > { %vm2374_vm13 = vmor %vm2372_vm12, %vm2373_vm11 }
 0xe9c   : > { %v2368_v22 = vmul.f32 %v5091_v20, %v2367_v21 }
 0xe9e   : > { %v2369_v23 = vmul.f32 0.5, %v2368_v22 }
 0xea0   : > { %v2370_v24 = vsub.f32 1.5, %v2369_v23 }
 0xea2   : > { %v2371_v25 = vmul.f32 %v5091_v20, %v2370_v24 }
 0xea4   : > { %v2375_v27 = vsel %vm2374_vm13, %v5091_v20, %v2371_v25 }
 0xea5   : > { %v2376_v30 = vmul.f32 %v2375_v27, %v2359_v4 }
 0xea7   : > { %v2380_v31 = vmul.f32 %v5054_v26, %v2376_v30 }
 0xea9   : > { %v2384_v32 = vadd.f32 %v5055_v28, %v2380_v31 }
 0xeab   : > { %v5707_v33 = vpack.c.bf16 %v2384_v32, %v2384_v32 }
 0xead   : > { %4455 = vmatmul.msk.bf16.vlgmr.msrb.gmra.mxu3 %vm1379_vm0, %v5707_v33  ;;  %4464 = vmatmul.msk.bf16.vlgmr.msrb.gmra.mxu0 %vm1379_vm0, %v5707_v33 }
 0xeae   : > { %4473 = vmatmul.msk.bf16.vlgmr.msra.gmra.mxu1 %vm1379_vm0, %v5707_v33 }
 0xebd   : > { %4488 = vmatmul.msk.bf16.vlgmr.msra.gmra.mxu0 %vm1379_vm0, %v5707_v33 }
 0xebe   : > { %4501 = vmatmul.msk.bf16.vlgmr.msrb.gmra.mxu1 %vm1379_vm0, %v5707_v33 }
 0xf2a   : > { %v2443_v36 = vpop.f32.mrf.mxu0 }
 0xf2b   : > { %v2477_v37 = vpack.c.bf16 %v2443_v36, %v2443_v36  ;;  %v2472_v38 = vpop.f32.mrf.mxu1  ;;  %v4905_v36 = vld [vmem:[%s6056_s3 + $0x20] sm:$0xff] }
 0xf2c   : > { %v2510_v41 = vpack.c.bf16 %v2472_v38, %v2472_v38 }
 0xf2d   : > { %v2482_v42 = vsel %vm1510_vm6, %v2477_v37, 0 }
 0xf2e   : > { %v2520_v44 = vand.u32 %v5719_v40, %v2510_v41  ;;  %2491 = vmatpush.bf16.xpose.msra.mxu2 %v2482_v42  ;;  %v4517_v42 = vld [vmem:[%s6061_s28 + $0x4] sm:$0xf] }
 0xf30   : > { %2529 = vmatpush.bf16.msra.mxu3 %v2520_v44  ;;  %v2414_v46 = vpop.f32.mrf.mxu3  ;;  %v2687_v44 = vsel %vm1546_vm5, %v4517_v42, 0 }
 0xf31   : > { %v2476_v48 = vpack.c.bf16 %v2414_v46, %v2414_v46  ;;  %2696 = vmatpush.bf16.msra.mxu1 %v2687_v44  ;;  %v4907_v46 = vld [vmem:[%s6057_s5 + $0x20] sm:$0xff] }
 0xf32   : > { %v2445_v47 = vpop.f32.mrf.mxu0 }
 0xf33   : > { %v2474_v49 = vpop.f32.mrf.mxu1 }
 0xf35   : > { %4474 = vmatmul.msk.bf16.vlgmr.msra.gmra.mxu2 %vm1510_vm6, %v2476_v48  ;;  %v4910_v48 = vld [vmem:[%s6055_s11 + $0x38] sm:$0xff] }
 0xf36   : > { %2620 = vmatpush.bf16.msrb.mxu2 %v4902_v39 }
 0xf38   : > { %v2416_v50 = vpop.f32.mrf.mxu3 }
 0xf39   : > { %v4909_v50 = vld [vmem:[%s6055_s11 + $0x30] sm:$0xff]  ;;  %s6069_s11 = sld [smem:[#allocation14_spill]] }
 0xf3a   : > { %2621 = vmatpush.bf16.msrb.mxu2 %v4901_v45  ;;  %v2563_v59 = vpop.f32.mrf.mxu0  ;;  %v4908_v45 = vld [vmem:[%s6057_s5 + $0x28] sm:$0xff] }
 0xf3b   : > { %v2593_v51 = vpop.f32.mrf.mxu1  ;;  %v2627_v14 = vpack.c.bf16 %v2563_v59, %v2563_v59  ;;  %2804 = vmatpush.bf16.msrb.mxu1 %v4908_v45 }
 0xf3c   : > { %v2628_v52 = vpack.c.bf16 %v2593_v51, %v2593_v51 }
 0xf3e   : > { %v2633_v53 = vsel %vm1510_vm6, %v2628_v52, 0  ;;  %2715 = vmatpush.bf16.msra.mxu2 %v2706_v16 }
 0xf3f   : > { %2642 = vmatpush.bf16.xpose.msrb.mxu3 %v2633_v53  ;;  %2805 = vmatpush.bf16.msrb.mxu1 %v4907_v46  ;;  %v4912_v53 = vld [vmem:[%s6056_s3 + $0x38] sm:$0xff] }
 0xf42   : > { %v2565_v54 = vpop.f32.mrf.mxu0 }
 0xf43   : > { %v2595_v55 = vpop.f32.mrf.mxu1 }
 0xf44   : > { %v4911_v55 = vld [vmem:[%s6056_s3 + $0x30] sm:$0xff]  ;;  %s6063_s3 = sld [smem:[#allocation27_spill]] }
 0xf45   : > { %4514 = vmatmul.msk.bf16.vlgmr.msrb.gmra.mxu2 %vm1379_vm0, %v5707_v33 }
 0xfb8   : > { %v2493_v57 = vpop.f32.mrf.mxu2 }
 0xfb9   : > { %v2494_v58 = vadd.f32 %v2493_v57, %v5730_v56 }
 0xfbb   : > { %v2498_v61 = vsel %vm2497_vm1, %v2494_v58, -inf }
 0xfbc   : > { %2499 = vmax.xlane.f32.xlu2 %v2498_v61 }
 0xfc0   : > { %v2495_v62 = vpop.f32.mrf.mxu2 }
 0xfc8   : > { %v2623_v63 = vpop.f32.mrf.mxu2 }
 0xfc9   : > { %v2660_v2 = vpack.c.bf16 %v2623_v63, %v2623_v63 }
 0xfcb   : > { %v2665_v3 = vand.u32 %v2660_v2, %v5719_v40  ;;  %v4561_v2 = vld [vmem:[%s6061_s28 + $0x8] sm:$0xf] }
 0xfcd   : > { %2674 = vmatpush.bf16.msrb.mxu0 %v2665_v3 }
 0xfd0   : > { %v2625_v29 = vpop.f32.mrf.mxu2 }
 0xfd1   : > { %2774 = vmatpush.bf16.msra.mxu0 %v4906_v35  ;;  %v2871_v29 = vsel %vm1546_vm5, %v4561_v2, 0 }
 0xfd5   : > { %2775 = vmatpush.bf16.msra.mxu0 %v4905_v36 }
0x102f   : > { %v2500_v60 = vpop.xlane.xlu2 %2499 }
0x1030   : > { %v2501_v4 = vsub.f32 %v2494_v58, %v2500_v60 }
0x1032   : > { %v2502_v5 = vmul.f32 1.442695, %v2501_v4 }
0x1034   : > { %5092 = vpow2.f32 %v2502_v5 }
0x103a   : > { %v5093_v0 = vpop.eup %5092 }
0x103b   : > { %v2504_v6 = vsel %vm2497_vm1, %v5093_v0, 0.0 }
0x103c   : > { %2505 = vadd.xlane.f32.xlu0 %v2504_v6 }
0x10af   : > { %v2506_v7 = vpop.xlane.xlu0 %2505 }
0x10b0   : > { %5094 = vrcp.f32 %v2506_v7 }
0x10b6   : > { %v5095_v9 = vpop.eup %5094 }
0x10b7   : > { %v2508_v10 = vmul.f32 %v5095_v9, %v5093_v0 }
0x10b9   : > { %v2509_v12 = vpack.c.bf16 %v2508_v10, %v2508_v10 }
0x10bb   : > { %4475 = vmatmul.msk.bf16.vlgmr.msra.gmra.mxu3 %vm2511_vm2, %v2509_v12 }
0x10bc   : > { %2744 = vmatpush.bf16.msra.mxu3 %v4904_v11 }
0x10c0   : > { %2745 = vmatpush.bf16.msra.mxu3 %v4903_v13 }
0x10cb   : > { %4515 = vmatmul.msk.bf16.vlgmr.msrb.gmra.mxu3 %vm1510_vm6, %v2627_v14 }
0x10db   : > { %4532 = vmatmul.msk.bf16.vlgmr.msra.gmra.mxu3 %vm1379_vm0, %v5707_v33 }
0x113e   : > { %v2531_v17 = vpop.f32.mrf.mxu3 }
0x113f   : > { %v2535_v18 = vpack.c.bf16 %v2531_v17, %v2531_v17 }
0x1141   : > { %4519 = vmatmul.msk.bf16.vlgmr.msra.gmra.mxu2 %vm1510_vm6, %v2535_v18 }
0x1146   : > { %v2533_v19 = vpop.f32.mrf.mxu3 }
0x114e   : > { %v2644_v20 = vpop.f32.mrf.mxu3 }
0x114f   : > { %v2645_v21 = vadd.f32 %v2644_v20, %v5730_v56  ;;  %v4914_v20 = vld [vmem:[%s6057_s5 + $0x38] sm:$0xff] }
0x1151   : > { %v2648_v22 = vsel %vm2497_vm1, %v2645_v21, -inf }
0x1152   : > { %2649 = vmax.xlane.f32.xlu1 %v2648_v22 }
0x1156   : > { %v2646_v23 = vpop.f32.mrf.mxu3 }
0x115e   : > { %v2747_v24 = vpop.f32.mrf.mxu3 }
0x115f   : > { %v2811_v58 = vpack.c.bf16 %v2747_v24, %v2747_v24 }
0x1166   : > { %v2749_v25 = vpop.f32.mrf.mxu3 }
0x11c4   : > { %v5747_v26 = vpop.f32.mrf.mxu2 }
0x11c5   : > { %v2650_v27 = vpop.xlane.xlu1 %2649 }
0x11c6   : > { %v2651_v28 = vsub.f32 %v2645_v21, %v2650_v27  ;;  %v4913_v21 = vld [vmem:[%s6057_s5 + $0x30] sm:$0xff]  ;;  %s6064_s5 = sld [smem:[#allocation29_spill]] }
0x11c8   : > { %v2652_v30 = vmul.f32 1.442695, %v2651_v28 }
0x11ca   : > { %5096 = vpow2.f32 %v2652_v30 }
0x11cc   : > { %v2719_v31 = vpop.f32.mrf.mxu2 }
0x11d0   : > { %v5097_v32 = vpop.eup %5096 }
0x11d1   : > { %v2654_v34 = vsel %vm2497_vm1, %v5097_v32, 0.0 }
0x11d2   : > { %2655 = vadd.xlane.f32.xlu2 %v2654_v34 }
0x1245   : > { %v2656_v37 = vpop.xlane.xlu2 %2655 }
0x1246   : > { %5098 = vrcp.f32 %v2656_v37 }
0x124c   : > { %v5099_v38 = vpop.eup %5098 }
0x124d   : > { %v2658_v39 = vmul.f32 %v5099_v38, %v5097_v32 }
0x124f   : > { %v2659_v41 = vpack.c.bf16 %v2658_v39, %v2658_v39 }
0x1251   : > { %4516 = vmatmul.msk.bf16.vlgmr.msrb.gmra.mxu0 %vm2511_vm2, %v2659_v41 }
0x1252   : > { %2880 = vmatpush.bf16.msrb.mxu0 %v2871_v29 }
0x1261   : > { %4545 = vmatmul.msk.bf16.vlgmr.msra.gmra.mxu0 %vm1379_vm0, %v5707_v33 }
0x12ce   : > { %v2676_v47 = vpop.f32.mrf.mxu0 }
0x12cf   : > { %v2680_v49 = vpack.c.bf16 %v2676_v47, %v2676_v47 }
0x12d1   : > { %4518 = vmatmul.msk.bf16.vlgmr.msra.gmra.mxu1 %vm1510_vm6, %v2680_v49 }
0x12d2   : > { %2910 = vmatpush.bf16.msra.mxu1 %v4910_v48 }
0x12d6   : > { %v2678_v59 = vpop.f32.mrf.mxu0  ;;  %2911 = vmatpush.bf16.msra.mxu1 %v4909_v50 }
0x12de   : > { %v2777_v51 = vpop.f32.mrf.mxu0 }
0x12df   : > { %v2812_v52 = vpack.c.bf16 %v2777_v51, %v2777_v51 }
0x12e1   : > { %v2817_v54 = vsel %vm1510_vm6, %v2812_v52, 0  ;;  %4558 = vmatmul.msk.bf16.vlgmr.msrb.gmra.mxu1 %vm1379_vm0, %v5707_v33 }
0x12e2   : > { %2826 = vmatpush.bf16.xpose.msrb.mxu2 %v2817_v54 }
0x12e6   : > { %v2779_v57 = vpop.f32.mrf.mxu0 }
0x12e9   : > { %4559 = vmatmul.msk.bf16.vlgmr.msrb.gmra.mxu2 %vm1510_vm6, %v2811_v58 }
0x12ea   : > { %2940 = vmatpush.bf16.msra.mxu2 %v4912_v53 }
0x12ee   : > { %2941 = vmatpush.bf16.msra.mxu2 %v4911_v55 }
0x12f1   : > { %4575 = vmatmul.msk.bf16.vlgmr.msra.gmra.mxu1 %vm1379_vm0, %v5707_v33 }
0x12f9   : > { %4588 = vmatmul.msk.bf16.vlgmr.msra.gmra.mxu2 %vm1379_vm0, %v5707_v33 }
0x134e   : > { %v2698_v61 = vpop.f32.mrf.mxu1 }
0x134f   : > { %v2718_v37 = vadd.f32 %v5747_v26, %v2698_v61  ;;  %v5056_v61 = vld [vmem:[%s6062_s1] ss:$0 sm:$0xff]  ;;  %s6065_s1 = sld [smem:[#allocation25_spill]] }
0x1356   : > { %v2700_v62 = vpop.f32.mrf.mxu1 }
0x135e   : > { %v2807_v63 = vpop.f32.mrf.mxu1 }
0x135f   : > { %v2844_v3 = vpack.c.bf16 %v2807_v63, %v2807_v63 }
0x1361   : > { %v2849_v60 = vand.u32 %v2844_v3, %v5719_v40 }
0x1363   : > { %2858 = vmatpush.bf16.msrb.mxu3 %v2849_v60 }
0x1366   : > { %v2809_v4 = vpop.f32.mrf.mxu1 }
0x1367   : > { %2970 = vmatpush.bf16.msra.mxu3 %v4914_v20  ;;  %v4919_v20 = vld [vmem:[%s6064_s5 + $0x10] sm:$0xff] }
0x136b   : > { %2971 = vmatpush.bf16.msra.mxu3 %v4913_v21 }
0x136c   : > { %v2828_v5 = vpop.f32.mrf.mxu2 }
0x136d   : > { %v2829_v0 = vadd.f32 %v2828_v5, %v5730_v56 }
0x136e   : > { %v2913_v6 = vpop.f32.mrf.mxu1 }
0x136f   : > { %v2832_v7 = vsel %vm2497_vm1, %v2829_v0, -inf  ;;  %v2977_v32 = vpack.c.bf16 %v2913_v6, %v2913_v6  ;;  %v4916_v6 = vld [vmem:[%s6063_s3 + $0x8] sm:$0xff] }
0x1370   : > { %2833 = vmax.xlane.f32.xlu0 %v2832_v7  ;;  %v4915_v7 = vld [vmem:[%s6063_s3] sm:$0xff]  ;;  %s6067_s3 = sld [smem:[#allocation28_spill]] }
0x1374   : > { %v2830_v9 = vpop.f32.mrf.mxu2 }
0x1376   : > { %v2915_v10 = vpop.f32.mrf.mxu1 }
0x137c   : > { %v2943_v11 = vpop.f32.mrf.mxu2 }
0x137d   : > { %v2978_v12 = vpack.c.bf16 %v2943_v11, %v2943_v11  ;;  %v4923_v11 = vld [vmem:[%s6064_s5 + $0x30] sm:$0xff] }
0x137f   : > { %v2983_v13 = vsel %vm1510_vm6, %v2978_v12, 0 }
0x1380   : > { %2992 = vmatpush.bf16.xpose.msra.mxu0 %v2983_v13  ;;  %v4922_v13 = vld [vmem:[%s6064_s5 + $0x28] sm:$0xff] }
0x1384   : > { %v2945_v14 = vpop.f32.mrf.mxu2 }
0x1385   : > { %v4921_v14 = vld [vmem:[%s6064_s5 + $0x20] sm:$0xff] }
0x13e3   : > { %v2834_v15 = vpop.xlane.xlu0 %2833 }
0x13e4   : > { %v2835_v16 = vsub.f32 %v2829_v0, %v2834_v15 }
0x13e6   : > { %v2836_v17 = vmul.f32 1.442695, %v2835_v16 }
0x13e8   : > { %5100 = vpow2.f32 %v2836_v17  ;;  %v4920_v17 = vld [vmem:[%s6064_s5 + $0x18] sm:$0xff] }
0x13ee   : > { %v5101_v18 = vpop.eup %5100 }
0x13ef   : > { %v2838_v19 = vsel %vm2497_vm1, %v5101_v18, 0.0 }
0x13f0   : > { %2839 = vadd.xlane.f32.xlu1 %v2838_v19 }
0x1463   : > { %v2840_v22 = vpop.xlane.xlu1 %2839 }
0x1464   : > { %5102 = vrcp.f32 %v2840_v22 }
0x146a   : > { %v5103_v23 = vpop.eup %5102 }
0x146b   : > { %v2842_v24 = vmul.f32 %v5103_v23, %v5101_v18  ;;  %v5057_v23 = vld [vmem:[%s6065_s1] ss:$0 sm:$0xff]  ;;  %s6071_s1 = sld [smem:[#allocation34_spill]] }
0x146d   : > { %v2843_v25 = vpack.c.bf16 %v2842_v24, %v2842_v24 }
0x146f   : > { %4560 = vmatmul.msk.bf16.vlgmr.msrb.gmra.mxu3 %vm2511_vm2, %v2843_v25  ;;  %v5058_v25 = vld [vmem:[%s6066_s6] ss:$0 sm:$0xff]  ;;  %s6070_s6 = sld [smem:[#allocation33_spill]] }
0x1470   : > { %3121 = vmatpush.bf16.msrb.mxu3 %v4916_v6 }
0x1474   : > { %3122 = vmatpush.bf16.msrb.mxu3 %v4915_v7 }
0x147f   : > { %4601 = vmatmul.msk.bf16.vlgmr.msra.gmra.mxu3 %vm1379_vm0, %v5707_v33 }
0x14f2   : > { %v2860_v27 = vpop.f32.mrf.mxu3 }
0x14f3   : > { %v2864_v28 = vpack.c.bf16 %v2860_v27, %v2860_v27 }
0x14f5   : > { %4562 = vmatmul.msk.bf16.vlgmr.msrb.gmra.mxu0 %vm1510_vm6, %v2864_v28 }
0x14fa   : > { %v2862_v30 = vpop.f32.mrf.mxu3 }
0x1502   : > { %v2973_v31 = vpop.f32.mrf.mxu3 }
0x1503   : > { %v3010_v34 = vpack.c.bf16 %v2973_v31, %v2973_v31 }
0x1505   : > { %v3015_v35 = vand.u32 %v3010_v34, %v5719_v40  ;;  %4602 = vmatmul.msk.bf16.vlgmr.msra.gmra.mxu0 %vm1510_vm6, %v2977_v32  ;;  %v4918_v32 = vld [vmem:[%s6064_s5 + $0x8] sm:$0xff]  ;;  %v4917_v34 = vld [vmem:[%s6064_s5] sm:$0xff] }
0x1507   : > { %3024 = vmatpush.bf16.msrb.mxu1 %v3015_v35  ;;  %v5059_v35 = vld [vmem:[%s6067_s3] ss:$0 sm:$0xff]  ;;  %s6073_s3 = sld [smem:[#allocation31_spill]] }
0x150a   : > { %v2975_v36 = vpop.f32.mrf.mxu3 }
0x1572   : > { %v2882_v38 = vpop.f32.mrf.mxu0 }
0x1573   : > { %v2886_v39 = vadd.f32 %v2882_v38, %v2718_v37 }
0x157a   : > { %v2884_v41 = vpop.f32.mrf.mxu0 }
0x1582   : > { %v2994_v33 = vpop.f32.mrf.mxu0 }
0x1583   : > { %v2995_v42 = vadd.f32 %v2994_v33, %v5730_v56  ;;  %v4604_v56 = vld [vmem:[%s6061_s28 + $0xc] sm:$0xf]  ;;  %v5060_v33 = vld [vmem:[%s6068_s8] ss:$0 sm:$0xff]  ;;  %s6074_s8 = sld [smem:[#allocation32_spill]] }
0x1584   : > { %v3037_v52 = vsel %vm1546_vm5, %v4604_v56, 0 }
0x1585   : > { %v2998_v44 = vsel %vm2497_vm1, %v2995_v42, -inf  ;;  %3046 = vmatpush.bf16.msrb.mxu2 %v3037_v52  ;;  %v4926_v52 = vld [vmem:[%s6070_s6 + $0x8] sm:$0xff] }
0x1586   : > { %2999 = vmax.xlane.f32.xlu2 %v2998_v44 }
0x1589   : > { %3299 = vmatpush.bf16.msra.mxu2 %v4926_v52  ;;  %v4938_v52 = vld [vmem:[%s6070_s6 + $0x28] sm:$0xff] }
0x158a   : > { %v2996_v45 = vpop.f32.mrf.mxu0 }
0x15f9   : > { %v3000_v46 = vpop.xlane.xlu2 %2999 }
0x15fa   : > { %v3001_v47 = vsub.f32 %v2995_v42, %v3000_v46  ;;  %v3212_v46 = vld [vmem:[%s6069_s11] sm:$0xff]  ;;  %s6075_s11 = sld [smem:[#allocation36_spill]] }
0x15fc   : > { %v3002_v40 = vmul.f32 1.442695, %v3001_v47 }
0x15fe   : > { %5104 = vpow2.f32 %v3002_v40 }
0x1604   : > { %v5105_v48 = vpop.eup %5104 }
0x1605   : > { %v3004_v49 = vsel %vm2497_vm1, %v5105_v48, 0.0 }
0x1606   : > { %3005 = vadd.xlane.f32.xlu0 %v3004_v49 }
0x1679   : > { %v3006_v26 = vpop.xlane.xlu0 %3005 }
0x167a   : > { %5106 = vrcp.f32 %v3006_v26 }
0x1680   : > { %v5107_v50 = vpop.eup %5106 }
0x1681   : > { %v3008_v59 = vmul.f32 %v5107_v50, %v5105_v48 }
0x1683   : > { %v3009_v51 = vpack.c.bf16 %v3008_v59, %v3008_v59 }
0x1685   : > { %4603 = vmatmul.msk.bf16.vlgmr.msrb.gmra.mxu1 %vm2511_vm2, %v3009_v51 }
0x1702   : > { %v3026_v53 = vpop.f32.mrf.mxu1 }
0x1703   : > { %v3030_v54 = vpack.c.bf16 %v3026_v53, %v3026_v53  ;;  %v4930_v53 = vld [vmem:[%s6072_s13 + $0x8] sm:$0xff] }
0x1705   : > { %4605 = vmatmul.msk.bf16.vlgmr.msrb.gmra.mxu2 %vm1510_vm6, %v3030_v54  ;;  %v4934_v54 = vld [vmem:[%s6071_s1 + $0x18] sm:$0xff] }
0x170a   : > { %v3028_v55 = vpop.f32.mrf.mxu1 }
0x170b   : > { %v4925_v55 = vld [vmem:[%s6070_s6] sm:$0xff] }
0x170c   : > { %3300 = vmatpush.bf16.msra.mxu2 %v4925_v55  ;;  %v3418_v55 = vld [vmem:[%s6075_s11] sm:$0xf] }
0x1788   : > { %v3048_v57 = vpop.f32.mrf.mxu2 }
0x1789   : > { %v3052_v58 = vadd.f32 %v3048_v57, %v2886_v39  ;;  %v4927_v57 = vld [vmem:[%s6071_s1] sm:$0xff] }
0x178b   : > { %v3053_v62 = vadd.f32 %v3052_v58, %v5687_v1  ;;  %v4924_v1 = vld [vmem:[%s6064_s5 + $0x38] sm:$0xff]  ;;  %v4929_v58 = vld [vmem:[%s6072_s13] sm:$0xff]  ;;  %s4850_s5 = sshll.u32 %s5504_s0, 3 }
0x178c   : > { %3198 = vmatpush.bf16.msrb.mxu0 %v4924_v1  ;;  %v5061_v1 = vld [vmem:[%s6073_s3] ss:$0 sm:$0xff]  ;;  %s6076_s3 = sld [smem:[#allocation37_spill]] }
0x178d   : > { %v3058_v63 = vadd.f32 %v5056_v61, %v3053_v62  ;;  %v4933_v61 = vld [vmem:[%s6071_s1 + $0x10] sm:$0xff] }
0x178f   : > { %v3061_v2 = vsel %vm2354_vm10, %v3058_v63, 0.0 }
0x1790   : > { %3062 = vadd.xlane.f32.xlu1 %v3061_v2  ;;  %v3050_v3 = vpop.f32.mrf.mxu2  ;;  %3199 = vmatpush.bf16.msrb.mxu0 %v4923_v11 }
0x1791   : > { %v4931_v3 = vld [vmem:[%s6070_s6 + $0x10] sm:$0xff] }
0x1794   : > { %3200 = vmatpush.bf16.msrb.mxu0 %v4922_v13 }
0x1798   : > { %3201 = vmatpush.bf16.msrb.mxu0 %v4921_v14 }
0x179c   : > { %3202 = vmatpush.bf16.msrb.mxu0 %v4920_v17 }
0x17a0   : > { %3203 = vmatpush.bf16.msrb.mxu0 %v4919_v20 }
0x17a4   : > { %3204 = vmatpush.bf16.msrb.mxu0 %v4918_v32 }
0x17a8   : > { %3205 = vmatpush.bf16.msrb.mxu0 %v4917_v34 }
0x17ac   : > { %3472 = vmatpush.bf16.msra.mxu0 %v4934_v54 }
0x17b0   : > { %3473 = vmatpush.bf16.msra.mxu0 %v4933_v61 }
0x1803   : > { %v3063_v29 = vpop.xlane.xlu1 %3062 }
0x1804   : > { %v3064_v60 = vmul.f32 %v3063_v29, %v5538_v8 }
0x1806   : > { %v3065_v4 = vsub.f32 %v3058_v63, %v3064_v60 }
0x1808   : > { %v3066_v5 = vmul.f32 %v3065_v4, %v3065_v4 }
0x180a   : > { %v3067_v0 = vsel %vm2354_vm10, %v3066_v5, 0.0 }
0x180b   : > { %3068 = vadd.xlane.f32.xlu2 %v3067_v0 }
0x187e   : > { %v3069_v9 = vpop.xlane.xlu2 %3068 }
0x187f   : > { %v3070_v10 = vmul.f32 %v3069_v9, %v5538_v8 }
0x1881   : > { %v3071_v12 = vadd.f32 1e-05, %v3070_v10  ;;  %v5062_v10 = vld [vmem:[%s6074_s8] ss:$0 sm:$0xff]  ;;  %s6077_s8 = sld [smem:[#allocation40_spill]] }
0x1883   : > { %5108 = vrsqrt.f32 %v3071_v12  ;;  %vm3078_vm4 = vweird.f32 %v3071_v12 }
0x1889   : > { %v5109_v15 = vpop.eup %5108 }
0x188a   : > { %v3073_v16 = vmul.f32 %v5109_v15, %v3071_v12  ;;  %vm3079_vm3 = vweird.f32 %v5109_v15 }
0x188b   : > { %vm3080_vm7 = vmor %vm3078_vm4, %vm3079_vm3 }
0x188c   : > { %v3074_v18 = vmul.f32 %v5109_v15, %v3073_v16 }
0x188e   : > { %v3075_v19 = vmul.f32 0.5, %v3074_v18 }
0x1890   : > { %v3076_v21 = vsub.f32 1.5, %v3075_v19 }
0x1892   : > { %v3077_v22 = vmul.f32 %v5109_v15, %v3076_v21 }
0x1894   : > { %v3081_v24 = vsel %vm3080_vm7, %v5109_v15, %v3077_v22 }
0x1895   : > { %v3082_v27 = vmul.f32 %v3081_v24, %v3065_v4  ;;  %v4936_v24 = vld [vmem:[%s6072_s13 + $0x18] sm:$0xff] }
0x1897   : > { %v3086_v28 = vmul.f32 %v5057_v23, %v3082_v27 }
0x1899   : > { %v3090_v30 = vadd.f32 %v5058_v25, %v3086_v28 }
0x189b   : > { %v3091_v31 = vpack.c.bf16 %v3090_v30, %v3090_v30  ;;  %v4935_v30 = vld [vmem:[%s6072_s13 + $0x10] sm:$0xff] }
0x189d   : > { %4614 = vmatmul.msk.bf16.vlgmr.msrb.gmra.mxu3 %vm1379_vm0, %v3091_v31 }
0x1920   : > { %v3124_v36 = vpop.f32.mrf.mxu3 }
0x1921   : > { %v3125_v37 = vadd.f32 %v5059_v35, %v3124_v36 }
0x1923   : > { %v3128_v38 = vmax.f32 %v3125_v37, 0.0 }
0x1925   : > { %v3129_v39 = vpack.c.bf16 %v3128_v38, %v3128_v38  ;;  %v5860_v38 = vld [vmem:[%s6042_s9] sm:$0xff] }
0x1927   : > { %3206 = vmatmul.bf16.vlgmr.msrb.gmra.mxu0 %v3129_v39 }
0x1928   : > { %v3126_v41 = vpop.f32.mrf.mxu3 }
0x19a4   : > { %v3207_v42 = vpop.f32.mrf.mxu0 }
0x19a5   : > { %v3208_v44 = vadd.f32 %v5060_v33, %v3207_v42 }
0x19a7   : > { %v3211_v45 = vadd.f32 %v3208_v44, %v3058_v63  ;;  %v4932_v63 = vld [vmem:[%s6070_s6 + $0x18] sm:$0xff] }
0x19a9   : > { %4647 = vmatpush.msk.msra.mxu1 %vm3216_vm8, %v3211_v45 }
0x19aa   : > { %4648 = vmatmul.msk.f32.vlgmr.msra.gmra.mxu1 %vm2511_vm2, %v3212_v46 }
0x19ab   : > { %3357 = vmatpush.bf16.msrb.mxu1 %v4930_v53  ;;  %v4937_v53 = vld [vmem:[%s6070_s6 + $0x20] sm:$0xff] }
0x19ac   : > { %v3209_v47 = vpop.f32.mrf.mxu0 }
0x19af   : > { %3358 = vmatpush.bf16.msrb.mxu1 %v4929_v58 }
0x19b3   : > { %3442 = vmatpush.bf16.msra.mxu1 %v4932_v63 }
0x19b7   : > { %3443 = vmatpush.bf16.msra.mxu1 %v4931_v3 }
0x1a27   : > { %v3237_v40 = vpop.f32.mrf.mxu1 }
0x1a28   : > { %v5819_v48 = vadd.f32 %v3237_v40, %v5672_v43  ;;  %v4928_v43 = vld [vmem:[%s6071_s1 + $0x8] sm:$0xff] }
0x1a29   : > { %3328 = vmatpush.bf16.msra.mxu3 %v4928_v43 }
0x1a2a   : > { %v3243_v49 = vsel %vm1379_vm0, %v5819_v48, 0.0 }
0x1a2b   : > { %3244 = vadd.xlane.f32.xlu0 %v3243_v49 }
0x1a2d   : > { %3329 = vmatpush.bf16.msra.mxu3 %v4927_v57  ;;  %v3588_v57 = vsel %vm1546_vm5, %v3418_v55, 0 }
0x1a9e   : > { %v3245_v26 = vpop.xlane.xlu0 %3244 }
0x1a9f   : > { %v3246_v50 = vmul.f32 %v3245_v26, %v5538_v8 }
0x1aa1   : > { %v3247_v59 = vsub.f32 %v5819_v48, %v3246_v50 }
0x1aa3   : > { %v3248_v51 = vmul.f32 %v3247_v59, %v3247_v59 }
0x1aa5   : > { %v3249_v56 = vsel %vm1379_vm0, %v3248_v51, 0.0 }
0x1aa6   : > { %3250 = vadd.xlane.f32.xlu1 %v3249_v56 }
0x1b19   : > { %v3251_v62 = vpop.xlane.xlu1 %3250 }
0x1b1a   : > { %v3252_v2 = vmul.f32 %v3251_v62, %v5538_v8 }
0x1b1c   : > { %v3253_v29 = vadd.f32 1e-05, %v3252_v2 }
0x1b1e   : > { %5110 = vrsqrt.f32 %v3253_v29  ;;  %vm3260_vm10 = vweird.f32 %v3253_v29 }
0x1b24   : > { %v5111_v60 = vpop.eup %5110 }
0x1b25   : > { %v3255_v4 = vmul.f32 %v5111_v60, %v3253_v29  ;;  %vm3261_vm9 = vweird.f32 %v5111_v60 }
0x1b26   : > { %vm3262_vm11 = vmor %vm3260_vm10, %vm3261_vm9 }
0x1b27   : > { %v3256_v5 = vmul.f32 %v5111_v60, %v3255_v4 }
0x1b29   : > { %v3257_v0 = vmul.f32 0.5, %v3256_v5 }
0x1b2b   : > { %v3258_v6 = vsub.f32 1.5, %v3257_v0 }
0x1b2d   : > { %v3259_v7 = vmul.f32 %v5111_v60, %v3258_v6 }
0x1b2f   : > { %v3263_v9 = vsel %vm3262_vm11, %v5111_v60, %v3259_v7 }
0x1b30   : > { %v3264_v11 = vmul.f32 %v3263_v9, %v3247_v59 }
0x1b32   : > { %v3268_v12 = vmul.f32 %v5061_v1, %v3264_v11  ;;  %v4940_v11 = vld [vmem:[%s6071_s1 + $0x28] sm:$0xff] }
0x1b34   : > { %v3272_v13 = vadd.f32 %v5062_v10, %v3268_v12  ;;  %v4939_v12 = vld [vmem:[%s6071_s1 + $0x20] sm:$0xff] }
0x1b36   : > { %v5839_v14 = vpack.c.bf16 %v3272_v13, %v3272_v13 }
0x1b38   : > { %4657 = vmatmul.msk.bf16.vlgmr.msra.gmra.mxu2 %vm1379_vm0, %v5839_v14  ;;  %4666 = vmatmul.msk.bf16.vlgmr.msra.gmra.mxu3 %vm1379_vm0, %v5839_v14 }
0x1b39   : > { %4675 = vmatmul.msk.bf16.vlgmr.msrb.gmra.mxu1 %vm1379_vm0, %v5839_v14  ;;  %4703 = vmatmul.msk.bf16.vlgmr.msra.gmra.mxu0 %vm1379_vm0, %v5839_v14 }
0x1b49   : > { %4690 = vmatmul.msk.bf16.vlgmr.msra.gmra.mxu1 %vm1379_vm0, %v5839_v14 }
0x1bb6   : > { %v3360_v15 = vpop.f32.mrf.mxu1  ;;  %v3475_v16 = vpop.f32.mrf.mxu0 }
0x1bb7   : > { %v3397_v17 = vpack.c.bf16 %v3360_v15, %v3360_v15  ;;  %v3510_v18 = vpack.c.bf16 %v3475_v16, %v3475_v16 }
0x1bb9   : > { %v3402_v19 = vsel %vm1546_vm5, %v3397_v17, 0  ;;  %v3515_v20 = vsel %vm1510_vm6, %v3510_v18, 0  ;;  %v4719_v18 = vld [vmem:[%s6075_s11 + $0x4] sm:$0xf] }
0x1bba   : > { %3411 = vmatpush.bf16.msrb.mxu3 %v3402_v19  ;;  %v3569_v19 = vsel %vm1546_vm5, %v4719_v18, 0 }
0x1bbb   : > { %v3302_v21 = vpop.f32.mrf.mxu2  ;;  %v3331_v22 = vpop.f32.mrf.mxu3  ;;  %3578 = vmatpush.bf16.msrb.mxu0 %v3569_v19 }
0x1bbc   : > { %v3365_v23 = vpack.c.bf16 %v3331_v22, %v3331_v22  ;;  %v3364_v34 = vpack.c.bf16 %v3302_v21, %v3302_v21  ;;  %v4941_v21 = vld [vmem:[%s6072_s13 + $0x20] sm:$0xff] }
0x1bbe   : > { %3524 = vmatpush.bf16.xpose.msra.mxu3 %v3515_v20  ;;  %v3370_v25 = vsel %vm1510_vm6, %v3365_v23, 0  ;;  %v3362_v27 = vpop.f32.mrf.mxu1  ;;  %v3477_v28 = vpop.f32.mrf.mxu0  ;;  %v4942_v20 = vld [vmem:[%s6072_s13 + $0x28] sm:$0xff]  ;;  %v4944_v23 = vld [vmem:[%s6070_s6 + $0x38] sm:$0xff] }
0x1bbf   : > { %3379 = vmatpush.bf16.xpose.msrb.mxu2 %v3370_v25  ;;  %3686 = vmatpush.bf16.msra.mxu0 %v4942_v20  ;;  %v4943_v25 = vld [vmem:[%s6070_s6 + $0x30] sm:$0xff]  ;;  %s4106_s6 = scalar_lea.hbm %s5481_s12, %s4850_s5  ;;  %s5151_s5 = scalar_lea.hbm %s5481_s12, 16 }
0x1bc3   : > { %v3304_v31 = vpop.f32.mrf.mxu2  ;;  %v3333_v32 = vpop.f32.mrf.mxu3  ;;  %3687 = vmatpush.bf16.msra.mxu0 %v4941_v21 }
0x1bc4   : > { %v4946_v31 = vld [vmem:[%s6071_s1 + $0x38] sm:$0xff] }
0x1bc6   : > { %v3445_v35 = vpop.f32.mrf.mxu1  ;;  %4676 = vmatmul.msk.bf16.vlgmr.msrb.gmra.mxu2 %vm1510_vm6, %v3364_v34  ;;  %v4945_v34 = vld [vmem:[%s6071_s1 + $0x30] sm:$0xff]  ;;  %s6079_s1 = sld [smem:[#allocation39_spill]] }
0x1bc7   : > { %3502 = vmatpush.bf16.msra.mxu2 %v4936_v24  ;;  %v3509_v54 = vpack.c.bf16 %v3445_v35, %v3445_v35 }
0x1bcb   : > { %3503 = vmatpush.bf16.msra.mxu2 %v4935_v30 }
0x1bce   : > { %v3447_v36 = vpop.f32.mrf.mxu1 }
0x1bcf   : > { %3597 = vmatpush.bf16.msrb.mxu2 %v3588_v57 }
0x1bd6   : > { %4716 = vmatmul.msk.bf16.vlgmr.msra.gmra.mxu2 %vm1379_vm0, %v5839_v14 }
0x1c49   : > { %v3381_v37 = vpop.f32.mrf.mxu2 }
0x1c4a   : > { %v3382_v39 = vadd.f32 %v5860_v38, %v3381_v37 }
0x1c4c   : > { %v3385_v41 = vsel %vm1510_vm6, %v3382_v39, -inf }
0x1c4d   : > { %3386 = vmax.xlane.f32.xlu2 %v3385_v41 }
0x1c51   : > { %v3383_v33 = vpop.f32.mrf.mxu2 }
0x1c52   : > { %v4763_v33 = vld [vmem:[%s6075_s11 + $0x8] sm:$0xf] }
0x1c59   : > { %v3505_v42 = vpop.f32.mrf.mxu2 }
0x1c5a   : > { %v3542_v44 = vpack.c.bf16 %v3505_v42, %v3505_v42 }
0x1c5c   : > { %v3547_v45 = vsel %vm1546_vm5, %v3542_v44, 0  ;;  %v3753_v44 = vsel %vm1546_vm5, %v4763_v33, 0 }
0x1c5d   : > { %3556 = vmatpush.bf16.msrb.mxu1 %v3547_v45 }
0x1c61   : > { %v3507_v46 = vpop.f32.mrf.mxu2  ;;  %3656 = vmatpush.bf16.msra.mxu1 %v4940_v11 }
0x1c65   : > { %3657 = vmatpush.bf16.msra.mxu1 %v4939_v12 }
0x1cc0   : > { %v3387_v47 = vpop.xlane.xlu2 %3386 }
0x1cc1   : > { %v3388_v40 = vsub.f32 %v3382_v39, %v3387_v47 }
0x1cc3   : > { %v3389_v49 = vmul.f32 1.442695, %v3388_v40 }
0x1cc5   : > { %5112 = vpow2.f32 %v3389_v49 }
0x1ccb   : > { %v5113_v26 = vpop.eup %5112 }
0x1ccc   : > { %v3391_v50 = vsel %vm1510_vm6, %v5113_v26, 0.0 }
0x1ccd   : > { %3392 = vadd.xlane.f32.xlu0 %v3391_v50 }
0x1d40   : > { %v3393_v59 = vpop.xlane.xlu0 %3392 }
0x1d41   : > { %5114 = vrcp.f32 %v3393_v59 }
0x1d47   : > { %v5115_v51 = vpop.eup %5114 }
0x1d48   : > { %v3395_v56 = vmul.f32 %v5115_v51, %v5113_v26 }
0x1d4a   : > { %v3396_v43 = vpack.c.bf16 %v3395_v56, %v3395_v56 }
0x1d4c   : > { %4677 = vmatmul.msk.bf16.vlgmr.msrb.gmra.mxu3 %vm1510_vm6, %v3396_v43 }
0x1d4d   : > { %3626 = vmatpush.bf16.msrb.mxu3 %v4938_v52 }
0x1d51   : > { %3627 = vmatpush.bf16.msrb.mxu3 %v4937_v53 }
0x1d5c   : > { %4717 = vmatmul.msk.bf16.vlgmr.msra.gmra.mxu3 %vm1510_vm6, %v3509_v54 }
0x1d6c   : > { %4734 = vmatmul.msk.bf16.vlgmr.msrb.gmra.mxu3 %vm1379_vm0, %v5839_v14 }
0x1dcf   : > { %v3413_v58 = vpop.f32.mrf.mxu3 }
0x1dd0   : > { %v3417_v61 = vpack.c.bf16 %v3413_v58, %v3413_v58 }
0x1dd2   : > { %4721 = vmatmul.msk.bf16.vlgmr.msrb.gmra.mxu2 %vm1510_vm6, %v3417_v61  ;;  %v4948_v61 = vld [vmem:[%s6072_s13 + $0x38] sm:$0xff] }
0x1dd7   : > { %v3415_v62 = vpop.f32.mrf.mxu3 }
0x1dd8   : > { %v4947_v62 = vld [vmem:[%s6072_s13 + $0x30] sm:$0xff] }
0x1ddf   : > { %v3526_v63 = vpop.f32.mrf.mxu3 }
0x1de0   : > { %v3527_v2 = vadd.f32 %v5860_v38, %v3526_v63 }
0x1de2   : > { %v3530_v3 = vsel %vm1510_vm6, %v3527_v2, -inf }
0x1de3   : > { %3531 = vmax.xlane.f32.xlu1 %v3530_v3 }
0x1de7   : > { %v3528_v29 = vpop.f32.mrf.mxu3 }
0x1def   : > { %v3629_v60 = vpop.f32.mrf.mxu3 }
0x1df0   : > { %v3693_v36 = vpack.c.bf16 %v3629_v60, %v3629_v60 }
0x1df7   : > { %v3631_v4 = vpop.f32.mrf.mxu3 }
0x1e55   : > { %v5877_v5 = vpop.f32.mrf.mxu2 }
0x1e56   : > { %v3532_v0 = vpop.xlane.xlu1 %3531 }
0x1e57   : > { %v3533_v6 = vsub.f32 %v3527_v2, %v3532_v0 }
0x1e59   : > { %v3534_v7 = vmul.f32 1.442695, %v3533_v6 }
0x1e5b   : > { %5116 = vpow2.f32 %v3534_v7 }
0x1e5d   : > { %v3601_v1 = vpop.f32.mrf.mxu2 }
0x1e61   : > { %v5117_v9 = vpop.eup %5116 }
0x1e62   : > { %v3536_v10 = vsel %vm1510_vm6, %v5117_v9, 0.0 }
0x1e63   : > { %3537 = vadd.xlane.f32.xlu2 %v3536_v10 }
0x1ed6   : > { %v3538_v13 = vpop.xlane.xlu2 %3537 }
0x1ed7   : > { %5118 = vrcp.f32 %v3538_v13 }
0x1edd   : > { %v5119_v15 = vpop.eup %5118 }
0x1ede   : > { %v3540_v16 = vmul.f32 %v5119_v15, %v5117_v9 }
0x1ee0   : > { %v3541_v17 = vpack.c.bf16 %v3540_v16, %v3540_v16 }
0x1ee2   : > { %4718 = vmatmul.msk.bf16.vlgmr.msrb.gmra.mxu1 %vm1510_vm6, %v3541_v17 }
0x1ee3   : > { %3762 = vmatpush.bf16.msrb.mxu1 %v3753_v44 }
0x1ef2   : > { %4747 = vmatmul.msk.bf16.vlgmr.msra.gmra.mxu1 %vm1379_vm0, %v5839_v14 }
0x1f5f   : > { %v3558_v22 = vpop.f32.mrf.mxu1 }
0x1f60   : > { %v3562_v24 = vpack.c.bf16 %v3558_v22, %v3558_v22 }
0x1f62   : > { %4720 = vmatmul.msk.bf16.vlgmr.msrb.gmra.mxu0 %vm1510_vm6, %v3562_v24 }
0x1f63   : > { %3792 = vmatpush.bf16.msrb.mxu0 %v4944_v23 }
0x1f67   : > { %v3560_v27 = vpop.f32.mrf.mxu1  ;;  %3793 = vmatpush.bf16.msrb.mxu0 %v4943_v25 }
0x1f6f   : > { %v3659_v28 = vpop.f32.mrf.mxu1 }
0x1f70   : > { %v3694_v30 = vpack.c.bf16 %v3659_v28, %v3659_v28 }
0x1f72   : > { %v3699_v32 = vsel %vm1510_vm6, %v3694_v30, 0  ;;  %4760 = vmatmul.msk.bf16.vlgmr.msra.gmra.mxu0 %vm1379_vm0, %v5839_v14 }
0x1f73   : > { %3708 = vmatpush.bf16.xpose.msra.mxu2 %v3699_v32 }
0x1f77   : > { %v3661_v35 = vpop.f32.mrf.mxu1 }
0x1f7a   : > { %4761 = vmatmul.msk.bf16.vlgmr.msra.gmra.mxu2 %vm1510_vm6, %v3693_v36  ;;  %v5063_v36 = vld [vmem:[%s6076_s3] ss:$0 sm:$0xff]  ;;  %s6078_s3 = sld [smem:[#allocation38_spill]] }
0x1f7b   : > { %3822 = vmatpush.bf16.msrb.mxu2 %v4946_v31 }
0x1f7f   : > { %3823 = vmatpush.bf16.msrb.mxu2 %v4945_v34 }
0x1f82   : > { %4777 = vmatmul.msk.bf16.vlgmr.msrb.gmra.mxu0 %vm1379_vm0, %v5839_v14 }
0x1f8a   : > { %4790 = vmatmul.msk.bf16.vlgmr.msrb.gmra.mxu2 %vm1379_vm0, %v5839_v14 }
0x1fdf   : > { %v3580_v37 = vpop.f32.mrf.mxu0 }
0x1fe0   : > { %v3600_v11 = vadd.f32 %v5877_v5, %v3580_v37 }
0x1fe7   : > { %v3582_v39 = vpop.f32.mrf.mxu0 }
0x1fef   : > { %v3689_v41 = vpop.f32.mrf.mxu0 }
0x1ff0   : > { %v3726_v42 = vpack.c.bf16 %v3689_v41, %v3689_v41 }
0x1ff2   : > { %v3731_v45 = vsel %vm1546_vm5, %v3726_v42, 0 }
0x1ff3   : > { %3740 = vmatpush.bf16.msra.mxu3 %v3731_v45 }
0x1ff7   : > { %v3691_v46 = vpop.f32.mrf.mxu0  ;;  %3852 = vmatpush.bf16.msrb.mxu3 %v4948_v61 }
0x1ffb   : > { %3853 = vmatpush.bf16.msrb.mxu3 %v4947_v62  ;;  %v5064_v62 = vld [vmem:[%s6078_s3] ss:$0 sm:$0xff] }
0x1ffd   : > { %v3710_v47 = vpop.f32.mrf.mxu2 }
0x1ffe   : > { %v3711_v40 = vadd.f32 %v5860_v38, %v3710_v47 }
0x1fff   : > { %v3795_v49 = vpop.f32.mrf.mxu0 }
0x2000   : > { %v3714_v26 = vsel %vm1510_vm6, %v3711_v40, -inf  ;;  %v3859_v7 = vpack.c.bf16 %v3795_v49, %v3795_v49  ;;  %v4958_v49 = vld [vmem:[%s5471_s27 + $0x38] sm:$0xff] }
0x2001   : > { %3715 = vmax.xlane.f32.xlu0 %v3714_v26 }
0x2005   : > { %v3712_v50 = vpop.f32.mrf.mxu2 }
0x2007   : > { %v3797_v59 = vpop.f32.mrf.mxu0 }
0x2008   : > { %v4957_v59 = vld [vmem:[%s5471_s27 + $0x30] sm:$0xff] }
0x200d   : > { %v3825_v51 = vpop.f32.mrf.mxu2 }
0x200e   : > { %v3860_v56 = vpack.c.bf16 %v3825_v51, %v3825_v51 }
0x2010   : > { %v3865_v52 = vsel %vm1510_vm6, %v3860_v56, 0  ;;  %v4956_v56 = vld [vmem:[%s5471_s27 + $0x28] sm:$0xff] }
0x2011   : > { %3874 = vmatpush.bf16.xpose.msra.mxu1 %v3865_v52  ;;  %v4955_v52 = vld [vmem:[%s5471_s27 + $0x20] sm:$0xff] }
0x2015   : > { %v3827_v43 = vpop.f32.mrf.mxu2 }
0x2074   : > { %v3716_v53 = vpop.xlane.xlu0 %3715 }
0x2075   : > { %v3717_v54 = vsub.f32 %v3711_v40, %v3716_v53  ;;  %v4949_v40 = vld [vmem:[%s6077_s8] sm:$0xff] }
0x2077   : > { %v3718_v55 = vmul.f32 1.442695, %v3717_v54  ;;  %v4954_v54 = vld [vmem:[%s5471_s27 + $0x18] sm:$0xff] }
0x2079   : > { %5120 = vpow2.f32 %v3718_v55 }
0x207f   : > { %v5121_v57 = vpop.eup %5120 }
0x2080   : > { %v3720_v58 = vsel %vm1510_vm6, %v5121_v57, 0.0 }
0x2081   : > { %3721 = vadd.xlane.f32.xlu1 %v3720_v58 }
0x20f4   : > { %v3722_v63 = vpop.xlane.xlu1 %3721 }
0x20f5   : > { %5122 = vrcp.f32 %v3722_v63 }
0x20fb   : > { %v5123_v2 = vpop.eup %5122 }
0x20fc   : > { %v3724_v3 = vmul.f32 %v5123_v2, %v5121_v57  ;;  %v5065_v2 = vld [vmem:[%s6079_s1] ss:$0 sm:$0xff]  ;;  %s1367_s1 = sand.u32 1, %s5185_s16  }
0x20fd   : > { %s4220_s3 = sshll.u32 %s1367_s1, 3  ;;  %s4096_s13 = scalar_lea.sflag [#allocation3], %s1367_s1 }
0x20fe   : > { %v3725_v29 = vpack.c.bf16 %v3724_v3, %v3724_v3 }
0x2100   : > { %4762 = vmatmul.msk.bf16.vlgmr.msra.gmra.mxu3 %vm1510_vm6, %v3725_v29 }
0x2110   : > { %4803 = vmatmul.msk.bf16.vlgmr.msrb.gmra.mxu3 %vm1379_vm0, %v5839_v14 }
0x2183   : > { %v3742_v60 = vpop.f32.mrf.mxu3 }
0x2184   : > { %v3746_v4 = vpack.c.bf16 %v3742_v60, %v3742_v60 }
0x2186   : > { %4764 = vmatmul.msk.bf16.vlgmr.msrb.gmra.mxu1 %vm1510_vm6, %v3746_v4 }
0x2187   : > { %4080 = vmatpush.bf16.msrb.mxu1 %v4958_v49 }
0x218b   : > { %v3744_v0 = vpop.f32.mrf.mxu3  ;;  %4081 = vmatpush.bf16.msrb.mxu1 %v4957_v59 }
0x218c   : > { %v4952_v0 = vld [vmem:[%s5471_s27 + $0x8] sm:$0xff] }
0x218f   : > { %4082 = vmatpush.bf16.msrb.mxu1 %v4956_v56 }
0x2193   : > { %v3855_v6 = vpop.f32.mrf.mxu3  ;;  %4083 = vmatpush.bf16.msrb.mxu1 %v4955_v52 }
0x2194   : > { %v3892_v1 = vpack.c.bf16 %v3855_v6, %v3855_v6  ;;  %v4951_v6 = vld [vmem:[%s5471_s27] sm:$0xff] }
0x2196   : > { %v3897_v9 = vsel %vm1546_vm5, %v3892_v1, 0  ;;  %4804 = vmatmul.msk.bf16.vlgmr.msra.gmra.mxu1 %vm1510_vm6, %v3859_v7  ;;  %v5066_v7 = vld [vmem:[%s5466_s20] ss:$0 sm:$0xff] }
0x2197   : > { %3906 = vmatpush.bf16.msra.mxu0 %v3897_v9  ;;  %4084 = vmatpush.bf16.msrb.mxu1 %v4954_v54 }
0x219b   : > { %v3857_v10 = vpop.f32.mrf.mxu3 }
0x2203   : > { %v3764_v12 = vpop.f32.mrf.mxu1 }
0x2204   : > { %v3768_v13 = vadd.f32 %v3764_v12, %v3600_v11 }
0x220b   : > { %v3766_v15 = vpop.f32.mrf.mxu1 }
0x2213   : > { %v3876_v14 = vpop.f32.mrf.mxu1 }
0x2214   : > { %v3877_v16 = vadd.f32 %v5860_v38, %v3876_v14  ;;  %v4806_v38 = vld [vmem:[%s6075_s11 + $0xc] sm:$0xf]  ;;  %s4110_s11 = sshll.u32 %s4106_s6, 4  ;;  %s4111_s11 = int_to_ptr.hbm [resolvable:$true] %s4110_s11 }
0x2215   : > { %v3919_v28 = vsel %vm1546_vm5, %v4806_v38, 0  ;;  %s5145_s14 = sshra.s32 %s4111_s11, 4  ;;  %s5146_s14 = int_to_ptr.hbm [resolvable:$true] %s5145_s14 }
0x2216   : > { %v3880_v17 = vsel %vm1510_vm6, %v3877_v16, -inf  ;;  %3928 = vmatpush.bf16.msra.mxu2 %v3919_v28  ;;  %s5147_s0 = scalar_lea.hbm %s5146_s14, 8  ;;  %p5152_p0 = scmp.lt.s32.totalorder %s5146_s14, %s5481_s12 }
0x2217   : > { %3881 = vmax.xlane.f32.xlu2 %v3880_v17  ;;  %p5148_p11 = scmp.ne.s32.totalorder %s5146_s14, %s5147_s0  ;;  %p5153_p1 = scmp.lt.s32.totalorder %s5151_s5, %s5147_s0 }
0x2219   : > { %p5149_p12 = pnand %p5148_p11, %p5521_p5  ;;  %p5154_p2 = por %p5153_p1, %p5152_p0 }
0x221b   : > { %v3878_v18 = vpop.f32.mrf.mxu1  ;;  %p5150_p13 = pneg %p5149_p12 }
0x221d   : > { %p5155_p3 = pnand %p5154_p2, %p5150_p13 }
0x228a   : > { %v3882_v19 = vpop.xlane.xlu2 %3881 }
0x228b   : > { %v3883_v20 = vsub.f32 %v3877_v16, %v3882_v19 }
0x228d   : > { %v3884_v21 = vmul.f32 1.442695, %v3883_v20 }
0x228f   : > { %5124 = vpow2.f32 %v3884_v21 }
0x2295   : > { %v5125_v22 = vpop.eup %5124 }
0x2296   : > { %v3886_v23 = vsel %vm1510_vm6, %v5125_v22, 0.0 }
0x2297   : > { %3887 = vadd.xlane.f32.xlu0 %v3886_v23 }
0x230a   : > { %v3888_v5 = vpop.xlane.xlu0 %3887 }
0x230b   : > { %5126 = vrcp.f32 %v3888_v5 }
0x2311   : > { %v5127_v24 = vpop.eup %5126 }
0x2312   : > { %v3890_v25 = vmul.f32 %v5127_v24, %v5125_v22 }
0x2314   : > { %v3891_v27 = vpack.c.bf16 %v3890_v25, %v3890_v25 }
0x2316   : > { %4805 = vmatmul.msk.bf16.vlgmr.msra.gmra.mxu0 %vm1510_vm6, %v3891_v27 }
0x2393   : > { %v3908_v30 = vpop.f32.mrf.mxu0 }
0x2394   : > { %v3912_v31 = vpack.c.bf16 %v3908_v30, %v3908_v30 }
0x2396   : > { %4807 = vmatmul.msk.bf16.vlgmr.msra.gmra.mxu2 %vm1510_vm6, %v3912_v31 }
0x239b   : > { %v3910_v32 = vpop.f32.mrf.mxu0 }
0x2419   : > { %v3930_v34 = vpop.f32.mrf.mxu2 }
0x241a   : > { %v3934_v35 = vadd.f32 %v3930_v34, %v3768_v13  ;;  %v5067_v13 = vld [vmem:[%s5476_s4] ss:$0 sm:$0xff] }
0x241c   : > { %v3935_v37 = vadd.f32 %v3934_v35, %v5819_v48  ;;  %v4950_v48 = vld [vmem:[%s6077_s8 + $0x8] sm:$0xff]  ;;  %s1369_s8 = scalar_lea.vmem [#allocation2], %s4220_s3 }
0x241d   : > { %4003 = vmatpush.bf16.msra.mxu3 %v4950_v48  ;;  %s4108_s9 = sshll.u32 %s1369_s8, 4  ;;  %s4109_s9 = int_to_ptr.vmem [resolvable:$true] %s4108_s9 }
0x241e   : > { %v5927_v39 = vadd.f32 %v5063_v36, %v3935_v37 }
0x2420   : > { %v3943_v41 = vsel %vm1379_vm0, %v5927_v39, 0.0 }
0x2421   : > { %3944 = vadd.xlane.f32.xlu1 %v3943_v41  ;;  %v3932_v33 = vpop.f32.mrf.mxu2  ;;  %4004 = vmatpush.bf16.msra.mxu3 %v4949_v40 }
0x2494   : > { %v3945_v42 = vpop.xlane.xlu1 %3944 }
0x2495   : > { %v3946_v44 = vmul.f32 %v3945_v42, %v5538_v8 }
0x2497   : > { %v3947_v45 = vsub.f32 %v5927_v39, %v3946_v44 }
0x2499   : > { %v3948_v46 = vmul.f32 %v3947_v45, %v3947_v45 }
0x249b   : > { %v3949_v47 = vsel %vm1379_vm0, %v3948_v46, 0.0 }
0x249c   : > { %3950 = vadd.xlane.f32.xlu2 %v3949_v47 }
0x250f   : > { %v3951_v26 = vpop.xlane.xlu2 %3950 }
0x2510   : > { %v3952_v50 = vmul.f32 %v3951_v26, %v5538_v8  ;;  %v4953_v8 = vld [vmem:[%s5471_s27 + $0x10] sm:$0xff] }
0x2511   : > { %4085 = vmatpush.bf16.msrb.mxu1 %v4953_v8 }
0x2512   : > { %v3953_v51 = vadd.f32 1e-05, %v3952_v50 }
0x2514   : > { %5128 = vrsqrt.f32 %v3953_v51  ;;  %vm3960_vm6 = vweird.f32 %v3953_v51 }
0x2515   : > { %4086 = vmatpush.bf16.msrb.mxu1 %v4952_v0 }
0x2519   : > { %4087 = vmatpush.bf16.msrb.mxu1 %v4951_v6 }
0x251a   : > { %v5129_v43 = vpop.eup %5128 }
0x251b   : > { %v3955_v53 = vmul.f32 %v5129_v43, %v3953_v51  ;;  %vm3961_vm5 = vweird.f32 %v5129_v43 }
0x251c   : > { %vm3962_vm12 = vmor %vm3960_vm6, %vm3961_vm5 }
0x251d   : > { %v3956_v55 = vmul.f32 %v5129_v43, %v3955_v53 }
0x251f   : > { %v3957_v57 = vmul.f32 0.5, %v3956_v55 }
0x2521   : > { %v3958_v58 = vsub.f32 1.5, %v3957_v57 }
0x2523   : > { %v3959_v61 = vmul.f32 %v5129_v43, %v3958_v58 }
0x2525   : > { %v3963_v63 = vsel %vm3962_vm12, %v5129_v43, %v3959_v61 }
0x2526   : > { %v3964_v3 = vmul.f32 %v3963_v63, %v3947_v45 }
0x2528   : > { %v3968_v29 = vmul.f32 %v5064_v62, %v3964_v3 }
0x252a   : > { %v3972_v60 = vadd.f32 %v5065_v2, %v3968_v29 }
0x252c   : > { %v3973_v4 = vpack.c.bf16 %v3972_v60, %v3972_v60 }
0x252e   : > { %4816 = vmatmul.msk.bf16.vlgmr.msra.gmra.mxu3 %vm1379_vm0, %v3973_v4 }
0x25b1   : > { %v4006_v1 = vpop.f32.mrf.mxu3 }
0x25b2   : > { %v4007_v9 = vadd.f32 %v5066_v7, %v4006_v1 }
0x25b4   : > { %v4010_v10 = vmax.f32 %v4007_v9, 0.0 }
0x25b6   : > { %v4011_v11 = vpack.c.bf16 %v4010_v10, %v4010_v10 }
0x25b8   : > { %4088 = vmatmul.bf16.vlgmr.msrb.gmra.mxu1 %v4011_v11 }
0x25b9   : > { %v4008_v12 = vpop.f32.mrf.mxu3 }
0x2635   : > { %v4089_v15 = vpop.f32.mrf.mxu1 }
0x2636   : > { %v4090_v14 = vadd.f32 %v5067_v13, %v4089_v15 }
0x2638   : > { %v4093_v16 = vadd.f32 %v4090_v14, %v5927_v39 }
0x263a   : > { %4094 = vst.msk [vmem:[%s1369_s8] sm:$0xff] %vm1379_vm0, %v4093_v16 }
0x263b   : > { %5158 = shalt.err (!%p5155_p3)
}
0x263c   : > { %4959 = dma.vmem_to_hbm [thread:$0]  (%p5521_p5), %s4109_s9, 128, %s4111_s11, %s4096_s13  }
0x263d   : > { %v4091_v17 = vpop.f32.mrf.mxu1 }
0x263e PF: > { %p4965_p4 = scmp.ge.s32.totalorder %s5193_s22, 2  ;;  %s4122_s6 = sand.u32 1, %s5181_s15  }
0x263f   : > { %s4123_s8 = scalar_lea.sflag [#allocation3], %s4122_s6 }
0x2640   : > { %p4962_p7 = pnand %p4965_p4, %p5525_p6 }
0x2642   : > { %p4963_p8 = pneg %p4962_p7 }
0x2644   : > { %5176 = dma.done.wait (%p4963_p8), %s4123_s8, 128  }
0x2645   : > { %5178 = vsyncadd (%p4963_p8), %s4123_s8, 4294967168  ;;  %p103_p9 = scmp.ge.s32.totalorder %s5508_s26, 4   ;;  %s6080_s15 = smov %s5185_s16 }
0x2646   : > { %s6081_s16 = smov %s5189_s18  ;;  %s6082_s18 = smov %s5519_s2 }
0x2647   : > { %s6083_s22 = smov %s5508_s26  ;;  %105 = sbr.rel (!%p103_p9) target bundleno = 102 (0x66), region = 323 }
0x264c   :  { %4129 = vsyncpa [#allocation3], 1 }
0x264d   :  { %4131 = vsyncpa [#allocation3 + $0x1], 1 }

</bundles_post_ra>
